<compile_context>
chip_gen: v5e
topology: v5e:2x2
jax: 0.10.0
libtpu: 0.0.40
codegen_flags: <defaults>
</compile_context>

<pallas_src>
import jax
import jax.numpy as jnp
from jax.experimental import pallas as pl
from jax.experimental.pallas import tpu as pltpu

# ----------------------- model configuration (small) ------------------------
BATCH = 2
SEQ = 8
INPUT_SIZE = 32      # module default is 50; small shape consistent w/ forward
HIDDEN = 32          # module default is 256
NUM_LAYERS = 4
ACTION_SPACE = 2

H4 = NUM_LAYERS * HIDDEN        # 128 : stacked hidden width (all layers)
GATES = 4 * H4                  # 512 : gate-major columns [r | z | gi_n | gh_n]


def _round8(v):
    return (v + 7) // 8 * 8


# Row layout of the single packed weight slab (W_ROWS, GATES):
R_WH = 0                              # rows [0, 128)   : Whh (all layers) + Wih (layers 1..3)
R_WX = H4                             # rows [128, 160) : layer-0 Wih (input x)
R_BIAS = H4 + INPUT_SIZE              # row 160         : all folded biases
R_FCW = _round8(R_BIAS + 1)           # rows [168, 200) : fc weight (H, A) in cols [0, A)
R_FCB = R_FCW + HIDDEN                # row 200         : fc bias in cols [0, A)
W_ROWS = _round8(R_FCB + 1)           # 208


# ------------------------------- Pallas kernel ------------------------------
def student_kernel(x_ref,    # (T*B, D)   time-major input sequence
                   w_ref,    # (W_ROWS, GATES) packed weights/biases (+ fc)
                   out_ref): # (B, A)
    B, T = BATCH, SEQ
    H, L, A = HIDDEN, NUM_LAYERS, ACTION_SPACE

    w_h = w_ref[R_WH:R_WH + H4, :]                 # (128, 512) recurrent block weight
    w_x = w_ref[R_WX:R_WX + INPUT_SIZE, :]         # (32, 512)  layer-0 input weight
    bias = w_ref[R_BIAS:R_BIAS + 1, :]             # (1, 512)   all folded biases

    # Layer-0 input->hidden gates for ALL timesteps + every bias, in ONE matmul
    # off the serial chain.  Rows [t*B:(t+1)*B] of gx belong to timestep t.
    gx = jnp.dot(x_ref[...], w_x, preferred_element_type=jnp.float32) + bias   # (T*B, 512)

    lane = jax.lax.broadcasted_iota(jnp.int32, (B, H4), 1)

    # h_stack columns [l*H:(l+1)*H] hold layer l's hidden state along the wavefront.
    h_stack = jnp.zeros((B, H4), jnp.float32)
    for d in range(T + L - 1):                      # 11 wavefront steps, static unroll
        t = min(d, T - 1)                           # layer-0 time index (clamped; masked below)
        slab = gx[t * B:(t + 1) * B, :]             # (B, 512): layer-0 gi + all biases
        # One MXU op per step carries: hidden recurrence of every layer AND the
        # layer(l-1)->layer(l) input gates (block-structured w_h).
        g = jnp.dot(h_stack, w_h, preferred_element_type=jnp.float32) + slab   # (B, 512)

        # Gate-major, 128-lane-aligned slices; each op covers all 4 layers.
        r = jax.nn.sigmoid(g[:, 0:H4])
        z = jax.nn.sigmoid(g[:, H4:2 * H4])
        n = jnp.tanh(g[:, 2 * H4:3 * H4] + r * g[:, 3 * H4:4 * H4])
        h_new = n + z * (h_stack - n)               # == (1-z)*n + z*h

        # Static validity mask: layer l is active iff 0 <= d-l < T (contiguous range).
        lo, hi = max(0, d - T + 1), min(L - 1, d)
        if lo == 0 and hi == L - 1:
            h_stack = h_new
        else:
            mask = (lane >= lo * H) & (lane < (hi + 1) * H)
            h_stack = jnp.where(mask, h_new, h_stack)

    # fc(out[:, -1, :]) on the last layer's final hidden state; dropout_1 = identity (eval).
    h_last = h_stack[:, (L - 1) * H:L * H]          # (B, H)
    fc_w = w_ref[R_FCW:R_FCW + H, 0:A]              # (H, A)
    fc_b = w_ref[R_FCB:R_FCB + 1, 0:A]              # (1, A)
    out_ref[...] = (jnp.dot(h_last, fc_w, preferred_element_type=jnp.float32)
                    + fc_b).astype(out_ref.dtype)


# --------------------------------- wrapper ----------------------------------
@jax.jit
def student_forward(x, w_all):
    """x: (B, T, INPUT_SIZE) f32, w_all: packed weights -> (B, ACTION_SPACE) f32."""
    B, T, D = x.shape
    x_tm = jnp.swapaxes(x, 0, 1).reshape(T * B, D)   # tiny time-major flatten
    return pl.pallas_call(
        student_kernel,
        out_shape=jax.ShapeDtypeStruct((B, ACTION_SPACE), jnp.float32),
        in_specs=[pl.BlockSpec(memory_space=pltpu.MemorySpace.VMEM),
                  pl.BlockSpec(memory_space=pltpu.MemorySpace.VMEM)],
        out_specs=pl.BlockSpec(memory_space=pltpu.MemorySpace.VMEM),
    )(x_tm, w_all)


# ------------------- one-time parameter packing (init time) -----------------
def pack_params(params):
    """Repack PyTorch-layout GRU/Linear params into one lane-aligned slab.

    Columns (gate-major): [A_r | A_z | gi_n | gh_n], each 4H=128 wide, with
    layer l occupying lanes [l*H:(l+1)*H] inside each gate block.
    Rows: h_stack rows carry Whh(l) and Wih(l+1); x rows carry Wih(0); one bias
    row folds (b_ir+b_hr, b_iz+b_hz, b_in, b_hn); fc weight/bias appended.
    Done once at init time so the per-call path has no transposes/broadcasts.
    """
    wih0, bih0, wih_rest, bih_rest, whh, bhh, fcw, fcb = params
    H, L, D, A = HIDDEN, NUM_LAYERS, INPUT_SIZE, ACTION_SPACE

    def col(gate, l):       # 0=r, 1=z, 2=gi_n, 3=gh_n
        return gate * H4 + l * H

    w = jnp.zeros((W_ROWS, GATES), jnp.float32)
    for l in range(L):
        w_hh_l, b_hh_l = whh[l], bhh[l][0]
        if l == 0:
            w_ih_l, b_ih_l = wih0, bih0[0]
        else:
            w_ih_l, b_ih_l = wih_rest[l - 1], bih_rest[l - 1][0]
        w_hr, w_hz, w_hn = w_hh_l[:H], w_hh_l[H:2 * H], w_hh_l[2 * H:]
        w_ir, w_iz, w_in = w_ih_l[:H], w_ih_l[H:2 * H], w_ih_l[2 * H:]
        b_ir, b_iz, b_in = b_ih_l[:H], b_ih_l[H:2 * H], b_ih_l[2 * H:]
        b_hr, b_hz, b_hn = b_hh_l[:H], b_hh_l[H:2 * H], b_hh_l[2 * H:]

        r0 = R_WH + l * H                                 # h_stack[l] rows -> layer l gh
        w = w.at[r0:r0 + H, col(0, l):col(0, l) + H].set(w_hr.T)
        w = w.at[r0:r0 + H, col(1, l):col(1, l) + H].set(w_hz.T)
        w = w.at[r0:r0 + H, col(3, l):col(3, l) + H].set(w_hn.T)
        if l == 0:                                        # x rows -> layer 0 gi
            w = w.at[R_WX:R_WX + D, col(0, 0):col(0, 0) + H].set(w_ir.T)
            w = w.at[R_WX:R_WX + D, col(1, 0):col(1, 0) + H].set(w_iz.T)
            w = w.at[R_WX:R_WX + D, col(2, 0):col(2, 0) + H].set(w_in.T)
        else:                                             # h_stack[l-1] rows -> layer l gi
            ri = R_WH + (l - 1) * H
            w = w.at[ri:ri + H, col(0, l):col(0, l) + H].set(w_ir.T)
            w = w.at[ri:ri + H, col(1, l):col(1, l) + H].set(w_iz.T)
            w = w.at[ri:ri + H, col(2, l):col(2, l) + H].set(w_in.T)
        # Biases: r/z fold ih+hh; b_in stays with gi_n, b_hn stays inside the r*() term.
        w = w.at[R_BIAS, col(0, l):col(0, l) + H].set(b_ir + b_hr)
        w = w.at[R_BIAS, col(1, l):col(1, l) + H].set(b_iz + b_hz)
        w = w.at[R_BIAS, col(2, l):col(2, l) + H].set(b_in)
        w = w.at[R_BIAS, col(3, l):col(3, l) + H].set(b_hn)

    w = w.at[R_FCW:R_FCW + H, 0:A].set(fcw.T)
    w = w.at[R_FCB, 0:A].set(fcb[0])
    return w


# ----------------------------- pure-JAX reference ----------------------------
def student_ref(x, params):
    wih0, bih0, wih_rest, bih_rest, whh, bhh, fcw, fcb = params
    B, T, D = x.shape
    H = HIDDEN
    seq = x                                          # (B, T, D)
    for layer in range(NUM_LAYERS):
        if layer == 0:
            wih, bih = wih0, bih0
        else:
            wih, bih = wih_rest[layer - 1], bih_rest[layer - 1]
        w_hh, b_hh = whh[layer], bhh[layer]

        def step(h_prev, x_t, wih=wih, bih=bih, w_hh=w_hh, b_hh=b_hh):
            gi = x_t @ wih.T + bih
            gh = h_prev @ w_hh.T + b_hh
            i_r, i_z, i_n = gi[:, :H], gi[:, H:2 * H], gi[:, 2 * H:]
            h_r, h_z, h_n = gh[:, :H], gh[:, H:2 * H], gh[:, 2 * H:]
            r = jax.nn.sigmoid(i_r + h_r)
            z = jax.nn.sigmoid(i_z + h_z)
            n = jnp.tanh(i_n + r * h_n)
            h_new = (1.0 - z) * n + z * h_prev
            return h_new, h_new

        h0 = jnp.zeros((B, H), jnp.float32)
        _, outs = jax.lax.scan(step, h0, jnp.swapaxes(seq, 0, 1))
        seq = jnp.swapaxes(outs, 0, 1)
    return seq[:, -1, :] @ fcw.T + fcb


# -------------------------------- param init ---------------------------------
def init_params(key):
    L, H, D, A = NUM_LAYERS, HIDDEN, INPUT_SIZE, ACTION_SPACE
    k = 1.0 / jnp.sqrt(H)                    # PyTorch GRU init: U(-1/sqrt(H), 1/sqrt(H))
    keys = jax.random.split(key, 8)
    u = lambda kk, shape: jax.random.uniform(kk, shape, jnp.float32, -k, k)

    wih0 = u(keys[0], (3 * H, D))
    bih0 = u(keys[1], (1, 3 * H))
    wih_rest = u(keys[2], (L - 1, 3 * H, H))
    bih_rest = u(keys[3], (L - 1, 1, 3 * H))
    whh = u(keys[4], (L, 3 * H, H))
    bhh = u(keys[5], (L, 1, 3 * H))
    kf = 1.0 / jnp.sqrt(H)                   # Linear init: U(-1/sqrt(fan_in), ...)
    fcw = jax.random.uniform(keys[6], (A, H), jnp.float32, -kf, kf)
    fcb = jax.random.uniform(keys[7], (1, A), jnp.float32, -kf, kf)
    return (wih0, bih0, wih_rest, bih_rest, whh, bhh, fcw, fcb)


# ----------------------------------- main ------------------------------------
if __name__ == "__main__":
    key = jax.random.PRNGKey(0)
    kx, kp = jax.random.split(key)
    x = jax.random.normal(kx, (BATCH, SEQ, INPUT_SIZE), jnp.float32)
    params = init_params(kp)
    w_all = jax.block_until_ready(pack_params(params))   # one-time init-side repack

    out = jax.block_until_ready(student_forward(x, w_all))

    ref = jax.block_until_ready(student_ref(x, params))
    assert out.shape == (BATCH, ACTION_SPACE)
    assert jnp.allclose(out, ref, atol=2e-4, rtol=2e-4), (out, ref)

    print("KERNEL_OK")
</pallas_src>

<mosaic_0001>
module attributes {stable_mosaic.version = 11 : i64} {
  func.func @student_kernel(%arg0: memref<16x32xf32, #tpu.memory_space<vmem>>, %arg1: memref<208x512xf32, #tpu.memory_space<vmem>>, %arg2: memref<2x2xf32, #tpu.memory_space<vmem>>) attributes {dimension_semantics = [], scalar_prefetch = 0 : i64, scratch_operands = 0 : i64, tpu.core_type = #tpu.core_type<tc>} {
    %c0 = arith.constant 0 : index
    %c0_0 = arith.constant 0 : index
    %0 = vector.load %arg1[%c0, %c0_0] : memref<208x512xf32, #tpu.memory_space<vmem>>, vector<128x512xf32>
    %c128 = arith.constant 128 : index
    %c0_1 = arith.constant 0 : index
    %1 = vector.load %arg1[%c128, %c0_1] : memref<208x512xf32, #tpu.memory_space<vmem>>, vector<32x512xf32>
    %c160 = arith.constant 160 : index
    %c0_2 = arith.constant 0 : index
    %2 = vector.load %arg1[%c160, %c0_2] : memref<208x512xf32, #tpu.memory_space<vmem>>, vector<1x512xf32>
    %c0_3 = arith.constant 0 : index
    %c0_4 = arith.constant 0 : index
    %3 = vector.load %arg0[%c0_3, %c0_4] : memref<16x32xf32, #tpu.memory_space<vmem>>, vector<16x32xf32>
    %cst = arith.constant dense<0.000000e+00> : vector<16x512xf32>
    %4 = tpu.matmul %3, %1, %cst {dimension_numbers = #tpu.dot_dimension_numbers<[1], [0], [0], [1], [0, 0, 1, 1], [], []>} : vector<16x32xf32>, vector<32x512xf32>, vector<16x512xf32> -> vector<16x512xf32>
    %5 = vector.broadcast %2 : vector<1x512xf32> to vector<16x512xf32>
    %6 = arith.addf %4, %5 : vector<16x512xf32>
    %7 = tpu.iota {dimensions = array<i32: 1>} : vector<2x128xi32>
    %cst_5 = arith.constant 0.000000e+00 : f32
    %8 = vector.broadcast %cst_5 : f32 to vector<2x128xf32>
    %9 = vector.extract_strided_slice %6 {offsets = [0, 0], sizes = [2, 512], strides = [1, 1]} : vector<16x512xf32> to vector<2x512xf32>
    %cst_6 = arith.constant dense<0.000000e+00> : vector<2x512xf32>
    %10 = tpu.matmul %8, %0, %cst_6 {dimension_numbers = #tpu.dot_dimension_numbers<[1], [0], [0], [1], [0, 0, 1, 1], [], []>} : vector<2x128xf32>, vector<128x512xf32>, vector<2x512xf32> -> vector<2x512xf32>
    %11 = arith.addf %10, %9 : vector<2x512xf32>
    %12 = vector.extract_strided_slice %11 {offsets = [0, 0], sizes = [2, 128], strides = [1, 1]} : vector<2x512xf32> to vector<2x128xf32>
    %13 = arith.negf %12 : vector<2x128xf32>
    %14 = math.exp %13 : vector<2x128xf32>
    %cst_7 = arith.constant 1.000000e+00 : f32
    %15 = vector.broadcast %cst_7 : f32 to vector<2x128xf32>
    %16 = arith.addf %15, %14 : vector<2x128xf32>
    %17 = arith.divf %15, %16 : vector<2x128xf32>
    %18 = vector.extract_strided_slice %11 {offsets = [0, 128], sizes = [2, 128], strides = [1, 1]} : vector<2x512xf32> to vector<2x128xf32>
    %19 = arith.negf %18 : vector<2x128xf32>
    %20 = math.exp %19 : vector<2x128xf32>
    %cst_8 = arith.constant 1.000000e+00 : f32
    %21 = vector.broadcast %cst_8 : f32 to vector<2x128xf32>
    %22 = arith.addf %21, %20 : vector<2x128xf32>
    %23 = arith.divf %21, %22 : vector<2x128xf32>
    %24 = vector.extract_strided_slice %11 {offsets = [0, 256], sizes = [2, 128], strides = [1, 1]} : vector<2x512xf32> to vector<2x128xf32>
    %25 = vector.extract_strided_slice %11 {offsets = [0, 384], sizes = [2, 128], strides = [1, 1]} : vector<2x512xf32> to vector<2x128xf32>
    %26 = arith.mulf %17, %25 : vector<2x128xf32>
    %27 = arith.addf %24, %26 : vector<2x128xf32>
    %28 = math.tanh %27 : vector<2x128xf32>
    %29 = arith.subf %8, %28 : vector<2x128xf32>
    %30 = arith.mulf %23, %29 : vector<2x128xf32>
    %31 = arith.addf %28, %30 : vector<2x128xf32>
    %c0_i32 = arith.constant 0 : i32
    %32 = vector.broadcast %c0_i32 : i32 to vector<2x128xi32>
    %33 = arith.cmpi sge, %7, %32 : vector<2x128xi32>
    %c32_i32 = arith.constant 32 : i32
    %34 = vector.broadcast %c32_i32 : i32 to vector<2x128xi32>
    %35 = arith.cmpi slt, %7, %34 : vector<2x128xi32>
    %36 = arith.andi %33, %35 : vector<2x128xi1>
    %37 = arith.select %36, %31, %8 : vector<2x128xi1>, vector<2x128xf32>
    %38 = vector.extract_strided_slice %6 {offsets = [2, 0], sizes = [2, 512], strides = [1, 1]} : vector<16x512xf32> to vector<2x512xf32>
    %cst_9 = arith.constant dense<0.000000e+00> : vector<2x512xf32>
    %39 = tpu.matmul %37, %0, %cst_9 {dimension_numbers = #tpu.dot_dimension_numbers<[1], [0], [0], [1], [0, 0, 1, 1], [], []>} : vector<2x128xf32>, vector<128x512xf32>, vector<2x512xf32> -> vector<2x512xf32>
    %40 = arith.addf %39, %38 : vector<2x512xf32>
    %41 = vector.extract_strided_slice %40 {offsets = [0, 0], sizes = [2, 128], strides = [1, 1]} : vector<2x512xf32> to vector<2x128xf32>
    %42 = arith.negf %41 : vector<2x128xf32>
    %43 = math.exp %42 : vector<2x128xf32>
    %cst_10 = arith.constant 1.000000e+00 : f32
    %44 = vector.broadcast %cst_10 : f32 to vector<2x128xf32>
    %45 = arith.addf %44, %43 : vector<2x128xf32>
    %46 = arith.divf %44, %45 : vector<2x128xf32>
    %47 = vector.extract_strided_slice %40 {offsets = [0, 128], sizes = [2, 128], strides = [1, 1]} : vector<2x512xf32> to vector<2x128xf32>
    %48 = arith.negf %47 : vector<2x128xf32>
    %49 = math.exp %48 : vector<2x128xf32>
    %cst_11 = arith.constant 1.000000e+00 : f32
    %50 = vector.broadcast %cst_11 : f32 to vector<2x128xf32>
    %51 = arith.addf %50, %49 : vector<2x128xf32>
    %52 = arith.divf %50, %51 : vector<2x128xf32>
    %53 = vector.extract_strided_slice %40 {offsets = [0, 256], sizes = [2, 128], strides = [1, 1]} : vector<2x512xf32> to vector<2x128xf32>
    %54 = vector.extract_strided_slice %40 {offsets = [0, 384], sizes = [2, 128], strides = [1, 1]} : vector<2x512xf32> to vector<2x128xf32>
    %55 = arith.mulf %46, %54 : vector<2x128xf32>
    %56 = arith.addf %53, %55 : vector<2x128xf32>
    %57 = math.tanh %56 : vector<2x128xf32>
    %58 = arith.subf %37, %57 : vector<2x128xf32>
    %59 = arith.mulf %52, %58 : vector<2x128xf32>
    %60 = arith.addf %57, %59 : vector<2x128xf32>
    %c0_i32_12 = arith.constant 0 : i32
    %61 = vector.broadcast %c0_i32_12 : i32 to vector<2x128xi32>
    %62 = arith.cmpi sge, %7, %61 : vector<2x128xi32>
    %c64_i32 = arith.constant 64 : i32
    %63 = vector.broadcast %c64_i32 : i32 to vector<2x128xi32>
    %64 = arith.cmpi slt, %7, %63 : vector<2x128xi32>
    %65 = arith.andi %62, %64 : vector<2x128xi1>
    %66 = arith.select %65, %60, %37 : vector<2x128xi1>, vector<2x128xf32>
    %67 = vector.extract_strided_slice %6 {offsets = [4, 0], sizes = [2, 512], strides = [1, 1]} : vector<16x512xf32> to vector<2x512xf32>
    %cst_13 = arith.constant dense<0.000000e+00> : vector<2x512xf32>
    %68 = tpu.matmul %66, %0, %cst_13 {dimension_numbers = #tpu.dot_dimension_numbers<[1], [0], [0], [1], [0, 0, 1, 1], [], []>} : vector<2x128xf32>, vector<128x512xf32>, vector<2x512xf32> -> vector<2x512xf32>
    %69 = arith.addf %68, %67 : vector<2x512xf32>
    %70 = vector.extract_strided_slice %69 {offsets = [0, 0], sizes = [2, 128], strides = [1, 1]} : vector<2x512xf32> to vector<2x128xf32>
    %71 = arith.negf %70 : vector<2x128xf32>
    %72 = math.exp %71 : vector<2x128xf32>
    %cst_14 = arith.constant 1.000000e+00 : f32
    %73 = vector.broadcast %cst_14 : f32 to vector<2x128xf32>
    %74 = arith.addf %73, %72 : vector<2x128xf32>
    %75 = arith.divf %73, %74 : vector<2x128xf32>
    %76 = vector.extract_strided_slice %69 {offsets = [0, 128], sizes = [2, 128], strides = [1, 1]} : vector<2x512xf32> to vector<2x128xf32>
    %77 = arith.negf %76 : vector<2x128xf32>
    %78 = math.exp %77 : vector<2x128xf32>
    %cst_15 = arith.constant 1.000000e+00 : f32
    %79 = vector.broadcast %cst_15 : f32 to vector<2x128xf32>
    %80 = arith.addf %79, %78 : vector<2x128xf32>
    %81 = arith.divf %79, %80 : vector<2x128xf32>
    %82 = vector.extract_strided_slice %69 {offsets = [0, 256], sizes = [2, 128], strides = [1, 1]} : vector<2x512xf32> to vector<2x128xf32>
    %83 = vector.extract_strided_slice %69 {offsets = [0, 384], sizes = [2, 128], strides = [1, 1]} : vector<2x512xf32> to vector<2x128xf32>
    %84 = arith.mulf %75, %83 : vector<2x128xf32>
    %85 = arith.addf %82, %84 : vector<2x128xf32>
    %86 = math.tanh %85 : vector<2x128xf32>
    %87 = arith.subf %66, %86 : vector<2x128xf32>
    %88 = arith.mulf %81, %87 : vector<2x128xf32>
    %89 = arith.addf %86, %88 : vector<2x128xf32>
    %c0_i32_16 = arith.constant 0 : i32
    %90 = vector.broadcast %c0_i32_16 : i32 to vector<2x128xi32>
    %91 = arith.cmpi sge, %7, %90 : vector<2x128xi32>
    %c96_i32 = arith.constant 96 : i32
    %92 = vector.broadcast %c96_i32 : i32 to vector<2x128xi32>
    %93 = arith.cmpi slt, %7, %92 : vector<2x128xi32>
    %94 = arith.andi %91, %93 : vector<2x128xi1>
    %95 = arith.select %94, %89, %66 : vector<2x128xi1>, vector<2x128xf32>
    %96 = vector.extract_strided_slice %6 {offsets = [6, 0], sizes = [2, 512], strides = [1, 1]} : vector<16x512xf32> to vector<2x512xf32>
    %cst_17 = arith.constant dense<0.000000e+00> : vector<2x512xf32>
    %97 = tpu.matmul %95, %0, %cst_17 {dimension_numbers = #tpu.dot_dimension_numbers<[1], [0], [0], [1], [0, 0, 1, 1], [], []>} : vector<2x128xf32>, vector<128x512xf32>, vector<2x512xf32> -> vector<2x512xf32>
    %98 = arith.addf %97, %96 : vector<2x512xf32>
    %99 = vector.extract_strided_slice %98 {offsets = [0, 0], sizes = [2, 128], strides = [1, 1]} : vector<2x512xf32> to vector<2x128xf32>
    %100 = arith.negf %99 : vector<2x128xf32>
    %101 = math.exp %100 : vector<2x128xf32>
    %cst_18 = arith.constant 1.000000e+00 : f32
    %102 = vector.broadcast %cst_18 : f32 to vector<2x128xf32>
    %103 = arith.addf %102, %101 : vector<2x128xf32>
    %104 = arith.divf %102, %103 : vector<2x128xf32>
    %105 = vector.extract_strided_slice %98 {offsets = [0, 128], sizes = [2, 128], strides = [1, 1]} : vector<2x512xf32> to vector<2x128xf32>
    %106 = arith.negf %105 : vector<2x128xf32>
    %107 = math.exp %106 : vector<2x128xf32>
    %cst_19 = arith.constant 1.000000e+00 : f32
    %108 = vector.broadcast %cst_19 : f32 to vector<2x128xf32>
    %109 = arith.addf %108, %107 : vector<2x128xf32>
    %110 = arith.divf %108, %109 : vector<2x128xf32>
    %111 = vector.extract_strided_slice %98 {offsets = [0, 256], sizes = [2, 128], strides = [1, 1]} : vector<2x512xf32> to vector<2x128xf32>
    %112 = vector.extract_strided_slice %98 {offsets = [0, 384], sizes = [2, 128], strides = [1, 1]} : vector<2x512xf32> to vector<2x128xf32>
    %113 = arith.mulf %104, %112 : vector<2x128xf32>
    %114 = arith.addf %111, %113 : vector<2x128xf32>
    %115 = math.tanh %114 : vector<2x128xf32>
    %116 = arith.subf %95, %115 : vector<2x128xf32>
    %117 = arith.mulf %110, %116 : vector<2x128xf32>
    %118 = arith.addf %115, %117 : vector<2x128xf32>
    %119 = vector.extract_strided_slice %6 {offsets = [8, 0], sizes = [2, 512], strides = [1, 1]} : vector<16x512xf32> to vector<2x512xf32>
    %cst_20 = arith.constant dense<0.000000e+00> : vector<2x512xf32>
    %120 = tpu.matmul %118, %0, %cst_20 {dimension_numbers = #tpu.dot_dimension_numbers<[1], [0], [0], [1], [0, 0, 1, 1], [], []>} : vector<2x128xf32>, vector<128x512xf32>, vector<2x512xf32> -> vector<2x512xf32>
    %121 = arith.addf %120, %119 : vector<2x512xf32>
    %122 = vector.extract_strided_slice %121 {offsets = [0, 0], sizes = [2, 128], strides = [1, 1]} : vector<2x512xf32> to vector<2x128xf32>
    %123 = arith.negf %122 : vector<2x128xf32>
    %124 = math.exp %123 : vector<2x128xf32>
    %cst_21 = arith.constant 1.000000e+00 : f32
    %125 = vector.broadcast %cst_21 : f32 to vector<2x128xf32>
    %126 = arith.addf %125, %124 : vector<2x128xf32>
    %127 = arith.divf %125, %126 : vector<2x128xf32>
    %128 = vector.extract_strided_slice %121 {offsets = [0, 128], sizes = [2, 128], strides = [1, 1]} : vector<2x512xf32> to vector<2x128xf32>
    %129 = arith.negf %128 : vector<2x128xf32>
    %130 = math.exp %129 : vector<2x128xf32>
    %cst_22 = arith.constant 1.000000e+00 : f32
    %131 = vector.broadcast %cst_22 : f32 to vector<2x128xf32>
    %132 = arith.addf %131, %130 : vector<2x128xf32>
    %133 = arith.divf %131, %132 : vector<2x128xf32>
    %134 = vector.extract_strided_slice %121 {offsets = [0, 256], sizes = [2, 128], strides = [1, 1]} : vector<2x512xf32> to vector<2x128xf32>
    %135 = vector.extract_strided_slice %121 {offsets = [0, 384], sizes = [2, 128], strides = [1, 1]} : vector<2x512xf32> to vector<2x128xf32>
    %136 = arith.mulf %127, %135 : vector<2x128xf32>
    %137 = arith.addf %134, %136 : vector<2x128xf32>
    %138 = math.tanh %137 : vector<2x128xf32>
    %139 = arith.subf %118, %138 : vector<2x128xf32>
    %140 = arith.mulf %133, %139 : vector<2x128xf32>
    %141 = arith.addf %138, %140 : vector<2x128xf32>
    %142 = vector.extract_strided_slice %6 {offsets = [10, 0], sizes = [2, 512], strides = [1, 1]} : vector<16x512xf32> to vector<2x512xf32>
    %cst_23 = arith.constant dense<0.000000e+00> : vector<2x512xf32>
    %143 = tpu.matmul %141, %0, %cst_23 {dimension_numbers = #tpu.dot_dimension_numbers<[1], [0], [0], [1], [0, 0, 1, 1], [], []>} : vector<2x128xf32>, vector<128x512xf32>, vector<2x512xf32> -> vector<2x512xf32>
    %144 = arith.addf %143, %142 : vector<2x512xf32>
    %145 = vector.extract_strided_slice %144 {offsets = [0, 0], sizes = [2, 128], strides = [1, 1]} : vector<2x512xf32> to vector<2x128xf32>
    %146 = arith.negf %145 : vector<2x128xf32>
    %147 = math.exp %146 : vector<2x128xf32>
    %cst_24 = arith.constant 1.000000e+00 : f32
    %148 = vector.broadcast %cst_24 : f32 to vector<2x128xf32>
    %149 = arith.addf %148, %147 : vector<2x128xf32>
    %150 = arith.divf %148, %149 : vector<2x128xf32>
    %151 = vector.extract_strided_slice %144 {offsets = [0, 128], sizes = [2, 128], strides = [1, 1]} : vector<2x512xf32> to vector<2x128xf32>
    %152 = arith.negf %151 : vector<2x128xf32>
    %153 = math.exp %152 : vector<2x128xf32>
    %cst_25 = arith.constant 1.000000e+00 : f32
    %154 = vector.broadcast %cst_25 : f32 to vector<2x128xf32>
    %155 = arith.addf %154, %153 : vector<2x128xf32>
    %156 = arith.divf %154, %155 : vector<2x128xf32>
    %157 = vector.extract_strided_slice %144 {offsets = [0, 256], sizes = [2, 128], strides = [1, 1]} : vector<2x512xf32> to vector<2x128xf32>
    %158 = vector.extract_strided_slice %144 {offsets = [0, 384], sizes = [2, 128], strides = [1, 1]} : vector<2x512xf32> to vector<2x128xf32>
    %159 = arith.mulf %150, %158 : vector<2x128xf32>
    %160 = arith.addf %157, %159 : vector<2x128xf32>
    %161 = math.tanh %160 : vector<2x128xf32>
    %162 = arith.subf %141, %161 : vector<2x128xf32>
    %163 = arith.mulf %156, %162 : vector<2x128xf32>
    %164 = arith.addf %161, %163 : vector<2x128xf32>
    %165 = vector.extract_strided_slice %6 {offsets = [12, 0], sizes = [2, 512], strides = [1, 1]} : vector<16x512xf32> to vector<2x512xf32>
    %cst_26 = arith.constant dense<0.000000e+00> : vector<2x512xf32>
    %166 = tpu.matmul %164, %0, %cst_26 {dimension_numbers = #tpu.dot_dimension_numbers<[1], [0], [0], [1], [0, 0, 1, 1], [], []>} : vector<2x128xf32>, vector<128x512xf32>, vector<2x512xf32> -> vector<2x512xf32>
    %167 = arith.addf %166, %165 : vector<2x512xf32>
    %168 = vector.extract_strided_slice %167 {offsets = [0, 0], sizes = [2, 128], strides = [1, 1]} : vector<2x512xf32> to vector<2x128xf32>
    %169 = arith.negf %168 : vector<2x128xf32>
    %170 = math.exp %169 : vector<2x128xf32>
    %cst_27 = arith.constant 1.000000e+00 : f32
    %171 = vector.broadcast %cst_27 : f32 to vector<2x128xf32>
    %172 = arith.addf %171, %170 : vector<2x128xf32>
    %173 = arith.divf %171, %172 : vector<2x128xf32>
    %174 = vector.extract_strided_slice %167 {offsets = [0, 128], sizes = [2, 128], strides = [1, 1]} : vector<2x512xf32> to vector<2x128xf32>
    %175 = arith.negf %174 : vector<2x128xf32>
    %176 = math.exp %175 : vector<2x128xf32>
    %cst_28 = arith.constant 1.000000e+00 : f32
    %177 = vector.broadcast %cst_28 : f32 to vector<2x128xf32>
    %178 = arith.addf %177, %176 : vector<2x128xf32>
    %179 = arith.divf %177, %178 : vector<2x128xf32>
    %180 = vector.extract_strided_slice %167 {offsets = [0, 256], sizes = [2, 128], strides = [1, 1]} : vector<2x512xf32> to vector<2x128xf32>
    %181 = vector.extract_strided_slice %167 {offsets = [0, 384], sizes = [2, 128], strides = [1, 1]} : vector<2x512xf32> to vector<2x128xf32>
    %182 = arith.mulf %173, %181 : vector<2x128xf32>
    %183 = arith.addf %180, %182 : vector<2x128xf32>
    %184 = math.tanh %183 : vector<2x128xf32>
    %185 = arith.subf %164, %184 : vector<2x128xf32>
    %186 = arith.mulf %179, %185 : vector<2x128xf32>
    %187 = arith.addf %184, %186 : vector<2x128xf32>
    %188 = vector.extract_strided_slice %6 {offsets = [14, 0], sizes = [2, 512], strides = [1, 1]} : vector<16x512xf32> to vector<2x512xf32>
    %cst_29 = arith.constant dense<0.000000e+00> : vector<2x512xf32>
    %189 = tpu.matmul %187, %0, %cst_29 {dimension_numbers = #tpu.dot_dimension_numbers<[1], [0], [0], [1], [0, 0, 1, 1], [], []>} : vector<2x128xf32>, vector<128x512xf32>, vector<2x512xf32> -> vector<2x512xf32>
    %190 = arith.addf %189, %188 : vector<2x512xf32>
    %191 = vector.extract_strided_slice %190 {offsets = [0, 0], sizes = [2, 128], strides = [1, 1]} : vector<2x512xf32> to vector<2x128xf32>
    %192 = arith.negf %191 : vector<2x128xf32>
    %193 = math.exp %192 : vector<2x128xf32>
    %cst_30 = arith.constant 1.000000e+00 : f32
    %194 = vector.broadcast %cst_30 : f32 to vector<2x128xf32>
    %195 = arith.addf %194, %193 : vector<2x128xf32>
    %196 = arith.divf %194, %195 : vector<2x128xf32>
    %197 = vector.extract_strided_slice %190 {offsets = [0, 128], sizes = [2, 128], strides = [1, 1]} : vector<2x512xf32> to vector<2x128xf32>
    %198 = arith.negf %197 : vector<2x128xf32>
    %199 = math.exp %198 : vector<2x128xf32>
    %cst_31 = arith.constant 1.000000e+00 : f32
    %200 = vector.broadcast %cst_31 : f32 to vector<2x128xf32>
    %201 = arith.addf %200, %199 : vector<2x128xf32>
    %202 = arith.divf %200, %201 : vector<2x128xf32>
    %203 = vector.extract_strided_slice %190 {offsets = [0, 256], sizes = [2, 128], strides = [1, 1]} : vector<2x512xf32> to vector<2x128xf32>
    %204 = vector.extract_strided_slice %190 {offsets = [0, 384], sizes = [2, 128], strides = [1, 1]} : vector<2x512xf32> to vector<2x128xf32>
    %205 = arith.mulf %196, %204 : vector<2x128xf32>
    %206 = arith.addf %203, %205 : vector<2x128xf32>
    %207 = math.tanh %206 : vector<2x128xf32>
    %208 = arith.subf %187, %207 : vector<2x128xf32>
    %209 = arith.mulf %202, %208 : vector<2x128xf32>
    %210 = arith.addf %207, %209 : vector<2x128xf32>
    %211 = vector.extract_strided_slice %6 {offsets = [14, 0], sizes = [2, 512], strides = [1, 1]} : vector<16x512xf32> to vector<2x512xf32>
    %cst_32 = arith.constant dense<0.000000e+00> : vector<2x512xf32>
    %212 = tpu.matmul %210, %0, %cst_32 {dimension_numbers = #tpu.dot_dimension_numbers<[1], [0], [0], [1], [0, 0, 1, 1], [], []>} : vector<2x128xf32>, vector<128x512xf32>, vector<2x512xf32> -> vector<2x512xf32>
    %213 = arith.addf %212, %211 : vector<2x512xf32>
    %214 = vector.extract_strided_slice %213 {offsets = [0, 0], sizes = [2, 128], strides = [1, 1]} : vector<2x512xf32> to vector<2x128xf32>
    %215 = arith.negf %214 : vector<2x128xf32>
    %216 = math.exp %215 : vector<2x128xf32>
    %cst_33 = arith.constant 1.000000e+00 : f32
    %217 = vector.broadcast %cst_33 : f32 to vector<2x128xf32>
    %218 = arith.addf %217, %216 : vector<2x128xf32>
    %219 = arith.divf %217, %218 : vector<2x128xf32>
    %220 = vector.extract_strided_slice %213 {offsets = [0, 128], sizes = [2, 128], strides = [1, 1]} : vector<2x512xf32> to vector<2x128xf32>
    %221 = arith.negf %220 : vector<2x128xf32>
    %222 = math.exp %221 : vector<2x128xf32>
    %cst_34 = arith.constant 1.000000e+00 : f32
    %223 = vector.broadcast %cst_34 : f32 to vector<2x128xf32>
    %224 = arith.addf %223, %222 : vector<2x128xf32>
    %225 = arith.divf %223, %224 : vector<2x128xf32>
    %226 = vector.extract_strided_slice %213 {offsets = [0, 256], sizes = [2, 128], strides = [1, 1]} : vector<2x512xf32> to vector<2x128xf32>
    %227 = vector.extract_strided_slice %213 {offsets = [0, 384], sizes = [2, 128], strides = [1, 1]} : vector<2x512xf32> to vector<2x128xf32>
    %228 = arith.mulf %219, %227 : vector<2x128xf32>
    %229 = arith.addf %226, %228 : vector<2x128xf32>
    %230 = math.tanh %229 : vector<2x128xf32>
    %231 = arith.subf %210, %230 : vector<2x128xf32>
    %232 = arith.mulf %225, %231 : vector<2x128xf32>
    %233 = arith.addf %230, %232 : vector<2x128xf32>
    %c32_i32_35 = arith.constant 32 : i32
    %234 = vector.broadcast %c32_i32_35 : i32 to vector<2x128xi32>
    %235 = arith.cmpi sge, %7, %234 : vector<2x128xi32>
    %c128_i32 = arith.constant 128 : i32
    %236 = vector.broadcast %c128_i32 : i32 to vector<2x128xi32>
    %237 = arith.cmpi slt, %7, %236 : vector<2x128xi32>
    %238 = arith.andi %235, %237 : vector<2x128xi1>
    %239 = arith.select %238, %233, %210 : vector<2x128xi1>, vector<2x128xf32>
    %240 = vector.extract_strided_slice %6 {offsets = [14, 0], sizes = [2, 512], strides = [1, 1]} : vector<16x512xf32> to vector<2x512xf32>
    %cst_36 = arith.constant dense<0.000000e+00> : vector<2x512xf32>
    %241 = tpu.matmul %239, %0, %cst_36 {dimension_numbers = #tpu.dot_dimension_numbers<[1], [0], [0], [1], [0, 0, 1, 1], [], []>} : vector<2x128xf32>, vector<128x512xf32>, vector<2x512xf32> -> vector<2x512xf32>
    %242 = arith.addf %241, %240 : vector<2x512xf32>
    %243 = vector.extract_strided_slice %242 {offsets = [0, 0], sizes = [2, 128], strides = [1, 1]} : vector<2x512xf32> to vector<2x128xf32>
    %244 = arith.negf %243 : vector<2x128xf32>
    %245 = math.exp %244 : vector<2x128xf32>
    %cst_37 = arith.constant 1.000000e+00 : f32
    %246 = vector.broadcast %cst_37 : f32 to vector<2x128xf32>
    %247 = arith.addf %246, %245 : vector<2x128xf32>
    %248 = arith.divf %246, %247 : vector<2x128xf32>
    %249 = vector.extract_strided_slice %242 {offsets = [0, 128], sizes = [2, 128], strides = [1, 1]} : vector<2x512xf32> to vector<2x128xf32>
    %250 = arith.negf %249 : vector<2x128xf32>
    %251 = math.exp %250 : vector<2x128xf32>
    %cst_38 = arith.constant 1.000000e+00 : f32
    %252 = vector.broadcast %cst_38 : f32 to vector<2x128xf32>
    %253 = arith.addf %252, %251 : vector<2x128xf32>
    %254 = arith.divf %252, %253 : vector<2x128xf32>
    %255 = vector.extract_strided_slice %242 {offsets = [0, 256], sizes = [2, 128], strides = [1, 1]} : vector<2x512xf32> to vector<2x128xf32>
    %256 = vector.extract_strided_slice %242 {offsets = [0, 384], sizes = [2, 128], strides = [1, 1]} : vector<2x512xf32> to vector<2x128xf32>
    %257 = arith.mulf %248, %256 : vector<2x128xf32>
    %258 = arith.addf %255, %257 : vector<2x128xf32>
    %259 = math.tanh %258 : vector<2x128xf32>
    %260 = arith.subf %239, %259 : vector<2x128xf32>
    %261 = arith.mulf %254, %260 : vector<2x128xf32>
    %262 = arith.addf %259, %261 : vector<2x128xf32>
    %c64_i32_39 = arith.constant 64 : i32
    %263 = vector.broadcast %c64_i32_39 : i32 to vector<2x128xi32>
    %264 = arith.cmpi sge, %7, %263 : vector<2x128xi32>
    %c128_i32_40 = arith.constant 128 : i32
    %265 = vector.broadcast %c128_i32_40 : i32 to vector<2x128xi32>
    %266 = arith.cmpi slt, %7, %265 : vector<2x128xi32>
    %267 = arith.andi %264, %266 : vector<2x128xi1>
    %268 = arith.select %267, %262, %239 : vector<2x128xi1>, vector<2x128xf32>
    %269 = vector.extract_strided_slice %6 {offsets = [14, 0], sizes = [2, 512], strides = [1, 1]} : vector<16x512xf32> to vector<2x512xf32>
    %cst_41 = arith.constant dense<0.000000e+00> : vector<2x512xf32>
    %270 = tpu.matmul %268, %0, %cst_41 {dimension_numbers = #tpu.dot_dimension_numbers<[1], [0], [0], [1], [0, 0, 1, 1], [], []>} : vector<2x128xf32>, vector<128x512xf32>, vector<2x512xf32> -> vector<2x512xf32>
    %271 = arith.addf %270, %269 : vector<2x512xf32>
    %272 = vector.extract_strided_slice %271 {offsets = [0, 0], sizes = [2, 128], strides = [1, 1]} : vector<2x512xf32> to vector<2x128xf32>
    %273 = arith.negf %272 : vector<2x128xf32>
    %274 = math.exp %273 : vector<2x128xf32>
    %cst_42 = arith.constant 1.000000e+00 : f32
    %275 = vector.broadcast %cst_42 : f32 to vector<2x128xf32>
    %276 = arith.addf %275, %274 : vector<2x128xf32>
    %277 = arith.divf %275, %276 : vector<2x128xf32>
    %278 = vector.extract_strided_slice %271 {offsets = [0, 128], sizes = [2, 128], strides = [1, 1]} : vector<2x512xf32> to vector<2x128xf32>
    %279 = arith.negf %278 : vector<2x128xf32>
    %280 = math.exp %279 : vector<2x128xf32>
    %cst_43 = arith.constant 1.000000e+00 : f32
    %281 = vector.broadcast %cst_43 : f32 to vector<2x128xf32>
    %282 = arith.addf %281, %280 : vector<2x128xf32>
    %283 = arith.divf %281, %282 : vector<2x128xf32>
    %284 = vector.extract_strided_slice %271 {offsets = [0, 256], sizes = [2, 128], strides = [1, 1]} : vector<2x512xf32> to vector<2x128xf32>
    %285 = vector.extract_strided_slice %271 {offsets = [0, 384], sizes = [2, 128], strides = [1, 1]} : vector<2x512xf32> to vector<2x128xf32>
    %286 = arith.mulf %277, %285 : vector<2x128xf32>
    %287 = arith.addf %284, %286 : vector<2x128xf32>
    %288 = math.tanh %287 : vector<2x128xf32>
    %289 = arith.subf %268, %288 : vector<2x128xf32>
    %290 = arith.mulf %283, %289 : vector<2x128xf32>
    %291 = arith.addf %288, %290 : vector<2x128xf32>
    %c96_i32_44 = arith.constant 96 : i32
    %292 = vector.broadcast %c96_i32_44 : i32 to vector<2x128xi32>
    %293 = arith.cmpi sge, %7, %292 : vector<2x128xi32>
    %c128_i32_45 = arith.constant 128 : i32
    %294 = vector.broadcast %c128_i32_45 : i32 to vector<2x128xi32>
    %295 = arith.cmpi slt, %7, %294 : vector<2x128xi32>
    %296 = arith.andi %293, %295 : vector<2x128xi1>
    %297 = arith.select %296, %291, %268 : vector<2x128xi1>, vector<2x128xf32>
    %298 = vector.extract_strided_slice %297 {offsets = [0, 96], sizes = [2, 32], strides = [1, 1]} : vector<2x128xf32> to vector<2x32xf32>
    %c168 = arith.constant 168 : index
    %c0_46 = arith.constant 0 : index
    %299 = vector.load %arg1[%c168, %c0_46] : memref<208x512xf32, #tpu.memory_space<vmem>>, vector<32x2xf32>
    %c200 = arith.constant 200 : index
    %c0_47 = arith.constant 0 : index
    %300 = vector.load %arg1[%c200, %c0_47] : memref<208x512xf32, #tpu.memory_space<vmem>>, vector<1x2xf32>
    %cst_48 = arith.constant dense<0.000000e+00> : vector<2x2xf32>
    %301 = tpu.matmul %298, %299, %cst_48 {dimension_numbers = #tpu.dot_dimension_numbers<[1], [0], [0], [1], [0, 0, 1, 1], [], []>} : vector<2x32xf32>, vector<32x2xf32>, vector<2x2xf32> -> vector<2x2xf32>
    %302 = vector.broadcast %300 : vector<1x2xf32> to vector<2x2xf32>
    %303 = arith.addf %301, %302 : vector<2x2xf32>
    %c0_49 = arith.constant 0 : index
    %c0_50 = arith.constant 0 : index
    %304 = vector.load %arg2[%c0_49, %c0_50] : memref<2x2xf32, #tpu.memory_space<vmem>>, vector<2x2xf32>
    tpu.vector_store %arg2[%c0_49, %c0_50], %303 {strides = array<i32>} : memref<2x2xf32, #tpu.memory_space<vmem>>, vector<2x2xf32>,
    return
  }
}

</mosaic_0001>

<bundles_post_ra>
// kernel: student_forward.1
= control target key start
LH: loop header
LB: loop body
LE: loop exit
PB: predicated region body
PF: predicated region fallthrough
CT: control target
= control target key end

     0   :  { %7 = vsyncpa [#allocation3], 0  ;;  %s3123_s0 = inlined_call_operand.vmem [shape: f32[16,32], index: 0, kind: input, shape index: {}]   ;;  %s3124_s1 = inlined_call_operand.hbm [shape: f32[208,512], index: 1, kind: input, shape index: {}]   ;;  %s3125_s2 = inlined_call_operand.hbm [shape: f32[2,2], index: 2, kind: output, shape index: {}]  }
   0x1   :  { %8 = vsyncpa [#allocation4], 0  ;;  %s15_s11 = sshll.u32 %s3124_s1, 4  ;;  %s2041_s12 = smov [#allocation2]   ;;  %s16_s11 = int_to_ptr.hbm [resolvable:$true] %s15_s11 }
   0x2   :  { %s17_s13 = sshll.u32 %s2041_s12, 4  ;;  %s2042_s14 = smov 512   ;;  %s18_s13 = int_to_ptr.vmem [resolvable:$true] %s17_s13 }
   0x3   :  { %s2043_s15 = smov 32  }
   0x4   :  { %23 = dma.hbm_to_vmem [thread:$0]  %s16_s11, 13312, %s18_s13, [#allocation3], %s2042_s14, %s2042_s14, %s2043_s15  }
   0x5   :  { %2037 = dma.done.wait [#allocation3], 13312  }
   0x6   :  { %2038 = vsyncadd [#allocation3], 4294953984  ;;  %v104_v0 = vld [vmem:[#allocation2 + $0x260] sm:$0xff]  ;;  %v105_v1 = vld [vmem:[#allocation2 + $0x268] sm:$0xff]  ;;  %vm121_vm0 = vcmask 261120   ;;  %s1701_s22 = sshll.u32 %s3125_s2, 4  ;;  %s1702_s22 = int_to_ptr.hbm [resolvable:$true] %s1701_s22 }
   0x7   :  { %v100_v2 = vld [vmem:[#allocation2 + $0x240] sm:$0xff]  ;;  %140 = vmatpush.msra.mxu0 %v104_v0  ;;  %163 = vmatpush.msra.mxu1 %v105_v1  ;;  %v101_v3 = vld [vmem:[#allocation2 + $0x248] sm:$0xff]  ;;  %v107_v7 = vld [vmem:[#allocation2 + $0x278] sm:$0xff] }
   0x8   :  { %v96_v4 = vld [vmem:[#allocation2 + $0x220] sm:$0xff]  ;;  %v97_v5 = vld [vmem:[#allocation2 + $0x228] sm:$0xff]  ;;  %209 = vmatpush.msra.mxu3 %v107_v7  ;;  %v106_v9 = vld [vmem:[#allocation2 + $0x270] sm:$0xff] }
   0x9   :  { %141 = vmatpush.msra.mxu0 %v100_v2  ;;  %164 = vmatpush.msra.mxu1 %v101_v3  ;;  %v92_v6 = vld [vmem:[#allocation2 + $0x200] sm:$0xff]  ;;  %v93_v8 = vld [vmem:[#allocation2 + $0x208] sm:$0xff]  ;;  %v103_v10 = vld [vmem:[#allocation2 + $0x258] sm:$0xff] }
   0xa   :  { %v2065_v11 = vld [vmem:[#allocation2 + $0x1e0] sm:$0xff]  ;;  %v2067_v12 = vld [vmem:[#allocation2 + $0x1e8] sm:$0xff]  ;;  %186 = vmatpush.msra.mxu2 %v106_v9  ;;  %210 = vmatpush.msra.mxu3 %v103_v10  ;;  %v102_v13 = vld [vmem:[#allocation2 + $0x250] sm:$0xff] }
   0xb   :  { %142 = vmatpush.msra.mxu0 %v96_v4  ;;  %165 = vmatpush.msra.mxu1 %v97_v5  ;;  %v99_v14 = vld [vmem:[#allocation2 + $0x238] sm:$0xff]  ;;  %v2069_v15 = vld [vmem:[#allocation2 + $0x1c0] sm:$0xff]  ;;  %v2071_v16 = vld [vmem:[#allocation2 + $0x1c8] sm:$0xff] }
   0xc   :  { %v98_v17 = vld [vmem:[#allocation2 + $0x230] sm:$0xff]  ;;  %v95_v18 = vld [vmem:[#allocation2 + $0x218] sm:$0xff]  ;;  %v2075_v19 = vld [vmem:[#allocation2 + $0x1a0] sm:$0xff]  ;;  %187 = vmatpush.msra.mxu2 %v102_v13  ;;  %211 = vmatpush.msra.mxu3 %v99_v14  ;;  %v2044_v13 = vmov 0.0  }
   0xd   :  { %143 = vmatpush.msra.mxu0 %v92_v6  ;;  %166 = vmatpush.msra.mxu1 %v93_v8  ;;  %v2077_v20 = vld [vmem:[#allocation2 + $0x1a8] sm:$0xff]  ;;  %v2081_v21 = vld [vmem:[#allocation2 + $0x1f8] sm:$0xff]  ;;  %v94_v22 = vld [vmem:[#allocation2 + $0x210] sm:$0xff] }
   0xe   :  { %v2083_v23 = vld [vmem:[#allocation2 + $0x180] sm:$0xff]  ;;  %v2085_v24 = vld [vmem:[#allocation2 + $0x188] sm:$0xff]  ;;  %188 = vmatpush.msra.mxu2 %v98_v17  ;;  %212 = vmatpush.msra.mxu3 %v95_v18  ;;  %v2089_v25 = vld [vmem:[#allocation2 + $0x1f0] sm:$0xff] }
   0xf   :  { %222 = vmatpush.msrb.mxu0 %v2065_v11  ;;  %242 = vmatpush.msrb.mxu1 %v2067_v12  ;;  %v2091_v26 = vld [vmem:[#allocation2 + $0x1d8] sm:$0xff]  ;;  %v2093_v27 = vld [vmem:[#allocation2 + $0x160] sm:$0xff]  ;;  %v2095_v28 = vld [vmem:[#allocation2 + $0x168] sm:$0xff] }
  0x10   :  { %282 = vmatpush.msrb.mxu3 %v2081_v21  ;;  %189 = vmatpush.msra.mxu2 %v94_v22  ;;  %v2100_v29 = vld [vmem:[#allocation2 + $0x1d0] sm:$0xff]  ;;  %v2102_v30 = vld [vmem:[#allocation2 + $0x1b8] sm:$0xff]  ;;  %v2104_v31 = vld [vmem:[#allocation2 + $0x140] sm:$0xff] }
  0x11   :  { %223 = vmatpush.msrb.mxu0 %v2069_v15  ;;  %243 = vmatpush.msrb.mxu1 %v2071_v16  ;;  %v2106_v32 = vld [vmem:[#allocation2 + $0x148] sm:$0xff]  ;;  %v2112_v33 = vld [vmem:[#allocation2 + $0x1b0] sm:$0xff]  ;;  %v2114_v34 = vld [vmem:[#allocation2 + $0x198] sm:$0xff] }
  0x12   :  { %262 = vmatpush.msrb.mxu2 %v2089_v25  ;;  %283 = vmatpush.msrb.mxu3 %v2091_v26  ;;  %v2116_v35 = vld [vmem:[#allocation2 + $0x120] sm:$0xff]  ;;  %v2118_v36 = vld [vmem:[#allocation2 + $0x128] sm:$0xff]  ;;  %v2135_v40 = vld [vmem:[#allocation2 + $0x190] sm:$0xff] }
  0x13   :  { %224 = vmatpush.msrb.mxu0 %v2075_v19  ;;  %244 = vmatpush.msrb.mxu1 %v2077_v20  ;;  %v110_v37 = vld [vmem:[%s3123_s0] sm:$0xff]  ;;  %v2129_v39 = vld [vmem:[#allocation2 + $0x108] sm:$0xff]  ;;  %v2137_v41 = vld [vmem:[#allocation2 + $0x178] sm:$0xff] }
  0x14   :  { %263 = vmatpush.msrb.mxu2 %v2100_v29  ;;  %284 = vmatpush.msrb.mxu3 %v2102_v30  ;;  %v2127_v38 = vld [vmem:[#allocation2 + $0x100] sm:$0xff]  ;;  %v2143_v43 = vld [vmem:[#allocation2 + $0xe8] sm:$0xff]  ;;  %v2147_v44 = vld [vmem:[#allocation2 + $0x170] sm:$0xff] }
  0x15   :  { %225 = vmatpush.msrb.mxu0 %v2083_v23  ;;  %245 = vmatpush.msrb.mxu1 %v2085_v24  ;;  %v2141_v42 = vld [vmem:[#allocation2 + $0xe0] sm:$0xff]  ;;  %v2149_v45 = vld [vmem:[#allocation2 + $0x158] sm:$0xff]  ;;  %v2155_v47 = vld [vmem:[#allocation2 + $0xc8] sm:$0xff] }
  0x16   :  { %264 = vmatpush.msrb.mxu2 %v2112_v33  ;;  %285 = vmatpush.msrb.mxu3 %v2114_v34  ;;  %v2153_v46 = vld [vmem:[#allocation2 + $0xc0] sm:$0xff]  ;;  %3245 = vst [vmem:[#allocation8_spill] sm:$0xff] %v2155_v47  ;;  %v2159_v48 = vld [vmem:[#allocation2 + $0x150] sm:$0xff]  ;;  %v2161_v49 = vld [vmem:[#allocation2 + $0x138] sm:$0xff] }
  0x17   :  { %226 = vmatpush.msrb.mxu0 %v2093_v27  ;;  %246 = vmatpush.msrb.mxu1 %v2095_v28  ;;  %v2165_v50 = vld [vmem:[#allocation2 + $0xa0] sm:$0xff]  ;;  %v2167_v51 = vld [vmem:[#allocation2 + $0xa8] sm:$0xff]  ;;  %v2171_v52 = vld [vmem:[#allocation2 + $0x130] sm:$0xff] }
  0x18   :  { %1711 = vmatmul.msk.f32.vlgmr.msra.gmra.mxu0 %vm121_vm0, %v110_v37  ;;  %1713 = vmatmul.msk.f32.vlgmr.msra.gmra.mxu1 %vm121_vm0, %v110_v37  ;;  %3246 = vst [vmem:[#allocation9_spill] sm:$0xff] %v2165_v50  ;;  %v2173_v53 = vld [vmem:[#allocation2 + $0x118] sm:$0xff]  ;;  %v2177_v54 = vld [vmem:[#allocation2 + $0x80] sm:$0xff]  ;;  %v2179_v55 = vld [vmem:[#allocation2 + $0x88] sm:$0xff] }
  0x19   :  { %227 = vmatpush.msrb.mxu0 %v2104_v31  ;;  %247 = vmatpush.msrb.mxu1 %v2106_v32  ;;  %3247 = vst [vmem:[#allocation10_spill] sm:$0xff] %v2167_v51  ;;  %v111_v56 = vld [vmem:[%s3123_s0 + $0x8] sm:$0xff]  ;;  %v2188_v57 = vld [vmem:[#allocation2 + $0x60] sm:$0xff]  ;;  %v2194_v59 = vld [vmem:[#allocation2 + $0x110] sm:$0xff]  ;;  %s2045_s0 = smov [#allocation5]  }
  0x1a   :  { %265 = vmatpush.msrb.mxu2 %v2135_v40  ;;  %286 = vmatpush.msrb.mxu3 %v2137_v41  ;;  %3248 = vst [vmem:[#allocation11_spill] sm:$0xff] %v2177_v54  ;;  %v2192_v58 = vld [vmem:[#allocation2 + $0x68] sm:$0xff]  ;;  %v2198_v60 = vld [vmem:[#allocation2 + $0xf8] sm:$0xff]  ;;  %v2202_v61 = vld [vmem:[#allocation2 + $0x40] sm:$0xff]  ;;  %s1699_s19 = sshll.u32 %s2045_s0, 4  ;;  %s1700_s19 = int_to_ptr.vmem [resolvable:$true] %s1699_s19 }
  0x1b   :  { %228 = vmatpush.msrb.mxu0 %v2116_v35  ;;  %248 = vmatpush.msrb.mxu1 %v2118_v36  ;;  %3249 = vst [vmem:[#allocation12_spill] sm:$0xff] %v2179_v55  ;;  %v2204_v62 = vld [vmem:[#allocation2 + $0x48] sm:$0xff]  ;;  %v2208_v63 = vld [vmem:[#allocation2 + $0xf0] sm:$0xff]  ;;  %v2210_v0 = vld [vmem:[#allocation2 + $0xd8] sm:$0xff] }
  0x1c   :  { %266 = vmatpush.msrb.mxu2 %v2147_v44  ;;  %287 = vmatpush.msrb.mxu3 %v2149_v45  ;;  %3250 = vst [vmem:[#allocation13_spill] sm:$0xff] %v2188_v57  ;;  %v2214_v1 = vld [vmem:[#allocation2 + $0x20] sm:$0xff]  ;;  %v2216_v2 = vld [vmem:[#allocation2 + $0x28] sm:$0xff]  ;;  %v2220_v3 = vld [vmem:[#allocation2 + $0xd0] sm:$0xff] }
  0x1d   :  { %229 = vmatpush.msrb.mxu0 %v2127_v38  ;;  %249 = vmatpush.msrb.mxu1 %v2129_v39  ;;  %3251 = vst [vmem:[#allocation14_spill] sm:$0xff] %v2192_v58  ;;  %v2222_v4 = vld [vmem:[#allocation2 + $0xb8] sm:$0xff]  ;;  %v2226_v5 = vld [vmem:[#allocation2] sm:$0xff]  ;;  %v2228_v6 = vld [vmem:[#allocation2 + $0x8] sm:$0xff] }
  0x1e   :  { %267 = vmatpush.msrb.mxu2 %v2159_v48  ;;  %288 = vmatpush.msrb.mxu3 %v2161_v49  ;;  %3252 = vst [vmem:[#allocation15_spill] sm:$0xff] %v2202_v61  ;;  %v2232_v7 = vld [vmem:[#allocation2 + $0xb0] sm:$0xff]  ;;  %v2234_v8 = vld [vmem:[#allocation2 + $0x98] sm:$0xff] }
  0x1f   :  { %230 = vmatpush.msrb.mxu0 %v2141_v42  ;;  %250 = vmatpush.msrb.mxu1 %v2143_v43  ;;  %3253 = vst [vmem:[#allocation16_spill] sm:$0xff] %v2204_v62  ;;  %v2240_v9 = vld [vmem:[#allocation2 + $0x90] sm:$0xff]  ;;  %v2244_v10 = vld [vmem:[#allocation2 + $0x78] sm:$0xff] }
  0x20   :  { %268 = vmatpush.msrb.mxu2 %v2171_v52  ;;  %289 = vmatpush.msrb.mxu3 %v2173_v53  ;;  %3254 = vst [vmem:[#allocation17_spill] sm:$0xff] %v2210_v0  ;;  %v2247_v14 = vld [vmem:[#allocation2 + $0x70] sm:$0xff]  ;;  %v2250_v17 = vld [vmem:[#allocation2 + $0x58] sm:$0xff] }
  0x21   :  { %231 = vmatpush.msrb.mxu0 %v2153_v46  ;;  %251 = vmatpush.msrb.mxu1 %v2155_v47  ;;  %3255 = vst [vmem:[#allocation18_spill] sm:$0xff] %v2214_v1  ;;  %v2254_v18 = vld [vmem:[#allocation2 + $0x50] sm:$0xff]  ;;  %v2257_v22 = vld [vmem:[#allocation2 + $0x38] sm:$0xff] }
  0x22   :  { %1712 = vmatmul.msk.f32.gmra.mxu0 %vm121_vm0, %v111_v56  ;;  %1714 = vmatmul.msk.f32.gmra.mxu1 %vm121_vm0, %v111_v56  ;;  %3256 = vst [vmem:[#allocation19_spill] sm:$0xff] %v2216_v2 }
  0x23   :  { %232 = vmatpush.msrb.mxu0 %v2165_v50  ;;  %252 = vmatpush.msrb.mxu1 %v2167_v51  ;;  %3257 = vst [vmem:[#allocation20_spill] sm:$0xff] %v2220_v3 }
  0x24   :  { %1717 = vmatmul.msk.f32.vlgmr.msra.gmra.mxu3 %vm121_vm0, %v110_v37  ;;  %269 = vmatpush.msrb.mxu2 %v2194_v59  ;;  %3258 = vst [vmem:[#allocation21_spill] sm:$0xff] %v2222_v4 }
  0x25   :  { %233 = vmatpush.msrb.mxu0 %v2177_v54  ;;  %253 = vmatpush.msrb.mxu1 %v2179_v55  ;;  %3259 = vst [vmem:[#allocation22_spill] sm:$0xff] %v2226_v5 }
  0x26   :  { %290 = vmatpush.msrb.mxu3 %v2198_v60  ;;  %1715 = vmatmul.msk.f32.vlgmr.msra.gmra.mxu2 %vm121_vm0, %v110_v37  ;;  %3260 = vst [vmem:[#allocation23_spill] sm:$0xff] %v2228_v6  ;;  %v2261_v37 = vld [vmem:[#allocation2 + $0x30] sm:$0xff] }
  0x27   :  { %234 = vmatpush.msrb.mxu0 %v2188_v57  ;;  %254 = vmatpush.msrb.mxu1 %v2192_v58  ;;  %3261 = vst [vmem:[#allocation24_spill] sm:$0xff] %v2232_v7 }
  0x28   :  { %270 = vmatpush.msrb.mxu2 %v2208_v63  ;;  %291 = vmatpush.msrb.mxu3 %v2210_v0  ;;  %3262 = vst [vmem:[#allocation25_spill] sm:$0xff] %v2234_v8 }
  0x29   :  { %235 = vmatpush.msrb.mxu0 %v2202_v61  ;;  %255 = vmatpush.msrb.mxu1 %v2204_v62  ;;  %3263 = vst [vmem:[#allocation26_spill] sm:$0xff] %v2240_v9 }
  0x2a   :  { %271 = vmatpush.msrb.mxu2 %v2220_v3  ;;  %292 = vmatpush.msrb.mxu3 %v2222_v4  ;;  %3264 = vst [vmem:[#allocation27_spill] sm:$0xff] %v2244_v10 }
  0x2b   :  { %236 = vmatpush.msrb.mxu0 %v2214_v1  ;;  %256 = vmatpush.msrb.mxu1 %v2216_v2  ;;  %3265 = vst [vmem:[#allocation28_spill] sm:$0xff] %v2247_v14 }
  0x2c   :  { %272 = vmatpush.msrb.mxu2 %v2232_v7  ;;  %293 = vmatpush.msrb.mxu3 %v2234_v8  ;;  %3266 = vst [vmem:[#allocation29_spill] sm:$0xff] %v2250_v17 }
  0x2d   :  { %237 = vmatpush.msrb.mxu0 %v2226_v5  ;;  %257 = vmatpush.msrb.mxu1 %v2228_v6  ;;  %3267 = vst [vmem:[#allocation30_spill] sm:$0xff] %v2254_v18  ;;  %v2265_v6 = vld [vmem:[#allocation2 + $0x18] sm:$0xff] }
  0x2e   :  { %1718 = vmatmul.msk.f32.gmra.mxu3 %vm121_vm0, %v111_v56  ;;  %238 = vmatmul.f32.vlgmr.msrb.gmra.mxu0 %v2044_v13  ;;  %3268 = vst [vmem:[#allocation31_spill] sm:$0xff] %v2257_v22 }
  0x2f   :  { %258 = vmatmul.f32.vlgmr.msrb.gmra.mxu1 %v2044_v13  ;;  %273 = vmatpush.msrb.mxu2 %v2240_v9  ;;  %3269 = vst [vmem:[#allocation32_spill] sm:$0xff] %v2261_v37 }
  0x30   :  { %294 = vmatpush.msrb.mxu3 %v2244_v10  ;;  %1716 = vmatmul.msk.f32.gmra.mxu2 %vm121_vm0, %v111_v56  ;;  %3270 = vst [vmem:[#allocation33_spill] sm:$0xff] %v2265_v6  ;;  %v2269_v56 = vld [vmem:[#allocation2 + $0x10] sm:$0xff] }
  0x31   :  { %274 = vmatpush.msrb.mxu2 %v2247_v14  ;;  %362 = vmatpush.msra.mxu0 %v2065_v11  ;;  %3271 = vst [vmem:[#allocation34_spill] sm:$0xff] %v2269_v56 }
  0x32   :  { %295 = vmatpush.msrb.mxu3 %v2250_v17  ;;  %382 = vmatpush.msra.mxu1 %v2067_v12 }
  0x33   :  { %275 = vmatpush.msrb.mxu2 %v2254_v18  ;;  %363 = vmatpush.msra.mxu0 %v2069_v15 }
  0x34   :  { %296 = vmatpush.msrb.mxu3 %v2257_v22  ;;  %383 = vmatpush.msra.mxu1 %v2071_v16 }
  0x35   :  { %276 = vmatpush.msrb.mxu2 %v2261_v37  ;;  %364 = vmatpush.msra.mxu0 %v2075_v19 }
  0x36   :  { %297 = vmatpush.msrb.mxu3 %v2265_v6  ;;  %384 = vmatpush.msra.mxu1 %v2077_v20 }
  0x37   :  { %298 = vmatmul.f32.vlgmr.msrb.gmra.mxu3 %v2044_v13  ;;  %277 = vmatpush.msrb.mxu2 %v2269_v56 }
  0x38   :  { %278 = vmatmul.f32.vlgmr.msrb.gmra.mxu2 %v2044_v13  ;;  %422 = vmatpush.msra.mxu3 %v2081_v21  ;;  %v3272_v13 = vld [vmem:[#allocation23_spill] sm:$0xff] }
  0x39   :  { %402 = vmatpush.msra.mxu2 %v2089_v25  ;;  %365 = vmatpush.msra.mxu0 %v2083_v23 }
  0x3a   :  { %423 = vmatpush.msra.mxu3 %v2091_v26  ;;  %385 = vmatpush.msra.mxu1 %v2085_v24 }
  0x3b   :  { %403 = vmatpush.msra.mxu2 %v2100_v29  ;;  %366 = vmatpush.msra.mxu0 %v2093_v27 }
  0x3c   :  { %424 = vmatpush.msra.mxu3 %v2102_v30  ;;  %386 = vmatpush.msra.mxu1 %v2095_v28 }
  0x3d   :  { %404 = vmatpush.msra.mxu2 %v2112_v33  ;;  %367 = vmatpush.msra.mxu0 %v2104_v31 }
  0x3e   :  { %425 = vmatpush.msra.mxu3 %v2114_v34  ;;  %387 = vmatpush.msra.mxu1 %v2106_v32 }
  0x3f   :  { %405 = vmatpush.msra.mxu2 %v2135_v40  ;;  %368 = vmatpush.msra.mxu0 %v2116_v35 }
  0x40   :  { %426 = vmatpush.msra.mxu3 %v2137_v41  ;;  %388 = vmatpush.msra.mxu1 %v2118_v36 }
  0x41   :  { %406 = vmatpush.msra.mxu2 %v2147_v44  ;;  %369 = vmatpush.msra.mxu0 %v2127_v38 }
  0x42   :  { %427 = vmatpush.msra.mxu3 %v2149_v45  ;;  %389 = vmatpush.msra.mxu1 %v2129_v39 }
  0x43   :  { %407 = vmatpush.msra.mxu2 %v2159_v48  ;;  %370 = vmatpush.msra.mxu0 %v2141_v42 }
  0x44   :  { %428 = vmatpush.msra.mxu3 %v2161_v49  ;;  %390 = vmatpush.msra.mxu1 %v2143_v43 }
  0x45   :  { %408 = vmatpush.msra.mxu2 %v2171_v52  ;;  %371 = vmatpush.msra.mxu0 %v2153_v46 }
  0x46   :  { %429 = vmatpush.msra.mxu3 %v2173_v53  ;;  %391 = vmatpush.msra.mxu1 %v2155_v47 }
  0x47   :  { %409 = vmatpush.msra.mxu2 %v2194_v59  ;;  %372 = vmatpush.msra.mxu0 %v2165_v50 }
  0x48   :  { %430 = vmatpush.msra.mxu3 %v2198_v60  ;;  %392 = vmatpush.msra.mxu1 %v2167_v51 }
  0x49   :  { %410 = vmatpush.msra.mxu2 %v2208_v63  ;;  %373 = vmatpush.msra.mxu0 %v2177_v54 }
  0x4a   :  { %431 = vmatpush.msra.mxu3 %v2210_v0  ;;  %393 = vmatpush.msra.mxu1 %v2179_v55 }
  0x4b   :  { %411 = vmatpush.msra.mxu2 %v2220_v3  ;;  %374 = vmatpush.msra.mxu0 %v2188_v57 }
  0x4c   :  { %432 = vmatpush.msra.mxu3 %v2222_v4  ;;  %394 = vmatpush.msra.mxu1 %v2192_v58 }
  0x4d   :  { %412 = vmatpush.msra.mxu2 %v2232_v7  ;;  %375 = vmatpush.msra.mxu0 %v2202_v61 }
  0x4e   :  { %433 = vmatpush.msra.mxu3 %v2234_v8  ;;  %395 = vmatpush.msra.mxu1 %v2204_v62 }
  0x4f   :  { %413 = vmatpush.msra.mxu2 %v2240_v9  ;;  %376 = vmatpush.msra.mxu0 %v2214_v1 }
  0x50   :  { %434 = vmatpush.msra.mxu3 %v2244_v10  ;;  %396 = vmatpush.msra.mxu1 %v2216_v2 }
  0x51   :  { %414 = vmatpush.msra.mxu2 %v2247_v14  ;;  %377 = vmatpush.msra.mxu0 %v2226_v5 }
  0x52   :  { %435 = vmatpush.msra.mxu3 %v2250_v17  ;;  %397 = vmatpush.msra.mxu1 %v3272_v13 }
  0x53   :  { %415 = vmatpush.msra.mxu2 %v2254_v18  ;;  %497 = vmatpush.msrb.mxu0 %v2065_v11 }
  0x54   :  { %436 = vmatpush.msra.mxu3 %v2257_v22  ;;  %517 = vmatpush.msrb.mxu1 %v2067_v12 }
  0x55   :  { %416 = vmatpush.msra.mxu2 %v2261_v37  ;;  %498 = vmatpush.msrb.mxu0 %v2069_v15 }
  0x56   :  { %437 = vmatpush.msra.mxu3 %v2265_v6  ;;  %518 = vmatpush.msrb.mxu1 %v2071_v16 }
  0x57   :  { %417 = vmatpush.msra.mxu2 %v2269_v56  ;;  %499 = vmatpush.msrb.mxu0 %v2075_v19 }
  0x58   :  { %557 = vmatpush.msrb.mxu3 %v2081_v21  ;;  %519 = vmatpush.msrb.mxu1 %v2077_v20 }
  0x59   :  { %537 = vmatpush.msrb.mxu2 %v2089_v25  ;;  %500 = vmatpush.msrb.mxu0 %v2083_v23 }
  0x5a   :  { %558 = vmatpush.msrb.mxu3 %v2091_v26  ;;  %520 = vmatpush.msrb.mxu1 %v2085_v24 }
  0x5b   :  { %538 = vmatpush.msrb.mxu2 %v2100_v29  ;;  %501 = vmatpush.msrb.mxu0 %v2093_v27 }
  0x5c   :  { %559 = vmatpush.msrb.mxu3 %v2102_v30  ;;  %521 = vmatpush.msrb.mxu1 %v2095_v28 }
  0x5d   :  { %539 = vmatpush.msrb.mxu2 %v2112_v33  ;;  %502 = vmatpush.msrb.mxu0 %v2104_v31 }
  0x5e   :  { %560 = vmatpush.msrb.mxu3 %v2114_v34  ;;  %522 = vmatpush.msrb.mxu1 %v2106_v32 }
  0x5f   :  { %540 = vmatpush.msrb.mxu2 %v2135_v40  ;;  %503 = vmatpush.msrb.mxu0 %v2116_v35 }
  0x60   :  { %561 = vmatpush.msrb.mxu3 %v2137_v41  ;;  %523 = vmatpush.msrb.mxu1 %v2118_v36 }
  0x61   :  { %541 = vmatpush.msrb.mxu2 %v2147_v44  ;;  %504 = vmatpush.msrb.mxu0 %v2127_v38 }
  0x62   :  { %562 = vmatpush.msrb.mxu3 %v2149_v45  ;;  %524 = vmatpush.msrb.mxu1 %v2129_v39 }
  0x63   :  { %542 = vmatpush.msrb.mxu2 %v2159_v48  ;;  %505 = vmatpush.msrb.mxu0 %v2141_v42 }
  0x64   :  { %563 = vmatpush.msrb.mxu3 %v2161_v49  ;;  %525 = vmatpush.msrb.mxu1 %v2143_v43 }
  0x65   :  { %543 = vmatpush.msrb.mxu2 %v2171_v52  ;;  %506 = vmatpush.msrb.mxu0 %v2153_v46 }
  0x66   :  { %564 = vmatpush.msrb.mxu3 %v2173_v53  ;;  %526 = vmatpush.msrb.mxu1 %v2155_v47 }
  0x67   :  { %544 = vmatpush.msrb.mxu2 %v2194_v59  ;;  %507 = vmatpush.msrb.mxu0 %v2165_v50 }
  0x68   :  { %565 = vmatpush.msrb.mxu3 %v2198_v60  ;;  %527 = vmatpush.msrb.mxu1 %v2167_v51 }
  0x69   :  { %545 = vmatpush.msrb.mxu2 %v2208_v63  ;;  %508 = vmatpush.msrb.mxu0 %v2177_v54 }
  0x6a   :  { %566 = vmatpush.msrb.mxu3 %v2210_v0  ;;  %528 = vmatpush.msrb.mxu1 %v2179_v55 }
  0x6b   :  { %546 = vmatpush.msrb.mxu2 %v2220_v3  ;;  %509 = vmatpush.msrb.mxu0 %v2188_v57 }
  0x6c   :  { %567 = vmatpush.msrb.mxu3 %v2222_v4  ;;  %529 = vmatpush.msrb.mxu1 %v2192_v58 }
  0x6d   :  { %547 = vmatpush.msrb.mxu2 %v2232_v7  ;;  %510 = vmatpush.msrb.mxu0 %v2202_v61  ;;  %v109_v61 = vld [vmem:[#allocation2 + $0x280] ss:$8 sm:$0xf] }
  0x6e   :  { %568 = vmatpush.msrb.mxu3 %v2234_v8  ;;  %530 = vmatpush.msrb.mxu1 %v2204_v62  ;;  %v116_v54 = vperm.slane %v109_v61, 3 }
  0x6f   :  { %548 = vmatpush.msrb.mxu2 %v2240_v9  ;;  %511 = vmatpush.msrb.mxu0 %v2214_v1 }
  0x70   :  { %569 = vmatpush.msrb.mxu3 %v2244_v10  ;;  %531 = vmatpush.msrb.mxu1 %v2216_v2  ;;  %v114_v10 = vperm.slane %v109_v61, 1 }
  0x71   :  { %549 = vmatpush.msrb.mxu2 %v2247_v14  ;;  %512 = vmatpush.msrb.mxu0 %v2226_v5 }
  0x72   :  { %570 = vmatpush.msrb.mxu3 %v2250_v17  ;;  %532 = vmatpush.msrb.mxu1 %v3272_v13  ;;  %v113_v17 = vperm.slane %v109_v61, 0 }
  0x73   :  { %550 = vmatpush.msrb.mxu2 %v2254_v18 }
  0x74   :  { %571 = vmatpush.msrb.mxu3 %v2257_v22 }
  0x75   :  { %551 = vmatpush.msrb.mxu2 %v2261_v37 }
  0x76   :  { %572 = vmatpush.msrb.mxu3 %v2265_v6 }
  0x77   :  { %552 = vmatpush.msrb.mxu2 %v2269_v56 }
  0x95   :  { %v145_v62 = vpop.f32.mrf.mxu0  ;;  %v168_v1 = vpop.f32.mrf.mxu1 }
  0x96   :  { %v2403_v58 = vadd.f32 %v168_v1, %v114_v10  ;;  %v2405_v13 = vadd.f32 %v145_v62, %v113_v17 }
  0x98   :  { %3275 = vst [vmem:[#allocation37_spill] sm:$0xff] %v2403_v58 }
  0x99   :  { %3276 = vst [vmem:[#allocation38_spill] sm:$0xff] %v2405_v13 }
  0x9f   :  { %v148_v2 = vpop.f32.mrf.mxu0  ;;  %v171_v14 = vpop.f32.mrf.mxu1 }
  0xa0   :  { %v2399_v18 = vadd.f32 %v148_v2, %v113_v17  ;;  %v2401_v5 = vadd.f32 %v171_v14, %v114_v10  ;;  %v115_v14 = vperm.slane %v109_v61, 2 }
  0xa2   :  { %3273 = vst [vmem:[#allocation35_spill] sm:$0xff] %v2399_v18 }
  0xa3   :  { %3274 = vst [vmem:[#allocation36_spill] sm:$0xff] %v2401_v5 }
  0xa7   :  { %v214_v22 = vpop.f32.mrf.mxu3 }
  0xa9   :  { %v191_v37 = vpop.f32.mrf.mxu2 }
  0xab   :  { %v239_v6 = vpop.f32.mrf.mxu0 }
  0xac   :  { %v240_v56 = vadd.f32 %v239_v6, %v2405_v13  ;;  %v259_v57 = vpop.f32.mrf.mxu1 }
  0xad   :  { %v260_v8 = vadd.f32 %v259_v57, %v2403_v58 }
  0xae   :  { %v1719_v9 = vmul.f32 -1.442695, %v240_v56 }
  0xaf   :  { %v1720_v55 = vmul.f32 -1.442695, %v260_v8 }
  0xb0   :  { %1751 = vpow2.f32 %v1719_v9 }
  0xb1   :  { %1753 = vpow2.f32 %v1720_v55  ;;  %v217_v2 = vpop.f32.mrf.mxu3  ;;  %v2413_v55 = vadd.f32 %v214_v22, %v116_v54 }
  0xb2   :  { %v2409_v5 = vadd.f32 %v217_v2, %v116_v54 }
  0xb3   :  { %v194_v1 = vpop.f32.mrf.mxu2  ;;  %3279 = vst [vmem:[#allocation41_spill] sm:$0xff] %v2413_v55 }
  0xb4   :  { %3277 = vst [vmem:[#allocation39_spill] sm:$0xff] %v2409_v5  ;;  %v2411_v10 = vadd.f32 %v194_v1, %v115_v14  ;;  %v2415_v1 = vadd.f32 %v191_v37, %v115_v14 }
  0xb6   :  { %3278 = vst [vmem:[#allocation40_spill] sm:$0xff] %v2411_v10  ;;  %v1752_v62 = vpop.eup %1751 }
  0xb7   :  { %v1754_v17 = vpop.eup %1753  ;;  %v305_v18 = vadd.f32 1.0, %v1752_v62 }
  0xb8   :  { %v324_v4 = vadd.f32 1.0, %v1754_v17 }
  0xb9   :  { %1755 = vrcp.f32 %v305_v18  ;;  %v317_v9 = vand.u32 2147483648, %v305_v18  ;;  %v315_v2 = vand.u32 2147483647, %v305_v18  ;;  %vm311_vm2 = vweird.f32 %v305_v18 }
  0xba   :  { %1757 = vrcp.f32 %v324_v4  ;;  %v299_v5 = vpop.f32.mrf.mxu3  ;;  %v336_v14 = vand.u32 2147483648, %v324_v4  ;;  %vm330_vm6 = vweird.f32 %v324_v4 }
  0xbb   :  { %v318_v17 = vor.u32 1.1754944e-38, %v317_v9  ;;  %v279_v13 = vpop.f32.mrf.mxu2  ;;  %v300_v7 = vadd.f32 %v299_v5, %v2413_v55  ;;  %vm316_vm4 = vcmp.eq.f32.partialorder %v315_v2, 8.507059e+37  ;;  %v3285_v2 = vld [vmem:[#allocation21_spill] sm:$0xff] }
  0xbc   :  { %v280_v54 = vadd.f32 %v279_v13, %v2415_v1  ;;  %v337_v0 = vor.u32 1.1754944e-38, %v336_v14  ;;  %v3293_v14 = vld [vmem:[#allocation27_spill] sm:$0xff] }
  0xbf   :  { %v1756_v6 = vpop.eup %1755 }
  0xc0   :  { %v1758_v57 = vpop.eup %1757  ;;  %v307_v56 = vmul.f32 %v1756_v6, %v305_v18  ;;  %vm312_vm1 = vweird.f32 %v1756_v6 }
  0xc1   :  { %v326_v58 = vmul.f32 %v1758_v57, %v324_v4  ;;  %vm313_vm3 = vmor %vm311_vm2, %vm312_vm1  ;;  %vm331_vm5 = vweird.f32 %v1758_v57 }
  0xc2   :  { %v308_v8 = vsub.f32 1.0, %v307_v56  ;;  %vm332_vm7 = vmor %vm330_vm6, %vm331_vm5 }
  0xc3   :  { %v327_v62 = vsub.f32 1.0, %v326_v58  ;;  %v334_v58 = vand.u32 2147483647, %v324_v4  ;;  %v3282_v4 = vld [vmem:[#allocation9_spill] sm:$0xff] }
  0xc4   :  { %v309_v61 = vmul.f32 %v1756_v6, %v308_v8 }
  0xc5   :  { %v328_v22 = vmul.f32 %v1758_v57, %v327_v62  ;;  %vm335_vm8 = vcmp.eq.f32.partialorder %v334_v58, 8.507059e+37  ;;  %v3286_v62 = vld [vmem:[#allocation11_spill] sm:$0xff]  ;;  %v3295_v58 = vld [vmem:[#allocation16_spill] sm:$0xff] }
  0xc6   :  { %v310_v10 = vadd.f32 %v1756_v6, %v309_v61  ;;  %v220_v61 = vlaneseq }
  0xc7   :  { %v329_v37 = vadd.f32 %v1758_v57, %v328_v22  ;;  %v3290_v22 = vld [vmem:[#allocation13_spill] sm:$0xff] }
  0xc8   :  { %v314_v51 = vsel %vm313_vm3, %v1756_v6, %v310_v10  ;;  %v2419_v5 = vand.u32 127, %v220_v61  ;;  %v3283_v6 = vld [vmem:[#allocation10_spill] sm:$0xff]  ;;  %v3294_v61 = vld [vmem:[#allocation15_spill] sm:$0xff] }
  0xc9   :  { %v319_v56 = vsel %vm316_vm4, %v318_v17, %v314_v51  ;;  %v333_v18 = vsel %vm332_vm7, %v1758_v57, %v329_v37  ;;  %v3284_v57 = vld [vmem:[#allocation24_spill] sm:$0xff] }
  0xca   :  { %v340_v50 = vmul.f32 %v319_v56, %v300_v7  ;;  %3280 = vst [vmem:[#allocation42_spill] sm:$0xff] %v2419_v5  ;;  %v338_v7 = vsel %vm335_vm8, %v337_v0, %v333_v18  ;;  %vm347_vm9 = vcmp.lt.s32.totalorder %v2419_v5, 32  ;;  %v3281_v0 = vld [vmem:[#allocation17_spill] sm:$0xff]  ;;  %v3287_v17 = vld [vmem:[#allocation12_spill] sm:$0xff]  ;;  %v3288_v56 = vld [vmem:[#allocation26_spill] sm:$0xff]  ;;  %vm486_vm3 = vcmp.lt.s32.totalorder %v2419_v5, 64 }
  0xcb   :  { %v3292_v37 = vld [vmem:[#allocation28_spill] sm:$0xff]  ;;  %v3296_v18 = vld [vmem:[#allocation30_spill] sm:$0xff] }
  0xcc   :  { %v341_v8 = vadd.f32 %v340_v50, %v280_v54  ;;  %v3289_v54 = vld [vmem:[#allocation25_spill] sm:$0xff] }
  0xce   :  { %1759 = vtanh.f32 %v341_v8  ;;  %v3291_v8 = vld [vmem:[#allocation14_spill] sm:$0xff] }
  0xd4   :  { %v1760_v9 = vpop.eup %1759 }
  0xd5   :  { %v343_v51 = vsub.f32 0.0, %v1760_v9 }
  0xd7   :  { %v344_v10 = vmul.f32 %v343_v51, %v338_v7  ;;  %v3298_v51 = vld [vmem:[#allocation18_spill] sm:$0xff]  ;;  %v3299_v7 = vld [vmem:[#allocation19_spill] sm:$0xff] }
  0xd9   :  { %v345_v50 = vadd.f32 %v1760_v9, %v344_v10  ;;  %v3297_v9 = vld [vmem:[#allocation29_spill] sm:$0xff]  ;;  %v3300_v10 = vld [vmem:[#allocation32_spill] sm:$0xff] }
  0xdb   :  { %1721 = vmatmul.msk.f32.vlgmr.msra.gmra.mxu0 %vm347_vm9, %v345_v50  ;;  %1722 = vmatmul.msk.f32.vlgmr.msra.gmra.mxu1 %vm347_vm9, %v345_v50  ;;  %v2422_v13 = vsel %vm347_vm9, %v345_v50, 0.0 }
  0xdc   :  { %1723 = vmatmul.msk.f32.vlgmr.msra.gmra.mxu2 %vm347_vm9, %v345_v50  ;;  %1724 = vmatmul.msk.f32.vlgmr.msra.gmra.mxu3 %vm347_vm9, %v345_v50  ;;  %v3301_v50 = vld [vmem:[#allocation31_spill] sm:$0xff] }
  0xdd   :  { %632 = vmatpush.msra.mxu0 %v2065_v11  ;;  %652 = vmatpush.msra.mxu1 %v2067_v12 }
  0xde   :  { %672 = vmatpush.msra.mxu2 %v2089_v25  ;;  %692 = vmatpush.msra.mxu3 %v2081_v21 }
  0xdf   :  { %633 = vmatpush.msra.mxu0 %v2069_v15  ;;  %653 = vmatpush.msra.mxu1 %v2071_v16 }
  0xe0   :  { %673 = vmatpush.msra.mxu2 %v2100_v29  ;;  %693 = vmatpush.msra.mxu3 %v2091_v26 }
  0xe1   :  { %634 = vmatpush.msra.mxu0 %v2075_v19  ;;  %654 = vmatpush.msra.mxu1 %v2077_v20 }
  0xe2   :  { %674 = vmatpush.msra.mxu2 %v2112_v33  ;;  %694 = vmatpush.msra.mxu3 %v2102_v30 }
  0xe3   :  { %635 = vmatpush.msra.mxu0 %v2083_v23  ;;  %655 = vmatpush.msra.mxu1 %v2085_v24 }
  0xe4   :  { %675 = vmatpush.msra.mxu2 %v2135_v40  ;;  %695 = vmatpush.msra.mxu3 %v2114_v34 }
  0xe5   :  { %636 = vmatpush.msra.mxu0 %v2093_v27  ;;  %656 = vmatpush.msra.mxu1 %v2095_v28 }
  0xe6   :  { %676 = vmatpush.msra.mxu2 %v2147_v44  ;;  %696 = vmatpush.msra.mxu3 %v2137_v41 }
  0xe7   :  { %637 = vmatpush.msra.mxu0 %v2104_v31  ;;  %657 = vmatpush.msra.mxu1 %v2106_v32 }
  0xe8   :  { %677 = vmatpush.msra.mxu2 %v2159_v48  ;;  %697 = vmatpush.msra.mxu3 %v2149_v45 }
  0xe9   :  { %638 = vmatpush.msra.mxu0 %v2116_v35  ;;  %658 = vmatpush.msra.mxu1 %v2118_v36 }
  0xea   :  { %678 = vmatpush.msra.mxu2 %v2171_v52  ;;  %698 = vmatpush.msra.mxu3 %v2161_v49 }
  0xeb   :  { %639 = vmatpush.msra.mxu0 %v2127_v38  ;;  %659 = vmatpush.msra.mxu1 %v2129_v39 }
  0xec   :  { %679 = vmatpush.msra.mxu2 %v2194_v59  ;;  %699 = vmatpush.msra.mxu3 %v2173_v53 }
  0xed   :  { %640 = vmatpush.msra.mxu0 %v2141_v42  ;;  %660 = vmatpush.msra.mxu1 %v2143_v43 }
  0xee   :  { %680 = vmatpush.msra.mxu2 %v2208_v63  ;;  %700 = vmatpush.msra.mxu3 %v2198_v60 }
  0xef   :  { %641 = vmatpush.msra.mxu0 %v2153_v46  ;;  %661 = vmatpush.msra.mxu1 %v2155_v47 }
  0xf0   :  { %681 = vmatpush.msra.mxu2 %v2220_v3  ;;  %701 = vmatpush.msra.mxu3 %v3281_v0 }
  0xf1   :  { %642 = vmatpush.msra.mxu0 %v3282_v4  ;;  %662 = vmatpush.msra.mxu1 %v3283_v6 }
  0xf2   :  { %682 = vmatpush.msra.mxu2 %v3284_v57  ;;  %702 = vmatpush.msra.mxu3 %v3285_v2 }
  0xf3   :  { %643 = vmatpush.msra.mxu0 %v3286_v62  ;;  %663 = vmatpush.msra.mxu1 %v3287_v17 }
  0xf4   :  { %683 = vmatpush.msra.mxu2 %v3288_v56  ;;  %703 = vmatpush.msra.mxu3 %v3289_v54 }
  0xf5   :  { %644 = vmatpush.msra.mxu0 %v3290_v22  ;;  %664 = vmatpush.msra.mxu1 %v3291_v8  ;;  %v3302_v8 = vld [vmem:[#allocation22_spill] sm:$0xff]  ;;  %v3307_v22 = vld [vmem:[#allocation37_spill] sm:$0xff] }
  0xf6   :  { %684 = vmatpush.msra.mxu2 %v3292_v37  ;;  %704 = vmatpush.msra.mxu3 %v3293_v14  ;;  %v3303_v37 = vld [vmem:[#allocation23_spill] sm:$0xff]  ;;  %v3304_v14 = vld [vmem:[#allocation34_spill] sm:$0xff] }
  0xf7   :  { %645 = vmatpush.msra.mxu0 %v3294_v61  ;;  %665 = vmatpush.msra.mxu1 %v3295_v58  ;;  %v3305_v61 = vld [vmem:[#allocation33_spill] sm:$0xff]  ;;  %v3306_v58 = vld [vmem:[#allocation38_spill] sm:$0xff] }
  0xf8   :  { %685 = vmatpush.msra.mxu2 %v3296_v18  ;;  %705 = vmatpush.msra.mxu3 %v3297_v9  ;;  %v354_v18 = vrot.slane %v3306_v58, 2  ;;  %v355_v9 = vrot.slane %v3307_v22, 2 }
  0xf9   :  { %646 = vmatpush.msra.mxu0 %v3298_v51  ;;  %666 = vmatpush.msra.mxu1 %v3299_v7 }
  0xfa   :  { %686 = vmatpush.msra.mxu2 %v3300_v10  ;;  %706 = vmatpush.msra.mxu3 %v3301_v50 }
  0xfb   :  { %647 = vmatpush.msra.mxu0 %v3302_v8  ;;  %667 = vmatpush.msra.mxu1 %v3303_v37 }
  0xfc   :  { %687 = vmatpush.msra.mxu2 %v3304_v14  ;;  %707 = vmatpush.msra.mxu3 %v3305_v61 }
 0x158   :  { %v379_v54 = vpop.f32.mrf.mxu0  ;;  %v399_v51 = vpop.f32.mrf.mxu1 }
 0x159   :  { %v380_v56 = vadd.f32 %v379_v54, %v354_v18  ;;  %v400_v7 = vadd.f32 %v399_v51, %v355_v9 }
 0x15b   :  { %v1725_v17 = vmul.f32 -1.442695, %v380_v56  ;;  %v1726_v10 = vmul.f32 -1.442695, %v400_v7  ;;  %v357_v56 = vrot.slane %v2413_v55, 2  ;;  %v356_v7 = vrot.slane %v2415_v1, 2 }
 0x15d   :  { %1761 = vpow2.f32 %v1725_v17 }
 0x15e   :  { %1763 = vpow2.f32 %v1726_v10 }
 0x15f   :  { %v439_v18 = vpop.f32.mrf.mxu3  ;;  %v419_v51 = vpop.f32.mrf.mxu2 }
 0x160   :  { %v440_v10 = vadd.f32 %v439_v18, %v357_v56  ;;  %v420_v4 = vadd.f32 %v419_v51, %v356_v7 }
 0x163   :  { %v1762_v50 = vpop.eup %1761 }
 0x164   :  { %v1764_v8 = vpop.eup %1763  ;;  %v445_v62 = vadd.f32 1.0, %v1762_v50 }
 0x165   :  { %v464_v37 = vadd.f32 1.0, %v1764_v8 }
 0x166   :  { %1765 = vrcp.f32 %v445_v62  ;;  %v457_v22 = vand.u32 2147483648, %v445_v62  ;;  %v455_v54 = vand.u32 2147483647, %v445_v62  ;;  %vm451_vm11 = vweird.f32 %v445_v62 }
 0x167   :  { %1767 = vrcp.f32 %v464_v37  ;;  %v476_v55 = vand.u32 2147483648, %v464_v37  ;;  %vm470_vm15 = vweird.f32 %v464_v37 }
 0x168   :  { %v458_v8 = vor.u32 1.1754944e-38, %v457_v22  ;;  %vm456_vm13 = vcmp.eq.f32.partialorder %v455_v54, 8.507059e+37 }
 0x169   :  { %v477_v22 = vor.u32 1.1754944e-38, %v476_v55 }
 0x16c   :  { %v1766_v14 = vpop.eup %1765 }
 0x16d   :  { %v1768_v61 = vpop.eup %1767  ;;  %v447_v2 = vmul.f32 %v1766_v14, %v445_v62  ;;  %vm452_vm10 = vweird.f32 %v1766_v14 }
 0x16e   :  { %v466_v57 = vmul.f32 %v1768_v61, %v464_v37  ;;  %vm453_vm12 = vmor %vm451_vm11, %vm452_vm10  ;;  %vm471_vm14 = vweird.f32 %v1768_v61 }
 0x16f   :  { %v448_v58 = vsub.f32 1.0, %v447_v2  ;;  %vm472_vm1 = vmor %vm470_vm15, %vm471_vm14 }
 0x170   :  { %v467_v9 = vsub.f32 1.0, %v466_v57 }
 0x171   :  { %v449_v6 = vmul.f32 %v1766_v14, %v448_v58 }
 0x172   :  { %v468_v58 = vmul.f32 %v1768_v61, %v467_v9 }
 0x173   :  { %v450_v17 = vadd.f32 %v1766_v14, %v449_v6  ;;  %v474_v6 = vand.u32 2147483647, %v464_v37 }
 0x174   :  { %v469_v47 = vadd.f32 %v1768_v61, %v468_v58 }
 0x175   :  { %v454_v50 = vsel %vm453_vm12, %v1766_v14, %v450_v17  ;;  %vm475_vm2 = vcmp.eq.f32.partialorder %v474_v6, 8.507059e+37  ;;  %vm621_vm12 = vcmp.lt.s32.totalorder %v2419_v5, 96  ;;  %v2752_v5 = vld [vmem:[#allocation2 + $0x30] sm:$0xff] }
 0x176   :  { %v459_v2 = vsel %vm456_vm13, %v458_v8, %v454_v50  ;;  %v473_v57 = vsel %vm472_vm1, %v1768_v61, %v469_v47  ;;  %v3337_v50 = vld [vmem:[#allocation41_spill] sm:$0xff] }
 0x177   :  { %v480_v0 = vmul.f32 %v459_v2, %v440_v10  ;;  %v478_v14 = vsel %vm475_vm2, %v477_v22, %v473_v57  ;;  %v492_v2 = vrot.slane %v3337_v50, 4  ;;  %v491_v22 = vrot.slane %v2415_v1, 4 }
 0x179   :  { %v481_v3 = vadd.f32 %v480_v0, %v420_v4 }
 0x17b   :  { %1769 = vtanh.f32 %v481_v3 }
 0x181   :  { %v1770_v62 = vpop.eup %1769 }
 0x182   :  { %v483_v18 = vsub.f32 %v2422_v13, %v1770_v62 }
 0x184   :  { %v484_v54 = vmul.f32 %v483_v18, %v478_v14 }
 0x186   :  { %v485_v56 = vadd.f32 %v1770_v62, %v484_v54 }
 0x188   :  { %v2495_v0 = vsel %vm486_vm3, %v485_v56, %v2422_v13 }
 0x189   :  { %513 = vmatmul.f32.vlgmr.msrb.gmra.mxu0 %v2495_v0  ;;  %533 = vmatmul.f32.vlgmr.msrb.gmra.mxu1 %v2495_v0 }
 0x18a   :  { %553 = vmatmul.f32.vlgmr.msrb.gmra.mxu2 %v2495_v0  ;;  %573 = vmatmul.f32.vlgmr.msrb.gmra.mxu3 %v2495_v0 }
 0x18b   :  { %756 = vmatpush.msrb.mxu0 %v2065_v11  ;;  %776 = vmatpush.msrb.mxu1 %v2067_v12  ;;  %v3308_v11 = vld [vmem:[#allocation8_spill] sm:$0xff] }
 0x18c   :  { %796 = vmatpush.msrb.mxu2 %v2089_v25  ;;  %816 = vmatpush.msrb.mxu3 %v2081_v21  ;;  %v3309_v12 = vld [vmem:[#allocation20_spill] sm:$0xff]  ;;  %v3314_v21 = vld [vmem:[#allocation21_spill] sm:$0xff]  ;;  %v3317_v25 = vld [vmem:[#allocation26_spill] sm:$0xff] }
 0x18d   :  { %757 = vmatpush.msrb.mxu0 %v2069_v15  ;;  %777 = vmatpush.msrb.mxu1 %v2071_v16  ;;  %v3310_v15 = vld [vmem:[#allocation17_spill] sm:$0xff] }
 0x18e   :  { %797 = vmatpush.msrb.mxu2 %v2100_v29  ;;  %817 = vmatpush.msrb.mxu3 %v2091_v26  ;;  %v3311_v16 = vld [vmem:[#allocation9_spill] sm:$0xff]  ;;  %v3321_v29 = vld [vmem:[#allocation28_spill] sm:$0xff] }
 0x18f   :  { %758 = vmatpush.msrb.mxu0 %v2075_v19  ;;  %778 = vmatpush.msrb.mxu1 %v2077_v20  ;;  %v3312_v19 = vld [vmem:[#allocation10_spill] sm:$0xff]  ;;  %v3313_v20 = vld [vmem:[#allocation24_spill] sm:$0xff]  ;;  %v3318_v26 = vld [vmem:[#allocation25_spill] sm:$0xff] }
 0x190   :  { %798 = vmatpush.msrb.mxu2 %v2112_v33  ;;  %818 = vmatpush.msrb.mxu3 %v2102_v30  ;;  %v3322_v30 = vld [vmem:[#allocation27_spill] sm:$0xff]  ;;  %v3325_v33 = vld [vmem:[#allocation30_spill] sm:$0xff] }
 0x191   :  { %759 = vmatpush.msrb.mxu0 %v2083_v23  ;;  %779 = vmatpush.msrb.mxu1 %v2085_v24  ;;  %v3315_v23 = vld [vmem:[#allocation11_spill] sm:$0xff]  ;;  %v3316_v24 = vld [vmem:[#allocation12_spill] sm:$0xff] }
 0x192   :  { %799 = vmatpush.msrb.mxu2 %v2135_v40  ;;  %819 = vmatpush.msrb.mxu3 %v2114_v34  ;;  %v3326_v34 = vld [vmem:[#allocation29_spill] sm:$0xff]  ;;  %v3331_v40 = vld [vmem:[#allocation22_spill] sm:$0xff] }
 0x193   :  { %760 = vmatpush.msrb.mxu0 %v2093_v27  ;;  %780 = vmatpush.msrb.mxu1 %v2095_v28  ;;  %v3319_v27 = vld [vmem:[#allocation13_spill] sm:$0xff]  ;;  %v3320_v28 = vld [vmem:[#allocation14_spill] sm:$0xff] }
 0x194   :  { %800 = vmatpush.msrb.mxu2 %v2147_v44  ;;  %820 = vmatpush.msrb.mxu3 %v2137_v41  ;;  %v3332_v41 = vld [vmem:[#allocation23_spill] sm:$0xff]  ;;  %v3335_v44 = vld [vmem:[#allocation38_spill] sm:$0xff] }
 0x195   :  { %761 = vmatpush.msrb.mxu0 %v2104_v31  ;;  %781 = vmatpush.msrb.mxu1 %v2106_v32  ;;  %v3323_v31 = vld [vmem:[#allocation15_spill] sm:$0xff]  ;;  %v3324_v32 = vld [vmem:[#allocation16_spill] sm:$0xff] }
 0x196   :  { %801 = vmatpush.msrb.mxu2 %v2159_v48  ;;  %821 = vmatpush.msrb.mxu3 %v2149_v45  ;;  %v489_v45 = vrot.slane %v3335_v44, 4 }
 0x197   :  { %762 = vmatpush.msrb.mxu0 %v2116_v35  ;;  %782 = vmatpush.msrb.mxu1 %v2118_v36  ;;  %v3327_v35 = vld [vmem:[#allocation18_spill] sm:$0xff]  ;;  %v3328_v36 = vld [vmem:[#allocation19_spill] sm:$0xff] }
 0x198   :  { %802 = vmatpush.msrb.mxu2 %v2171_v52  ;;  %822 = vmatpush.msrb.mxu3 %v2161_v49  ;;  %3358 = vst [vmem:[#allocation19_spill] sm:$0xff] %v2752_v5 }
 0x199   :  { %763 = vmatpush.msrb.mxu0 %v2127_v38  ;;  %783 = vmatpush.msrb.mxu1 %v2129_v39  ;;  %v3329_v38 = vld [vmem:[#allocation32_spill] sm:$0xff]  ;;  %v3330_v39 = vld [vmem:[#allocation31_spill] sm:$0xff] }
 0x19a   :  { %803 = vmatpush.msrb.mxu2 %v2194_v59  ;;  %823 = vmatpush.msrb.mxu3 %v2173_v53 }
 0x19b   :  { %764 = vmatpush.msrb.mxu0 %v2141_v42  ;;  %784 = vmatpush.msrb.mxu1 %v2143_v43  ;;  %v3333_v42 = vld [vmem:[#allocation34_spill] sm:$0xff]  ;;  %v3334_v43 = vld [vmem:[#allocation33_spill] sm:$0xff] }
 0x19c   :  { %804 = vmatpush.msrb.mxu2 %v2208_v63  ;;  %824 = vmatpush.msrb.mxu3 %v2198_v60 }
 0x19d   :  { %765 = vmatpush.msrb.mxu0 %v2153_v46  ;;  %785 = vmatpush.msrb.mxu1 %v3308_v11  ;;  %v3336_v46 = vld [vmem:[#allocation37_spill] sm:$0xff] }
 0x19e   :  { %805 = vmatpush.msrb.mxu2 %v3309_v12  ;;  %825 = vmatpush.msrb.mxu3 %v3310_v15  ;;  %v490_v47 = vrot.slane %v3336_v46, 4 }
 0x19f   :  { %766 = vmatpush.msrb.mxu0 %v3311_v16  ;;  %786 = vmatpush.msrb.mxu1 %v3312_v19 }
 0x1a0   :  { %806 = vmatpush.msrb.mxu2 %v3313_v20  ;;  %826 = vmatpush.msrb.mxu3 %v3314_v21 }
 0x1a1   :  { %767 = vmatpush.msrb.mxu0 %v3315_v23  ;;  %787 = vmatpush.msrb.mxu1 %v3316_v24 }
 0x1a2   :  { %807 = vmatpush.msrb.mxu2 %v3317_v25  ;;  %827 = vmatpush.msrb.mxu3 %v3318_v26 }
 0x1a3   :  { %768 = vmatpush.msrb.mxu0 %v3319_v27  ;;  %788 = vmatpush.msrb.mxu1 %v3320_v28 }
 0x1a4   :  { %808 = vmatpush.msrb.mxu2 %v3321_v29  ;;  %828 = vmatpush.msrb.mxu3 %v3322_v30  ;;  %v2578_v30 = vld [vmem:[#allocation2 + $0x1e0] sm:$0xff] }
 0x1a5   :  { %769 = vmatpush.msrb.mxu0 %v3323_v31  ;;  %789 = vmatpush.msrb.mxu1 %v3324_v32  ;;  %v2581_v31 = vld [vmem:[#allocation2 + $0x1e8] sm:$0xff]  ;;  %v2584_v32 = vld [vmem:[#allocation2 + $0x1f0] sm:$0xff] }
 0x1a6   :  { %809 = vmatpush.msrb.mxu2 %v3325_v33  ;;  %829 = vmatpush.msrb.mxu3 %v3326_v34  ;;  %v2590_v33 = vld [vmem:[#allocation2 + $0x1c0] sm:$0xff]  ;;  %v2593_v34 = vld [vmem:[#allocation2 + $0x1c8] sm:$0xff] }
 0x1a7   :  { %770 = vmatpush.msrb.mxu0 %v3327_v35  ;;  %790 = vmatpush.msrb.mxu1 %v3328_v36  ;;  %v2596_v35 = vld [vmem:[#allocation2 + $0x1d0] sm:$0xff]  ;;  %v2599_v36 = vld [vmem:[#allocation2 + $0x1d8] sm:$0xff] }
 0x1a8   :  { %810 = vmatpush.msrb.mxu2 %v3329_v38  ;;  %830 = vmatpush.msrb.mxu3 %v3330_v39  ;;  %v2602_v38 = vld [vmem:[#allocation2 + $0x1a0] sm:$0xff]  ;;  %v2605_v39 = vld [vmem:[#allocation2 + $0x1a8] sm:$0xff] }
 0x1a9   :  { %771 = vmatpush.msrb.mxu0 %v3331_v40  ;;  %791 = vmatpush.msrb.mxu1 %v3332_v41  ;;  %v2608_v40 = vld [vmem:[#allocation2 + $0x1b0] sm:$0xff]  ;;  %v2611_v41 = vld [vmem:[#allocation2 + $0x1b8] sm:$0xff] }
 0x1aa   :  { %811 = vmatpush.msrb.mxu2 %v3333_v42  ;;  %831 = vmatpush.msrb.mxu3 %v3334_v43  ;;  %v2614_v42 = vld [vmem:[#allocation2 + $0x180] sm:$0xff]  ;;  %v2617_v43 = vld [vmem:[#allocation2 + $0x188] sm:$0xff] }
 0x206   :  { %v514_v48 = vpop.f32.mrf.mxu0  ;;  %v534_v49 = vpop.f32.mrf.mxu1 }
 0x207   :  { %v515_v52 = vadd.f32 %v514_v48, %v489_v45  ;;  %v535_v53 = vadd.f32 %v534_v49, %v490_v47  ;;  %v2620_v45 = vld [vmem:[#allocation2 + $0x190] sm:$0xff]  ;;  %v2623_v47 = vld [vmem:[#allocation2 + $0x198] sm:$0xff]  ;;  %v2626_v48 = vld [vmem:[#allocation2 + $0x160] sm:$0xff] }
 0x208   :  { %v2629_v49 = vld [vmem:[#allocation2 + $0x168] sm:$0xff] }
 0x209   :  { %v1727_v59 = vmul.f32 -1.442695, %v515_v52  ;;  %v1728_v60 = vmul.f32 -1.442695, %v535_v53  ;;  %v2632_v52 = vld [vmem:[#allocation2 + $0x170] sm:$0xff]  ;;  %v2635_v53 = vld [vmem:[#allocation2 + $0x178] sm:$0xff] }
 0x20b   :  { %1771 = vpow2.f32 %v1727_v59  ;;  %v2638_v59 = vld [vmem:[#allocation2 + $0x140] sm:$0xff] }
 0x20c   :  { %1773 = vpow2.f32 %v1728_v60  ;;  %v2641_v60 = vld [vmem:[#allocation2 + $0x148] sm:$0xff] }
 0x20d   :  { %v574_v10 = vpop.f32.mrf.mxu3  ;;  %v554_v57 = vpop.f32.mrf.mxu2 }
 0x20e   :  { %v575_v18 = vadd.f32 %v574_v10, %v492_v2  ;;  %v555_v56 = vadd.f32 %v554_v57, %v491_v22  ;;  %v2680_v10 = vld [vmem:[#allocation2 + $0xf0] sm:$0xff]  ;;  %v2683_v2 = vld [vmem:[#allocation2 + $0xf8] sm:$0xff]  ;;  %v2698_v22 = vld [vmem:[#allocation2 + $0xa0] sm:$0xff] }
 0x20f   :  { %v2692_v57 = vld [vmem:[#allocation2 + $0xd0] sm:$0xff]  ;;  %3340 = vst [vmem:[#allocation17_spill] sm:$0xff] %v2698_v22 }
 0x210   :  { %3338 = vst [vmem:[#allocation8_spill] sm:$0xff] %v2692_v57 }
 0x211   :  { %v1772_v63 = vpop.eup %1771 }
 0x212   :  { %v1774_v3 = vpop.eup %1773  ;;  %v580_v55 = vadd.f32 1.0, %v1772_v63  ;;  %v2644_v63 = vld [vmem:[#allocation2 + $0x150] sm:$0xff] }
 0x213   :  { %v599_v13 = vadd.f32 1.0, %v1774_v3  ;;  %v2647_v3 = vld [vmem:[#allocation2 + $0x158] sm:$0xff] }
 0x214   :  { %1775 = vrcp.f32 %v580_v55  ;;  %v592_v51 = vand.u32 2147483648, %v580_v55  ;;  %v590_v7 = vand.u32 2147483647, %v580_v55  ;;  %vm586_vm5 = vweird.f32 %v580_v55 }
 0x215   :  { %1777 = vrcp.f32 %v599_v13  ;;  %v611_v19 = vand.u32 2147483648, %v599_v13  ;;  %vm605_vm9 = vweird.f32 %v599_v13  ;;  %v609_v20 = vand.u32 2147483647, %v599_v13 }
 0x216   :  { %v593_v62 = vor.u32 1.1754944e-38, %v592_v51  ;;  %vm591_vm7 = vcmp.eq.f32.partialorder %v590_v7, 8.507059e+37  ;;  %v2671_v51 = vld [vmem:[#allocation2 + $0x118] sm:$0xff]  ;;  %v2677_v7 = vld [vmem:[#allocation2 + $0xe8] sm:$0xff] }
 0x217   :  { %v612_v24 = vor.u32 1.1754944e-38, %v611_v19  ;;  %vm610_vm11 = vcmp.eq.f32.partialorder %v609_v20, 8.507059e+37  ;;  %v2725_v19 = vld [vmem:[#allocation2 + $0x68] sm:$0xff]  ;;  %v2728_v20 = vld [vmem:[#allocation2 + $0x70] sm:$0xff] }
 0x218   :  { %3349 = vst [vmem:[#allocation13_spill] sm:$0xff] %v2725_v19 }
 0x219   :  { %3350 = vst [vmem:[#allocation14_spill] sm:$0xff] %v2728_v20 }
 0x21a   :  { %v1776_v4 = vpop.eup %1775 }
 0x21b   :  { %v1778_v37 = vpop.eup %1777  ;;  %v582_v61 = vmul.f32 %v1776_v4, %v580_v55  ;;  %vm587_vm4 = vweird.f32 %v1776_v4  ;;  %v2650_v55 = vld [vmem:[#allocation2 + $0x120] sm:$0xff] }
 0x21c   :  { %v601_v9 = vmul.f32 %v1778_v37, %v599_v13  ;;  %vm588_vm6 = vmor %vm586_vm5, %vm587_vm4  ;;  %vm606_vm8 = vweird.f32 %v1778_v37  ;;  %v2653_v13 = vld [vmem:[#allocation2 + $0x128] sm:$0xff] }
 0x21d   :  { %v583_v17 = vsub.f32 1.0, %v582_v61  ;;  %vm607_vm10 = vmor %vm605_vm9, %vm606_vm8  ;;  %v2662_v61 = vld [vmem:[#allocation2 + $0x100] sm:$0xff] }
 0x21e   :  { %v602_v6 = vsub.f32 1.0, %v601_v9  ;;  %v2668_v9 = vld [vmem:[#allocation2 + $0x110] sm:$0xff] }
 0x21f   :  { %v584_v8 = vmul.f32 %v1776_v4, %v583_v17  ;;  %v2665_v17 = vld [vmem:[#allocation2 + $0x108] sm:$0xff] }
 0x220   :  { %v603_v12 = vmul.f32 %v1778_v37, %v602_v6  ;;  %v2689_v6 = vld [vmem:[#allocation2 + $0xc8] sm:$0xff] }
 0x221   :  { %v585_v58 = vadd.f32 %v1776_v4, %v584_v8  ;;  %v2674_v8 = vld [vmem:[#allocation2 + $0xe0] sm:$0xff] }
 0x222   :  { %v604_v16 = vadd.f32 %v1778_v37, %v603_v12  ;;  %v2716_v12 = vld [vmem:[#allocation2 + $0x90] sm:$0xff] }
 0x223   :  { %v589_v14 = vsel %vm588_vm6, %v1776_v4, %v585_v58  ;;  %v2656_v4 = vld [vmem:[#allocation2 + $0x130] sm:$0xff]  ;;  %v2686_v58 = vld [vmem:[#allocation2 + $0xc0] sm:$0xff]  ;;  %3346 = vst [vmem:[#allocation12_spill] sm:$0xff] %v2716_v12 }
 0x224   :  { %v594_v54 = vsel %vm591_vm7, %v593_v62, %v589_v14  ;;  %v608_v21 = vsel %vm607_vm10, %v1778_v37, %v604_v16  ;;  %v2659_v37 = vld [vmem:[#allocation2 + $0x138] sm:$0xff]  ;;  %v2704_v14 = vld [vmem:[#allocation2 + $0xb0] sm:$0xff]  ;;  %v2722_v16 = vld [vmem:[#allocation2 + $0x60] sm:$0xff] }
 0x225   :  { %v615_v11 = vmul.f32 %v594_v54, %v575_v18  ;;  %v613_v26 = vsel %vm610_vm11, %v612_v24, %v608_v21  ;;  %v2695_v62 = vld [vmem:[#allocation2 + $0xd8] sm:$0xff]  ;;  %v2701_v18 = vld [vmem:[#allocation2 + $0xa8] sm:$0xff]  ;;  %3342 = vst [vmem:[#allocation10_spill] sm:$0xff] %v2704_v14 }
 0x226   :  { %3339 = vst [vmem:[#allocation20_spill] sm:$0xff] %v2695_v62  ;;  %v2707_v54 = vld [vmem:[#allocation2 + $0xb8] sm:$0xff]  ;;  %v2737_v24 = vld [vmem:[#allocation2 + $0x48] sm:$0xff] }
 0x227   :  { %v616_v15 = vadd.f32 %v615_v11, %v555_v56  ;;  %3341 = vst [vmem:[#allocation9_spill] sm:$0xff] %v2701_v18  ;;  %v2710_v56 = vld [vmem:[#allocation2 + $0x80] sm:$0xff]  ;;  %v2713_v11 = vld [vmem:[#allocation2 + $0x88] sm:$0xff]  ;;  %v2731_v21 = vld [vmem:[#allocation2 + $0x78] sm:$0xff] }
 0x228   :  { %3343 = vst [vmem:[#allocation24_spill] sm:$0xff] %v2707_v54 }
 0x229   :  { %1779 = vtanh.f32 %v616_v15  ;;  %3344 = vst [vmem:[#allocation21_spill] sm:$0xff] %v2710_v56  ;;  %v2719_v15 = vld [vmem:[#allocation2 + $0x98] sm:$0xff] }
 0x22a   :  { %3345 = vst [vmem:[#allocation11_spill] sm:$0xff] %v2713_v11 }
 0x22b   :  { %3347 = vst [vmem:[#allocation26_spill] sm:$0xff] %v2719_v15 }
 0x22c   :  { %3348 = vst [vmem:[#allocation25_spill] sm:$0xff] %v2722_v16 }
 0x22d   :  { %3351 = vst [vmem:[#allocation28_spill] sm:$0xff] %v2731_v21 }
 0x22e   :  { %3353 = vst [vmem:[#allocation15_spill] sm:$0xff] %v2737_v24 }
 0x22f   :  { %v1780_v23 = vpop.eup %1779 }
 0x230   :  { %v618_v25 = vsub.f32 %v2495_v0, %v1780_v23 }
 0x232   :  { %v619_v27 = vmul.f32 %v618_v25, %v613_v26  ;;  %v2740_v25 = vld [vmem:[#allocation2 + $0x50] sm:$0xff]  ;;  %v2743_v26 = vld [vmem:[#allocation2 + $0x58] sm:$0xff] }
 0x233   :  { %3354 = vst [vmem:[#allocation16_spill] sm:$0xff] %v2740_v25 }
 0x234   :  { %v620_v28 = vadd.f32 %v1780_v23, %v619_v27  ;;  %v2734_v23 = vld [vmem:[#allocation2 + $0x40] sm:$0xff]  ;;  %3355 = vst [vmem:[#allocation30_spill] sm:$0xff] %v2743_v26 }
 0x235   :  { %3352 = vst [vmem:[#allocation27_spill] sm:$0xff] %v2734_v23  ;;  %v2746_v27 = vld [vmem:[#allocation2 + $0x20] sm:$0xff] }
 0x236   :  { %v2572_v29 = vsel %vm621_vm12, %v620_v28, %v2495_v0  ;;  %v2587_v0 = vld [vmem:[#allocation2 + $0x1f8] sm:$0xff]  ;;  %3356 = vst [vmem:[#allocation29_spill] sm:$0xff] %v2746_v27  ;;  %v2749_v28 = vld [vmem:[#allocation2 + $0x28] sm:$0xff] }
 0x237   :  { %648 = vmatmul.f32.vlgmr.msra.gmra.mxu0 %v2572_v29  ;;  %668 = vmatmul.f32.vlgmr.msra.gmra.mxu1 %v2572_v29  ;;  %3357 = vst [vmem:[#allocation18_spill] sm:$0xff] %v2749_v28 }
 0x238   :  { %688 = vmatmul.f32.vlgmr.msra.gmra.mxu2 %v2572_v29  ;;  %708 = vmatmul.f32.vlgmr.msra.gmra.mxu3 %v2572_v29 }
 0x239   :  { %892 = vmatpush.msra.mxu0 %v2578_v30  ;;  %912 = vmatpush.msra.mxu1 %v2581_v31 }
 0x23a   :  { %932 = vmatpush.msra.mxu2 %v2584_v32  ;;  %952 = vmatpush.msra.mxu3 %v2587_v0 }
 0x23b   :  { %893 = vmatpush.msra.mxu0 %v2590_v33  ;;  %913 = vmatpush.msra.mxu1 %v2593_v34 }
 0x23c   :  { %933 = vmatpush.msra.mxu2 %v2596_v35  ;;  %953 = vmatpush.msra.mxu3 %v2599_v36 }
 0x23d   :  { %894 = vmatpush.msra.mxu0 %v2602_v38  ;;  %914 = vmatpush.msra.mxu1 %v2605_v39 }
 0x23e   :  { %934 = vmatpush.msra.mxu2 %v2608_v40  ;;  %954 = vmatpush.msra.mxu3 %v2611_v41 }
 0x23f   :  { %895 = vmatpush.msra.mxu0 %v2614_v42  ;;  %915 = vmatpush.msra.mxu1 %v2617_v43 }
 0x240   :  { %935 = vmatpush.msra.mxu2 %v2620_v45  ;;  %955 = vmatpush.msra.mxu3 %v2623_v47 }
 0x241   :  { %896 = vmatpush.msra.mxu0 %v2626_v48  ;;  %916 = vmatpush.msra.mxu1 %v2629_v49 }
 0x242   :  { %936 = vmatpush.msra.mxu2 %v2632_v52  ;;  %956 = vmatpush.msra.mxu3 %v2635_v53 }
 0x243   :  { %897 = vmatpush.msra.mxu0 %v2638_v59  ;;  %917 = vmatpush.msra.mxu1 %v2641_v60 }
 0x244   :  { %937 = vmatpush.msra.mxu2 %v2644_v63  ;;  %957 = vmatpush.msra.mxu3 %v2647_v3 }
 0x245   :  { %898 = vmatpush.msra.mxu0 %v2650_v55  ;;  %918 = vmatpush.msra.mxu1 %v2653_v13 }
 0x246   :  { %938 = vmatpush.msra.mxu2 %v2656_v4  ;;  %958 = vmatpush.msra.mxu3 %v2659_v37 }
 0x247   :  { %899 = vmatpush.msra.mxu0 %v2662_v61  ;;  %919 = vmatpush.msra.mxu1 %v2665_v17 }
 0x248   :  { %939 = vmatpush.msra.mxu2 %v2668_v9  ;;  %959 = vmatpush.msra.mxu3 %v2671_v51 }
 0x249   :  { %900 = vmatpush.msra.mxu0 %v2674_v8  ;;  %920 = vmatpush.msra.mxu1 %v2677_v7 }
 0x24a   :  { %940 = vmatpush.msra.mxu2 %v2680_v10  ;;  %960 = vmatpush.msra.mxu3 %v2683_v2 }
 0x24b   :  { %901 = vmatpush.msra.mxu0 %v2686_v58  ;;  %921 = vmatpush.msra.mxu1 %v2689_v6 }
 0x24c   :  { %941 = vmatpush.msra.mxu2 %v2692_v57  ;;  %961 = vmatpush.msra.mxu3 %v2695_v62 }
 0x24d   :  { %902 = vmatpush.msra.mxu0 %v2698_v22  ;;  %922 = vmatpush.msra.mxu1 %v2701_v18 }
 0x24e   :  { %942 = vmatpush.msra.mxu2 %v2704_v14  ;;  %962 = vmatpush.msra.mxu3 %v2707_v54 }
 0x24f   :  { %903 = vmatpush.msra.mxu0 %v2710_v56  ;;  %923 = vmatpush.msra.mxu1 %v2713_v11 }
 0x250   :  { %943 = vmatpush.msra.mxu2 %v2716_v12  ;;  %963 = vmatpush.msra.mxu3 %v2719_v15 }
 0x251   :  { %904 = vmatpush.msra.mxu0 %v2722_v16  ;;  %924 = vmatpush.msra.mxu1 %v2725_v19 }
 0x252   :  { %944 = vmatpush.msra.mxu2 %v2728_v20  ;;  %964 = vmatpush.msra.mxu3 %v2731_v21 }
 0x253   :  { %905 = vmatpush.msra.mxu0 %v2734_v23  ;;  %925 = vmatpush.msra.mxu1 %v2737_v24  ;;  %v2755_v24 = vld [vmem:[#allocation2 + $0x38] sm:$0xff] }
 0x254   :  { %945 = vmatpush.msra.mxu2 %v2740_v25  ;;  %965 = vmatpush.msra.mxu3 %v2743_v26  ;;  %3359 = vst [vmem:[#allocation32_spill] sm:$0xff] %v2755_v24  ;;  %v2758_v25 = vld [vmem:[#allocation2] sm:$0xff]  ;;  %v2761_v26 = vld [vmem:[#allocation2 + $0x8] sm:$0xff] }
 0x255   :  { %906 = vmatpush.msra.mxu0 %v2746_v27  ;;  %926 = vmatpush.msra.mxu1 %v2749_v28  ;;  %3360 = vst [vmem:[#allocation31_spill] sm:$0xff] %v2758_v25  ;;  %v2764_v27 = vld [vmem:[#allocation2 + $0x10] sm:$0xff]  ;;  %v2767_v28 = vld [vmem:[#allocation2 + $0x18] sm:$0xff] }
 0x256   :  { %946 = vmatpush.msra.mxu2 %v2752_v5  ;;  %966 = vmatpush.msra.mxu3 %v2755_v24  ;;  %3361 = vst [vmem:[#allocation22_spill] sm:$0xff] %v2761_v26  ;;  %v624_v5 = vrot.slane %v3335_v44, 6  ;;  %v625_v24 = vrot.slane %v3336_v46, 6 }
 0x257   :  { %907 = vmatpush.msra.mxu0 %v2758_v25  ;;  %927 = vmatpush.msra.mxu1 %v2761_v26  ;;  %3362 = vst [vmem:[#allocation23_spill] sm:$0xff] %v2764_v27 }
 0x258   :  { %947 = vmatpush.msra.mxu2 %v2764_v27  ;;  %3363 = vst [vmem:[#allocation34_spill] sm:$0xff] %v2767_v28  ;;  %967 = vmatpush.msra.mxu3 %v2767_v28 }
 0x2b4   :  { %v649_v23 = vpop.f32.mrf.mxu0  ;;  %v669_v21 = vpop.f32.mrf.mxu1 }
 0x2b5   :  { %v650_v20 = vadd.f32 %v649_v23, %v624_v5  ;;  %v670_v25 = vadd.f32 %v669_v21, %v625_v24  ;;  %v626_v24 = vrot.slane %v2415_v1, 6 }
 0x2b7   :  { %v1729_v19 = vmul.f32 -1.442695, %v650_v20  ;;  %v1730_v16 = vmul.f32 -1.442695, %v670_v25  ;;  %v627_v20 = vrot.slane %v3337_v50, 6 }
 0x2b9   :  { %1781 = vpow2.f32 %v1729_v19 }
 0x2ba   :  { %1783 = vpow2.f32 %v1730_v16 }
 0x2bb   :  { %v709_v21 = vpop.f32.mrf.mxu3  ;;  %v689_v23 = vpop.f32.mrf.mxu2 }
 0x2bc   :  { %v710_v25 = vadd.f32 %v709_v21, %v627_v20  ;;  %v690_v18 = vadd.f32 %v689_v23, %v626_v24  ;;  %v3371_v20 = vld [vmem:[#allocation11_spill] sm:$0xff]  ;;  %v3374_v23 = vld [vmem:[#allocation25_spill] sm:$0xff]  ;;  %v3376_v24 = vld [vmem:[#allocation14_spill] sm:$0xff] }
 0x2bf   :  { %v1782_v26 = vpop.eup %1781 }
 0x2c0   :  { %v1784_v15 = vpop.eup %1783  ;;  %v715_v12 = vadd.f32 1.0, %v1782_v26 }
 0x2c1   :  { %v734_v27 = vadd.f32 1.0, %v1784_v15 }
 0x2c2   :  { %1785 = vrcp.f32 %v715_v12  ;;  %v727_v46 = vand.u32 2147483648, %v715_v12  ;;  %v725_v5 = vand.u32 2147483647, %v715_v12  ;;  %vm721_vm14 = vweird.f32 %v715_v12 }
 0x2c3   :  { %1787 = vrcp.f32 %v734_v27  ;;  %v746_v50 = vand.u32 2147483648, %v734_v27  ;;  %vm740_vm3 = vweird.f32 %v734_v27 }
 0x2c4   :  { %v728_v15 = vor.u32 1.1754944e-38, %v727_v46  ;;  %vm726_vm1 = vcmp.eq.f32.partialorder %v725_v5, 8.507059e+37 }
 0x2c5   :  { %v747_v46 = vor.u32 1.1754944e-38, %v746_v50  ;;  %v3381_v50 = vld [vmem:[#allocation30_spill] sm:$0xff] }
 0x2c8   :  { %v1786_v11 = vpop.eup %1785 }
 0x2c9   :  { %v1788_v28 = vpop.eup %1787  ;;  %v717_v56 = vmul.f32 %v1786_v11, %v715_v12  ;;  %vm722_vm13 = vweird.f32 %v1786_v11 }
 0x2ca   :  { %v736_v54 = vmul.f32 %v1788_v28, %v734_v27  ;;  %vm723_vm15 = vmor %vm721_vm14, %vm722_vm13  ;;  %vm741_vm2 = vweird.f32 %v1788_v28 }
 0x2cb   :  { %v718_v44 = vsub.f32 1.0, %v717_v56  ;;  %vm742_vm4 = vmor %vm740_vm3, %vm741_vm2 }
 0x2cc   :  { %v737_v16 = vsub.f32 1.0, %v736_v54 }
 0x2cd   :  { %v719_v14 = vmul.f32 %v1786_v11, %v718_v44 }
 0x2ce   :  { %v738_v44 = vmul.f32 %v1788_v28, %v737_v16  ;;  %v3373_v16 = vld [vmem:[#allocation26_spill] sm:$0xff] }
 0x2cf   :  { %v720_v19 = vadd.f32 %v1786_v11, %v719_v14  ;;  %v744_v14 = vand.u32 2147483647, %v734_v27  ;;  %v3369_v27 = vld [vmem:[#allocation24_spill] sm:$0xff] }
 0x2d0   :  { %v739_v57 = vadd.f32 %v1788_v28, %v738_v44  ;;  %v3380_v44 = vld [vmem:[#allocation16_spill] sm:$0xff] }
 0x2d1   :  { %v724_v26 = vsel %vm723_vm15, %v1786_v11, %v720_v19  ;;  %vm745_vm5 = vcmp.eq.f32.partialorder %v744_v14, 8.507059e+37  ;;  %v3372_v19 = vld [vmem:[#allocation12_spill] sm:$0xff]  ;;  %v3382_v14 = vld [vmem:[#allocation29_spill] sm:$0xff] }
 0x2d2   :  { %v729_v56 = vsel %vm726_vm1, %v728_v15, %v724_v26  ;;  %v743_v54 = vsel %vm742_vm4, %v1788_v28, %v739_v57  ;;  %v3365_v57 = vld [vmem:[#allocation20_spill] sm:$0xff]  ;;  %v3370_v28 = vld [vmem:[#allocation21_spill] sm:$0xff]  ;;  %v3378_v26 = vld [vmem:[#allocation27_spill] sm:$0xff] }
 0x2d3   :  { %v750_v22 = vmul.f32 %v729_v56, %v710_v25  ;;  %v748_v11 = vsel %vm745_vm5, %v747_v46, %v743_v54  ;;  %v3375_v15 = vld [vmem:[#allocation13_spill] sm:$0xff]  ;;  %v3377_v25 = vld [vmem:[#allocation28_spill] sm:$0xff]  ;;  %v3379_v56 = vld [vmem:[#allocation15_spill] sm:$0xff] }
 0x2d4   :  { %v3383_v54 = vld [vmem:[#allocation18_spill] sm:$0xff]  ;;  %v3385_v46 = vld [vmem:[#allocation32_spill] sm:$0xff] }
 0x2d5   :  { %v751_v62 = vadd.f32 %v750_v22, %v690_v18  ;;  %v3367_v22 = vld [vmem:[#allocation9_spill] sm:$0xff]  ;;  %v3368_v18 = vld [vmem:[#allocation10_spill] sm:$0xff] }
 0x2d7   :  { %1789 = vtanh.f32 %v751_v62  ;;  %v3366_v62 = vld [vmem:[#allocation17_spill] sm:$0xff] }
 0x2dd   :  { %v1790_v12 = vpop.eup %1789 }
 0x2de   :  { %v753_v1 = vsub.f32 %v2572_v29, %v1790_v12  ;;  %v3364_v29 = vld [vmem:[#allocation8_spill] sm:$0xff] }
 0x2e0   :  { %v754_v5 = vmul.f32 %v753_v1, %v748_v11  ;;  %v3386_v1 = vld [vmem:[#allocation31_spill] sm:$0xff]  ;;  %v3387_v11 = vld [vmem:[#allocation22_spill] sm:$0xff] }
 0x2e2   :  { %v2775_v21 = vadd.f32 %v1790_v12, %v754_v5  ;;  %v3384_v12 = vld [vmem:[#allocation19_spill] sm:$0xff] }
 0x2e3   :  { %v3388_v5 = vld [vmem:[#allocation23_spill] sm:$0xff] }
 0x2e4   :  { %772 = vmatmul.f32.vlgmr.msrb.gmra.mxu0 %v2775_v21  ;;  %792 = vmatmul.f32.vlgmr.msrb.gmra.mxu1 %v2775_v21 }
 0x2e5   :  { %812 = vmatmul.f32.vlgmr.msrb.gmra.mxu2 %v2775_v21  ;;  %832 = vmatmul.f32.vlgmr.msrb.gmra.mxu3 %v2775_v21 }
 0x2e6   :  { %1024 = vmatpush.msrb.mxu0 %v2578_v30  ;;  %1044 = vmatpush.msrb.mxu1 %v2581_v31 }
 0x2e7   :  { %1064 = vmatpush.msrb.mxu2 %v2584_v32  ;;  %1084 = vmatpush.msrb.mxu3 %v2587_v0 }
 0x2e8   :  { %1025 = vmatpush.msrb.mxu0 %v2590_v33  ;;  %1045 = vmatpush.msrb.mxu1 %v2593_v34 }
 0x2e9   :  { %1065 = vmatpush.msrb.mxu2 %v2596_v35  ;;  %1085 = vmatpush.msrb.mxu3 %v2599_v36 }
 0x2ea   :  { %1026 = vmatpush.msrb.mxu0 %v2602_v38  ;;  %1046 = vmatpush.msrb.mxu1 %v2605_v39 }
 0x2eb   :  { %1066 = vmatpush.msrb.mxu2 %v2608_v40  ;;  %1086 = vmatpush.msrb.mxu3 %v2611_v41 }
 0x2ec   :  { %1027 = vmatpush.msrb.mxu0 %v2614_v42  ;;  %1047 = vmatpush.msrb.mxu1 %v2617_v43 }
 0x2ed   :  { %1067 = vmatpush.msrb.mxu2 %v2620_v45  ;;  %1087 = vmatpush.msrb.mxu3 %v2623_v47 }
 0x2ee   :  { %1028 = vmatpush.msrb.mxu0 %v2626_v48  ;;  %1048 = vmatpush.msrb.mxu1 %v2629_v49 }
 0x2ef   :  { %1068 = vmatpush.msrb.mxu2 %v2632_v52  ;;  %1088 = vmatpush.msrb.mxu3 %v2635_v53 }
 0x2f0   :  { %1029 = vmatpush.msrb.mxu0 %v2638_v59  ;;  %1049 = vmatpush.msrb.mxu1 %v2641_v60 }
 0x2f1   :  { %1069 = vmatpush.msrb.mxu2 %v2644_v63  ;;  %1089 = vmatpush.msrb.mxu3 %v2647_v3 }
 0x2f2   :  { %1030 = vmatpush.msrb.mxu0 %v2650_v55  ;;  %1050 = vmatpush.msrb.mxu1 %v2653_v13 }
 0x2f3   :  { %1070 = vmatpush.msrb.mxu2 %v2656_v4  ;;  %1090 = vmatpush.msrb.mxu3 %v2659_v37 }
 0x2f4   :  { %1031 = vmatpush.msrb.mxu0 %v2662_v61  ;;  %1051 = vmatpush.msrb.mxu1 %v2665_v17 }
 0x2f5   :  { %1071 = vmatpush.msrb.mxu2 %v2668_v9  ;;  %1091 = vmatpush.msrb.mxu3 %v2671_v51 }
 0x2f6   :  { %1032 = vmatpush.msrb.mxu0 %v2674_v8  ;;  %1052 = vmatpush.msrb.mxu1 %v2677_v7 }
 0x2f7   :  { %1072 = vmatpush.msrb.mxu2 %v2680_v10  ;;  %1092 = vmatpush.msrb.mxu3 %v2683_v2 }
 0x2f8   :  { %1033 = vmatpush.msrb.mxu0 %v2686_v58  ;;  %1053 = vmatpush.msrb.mxu1 %v2689_v6 }
 0x2f9   :  { %1073 = vmatpush.msrb.mxu2 %v3364_v29  ;;  %1093 = vmatpush.msrb.mxu3 %v3365_v57 }
 0x2fa   :  { %1034 = vmatpush.msrb.mxu0 %v3366_v62  ;;  %1054 = vmatpush.msrb.mxu1 %v3367_v22 }
 0x2fb   :  { %1074 = vmatpush.msrb.mxu2 %v3368_v18  ;;  %1094 = vmatpush.msrb.mxu3 %v3369_v27  ;;  %v3393_v27 = vld [vmem:[#allocation40_spill] sm:$0xff] }
 0x2fc   :  { %1035 = vmatpush.msrb.mxu0 %v3370_v28  ;;  %1055 = vmatpush.msrb.mxu1 %v3371_v20 }
 0x2fd   :  { %1075 = vmatpush.msrb.mxu2 %v3372_v19  ;;  %1095 = vmatpush.msrb.mxu3 %v3373_v16 }
 0x2fe   :  { %1036 = vmatpush.msrb.mxu0 %v3374_v23  ;;  %1056 = vmatpush.msrb.mxu1 %v3375_v15 }
 0x2ff   :  { %1076 = vmatpush.msrb.mxu2 %v3376_v24  ;;  %1096 = vmatpush.msrb.mxu3 %v3377_v25  ;;  %v3390_v25 = vld [vmem:[#allocation35_spill] sm:$0xff]  ;;  %v3391_v24 = vld [vmem:[#allocation36_spill] sm:$0xff] }
 0x300   :  { %1037 = vmatpush.msrb.mxu0 %v3378_v26  ;;  %1057 = vmatpush.msrb.mxu1 %v3379_v56  ;;  %v3389_v26 = vld [vmem:[#allocation34_spill] sm:$0xff] }
 0x301   :  { %1077 = vmatpush.msrb.mxu2 %v3380_v44  ;;  %1097 = vmatpush.msrb.mxu3 %v3381_v50 }
 0x302   :  { %1038 = vmatpush.msrb.mxu0 %v3382_v14  ;;  %1058 = vmatpush.msrb.mxu1 %v3383_v54 }
 0x303   :  { %1078 = vmatpush.msrb.mxu2 %v3384_v12  ;;  %1098 = vmatpush.msrb.mxu3 %v3385_v46 }
 0x304   :  { %1039 = vmatpush.msrb.mxu0 %v3386_v1  ;;  %1059 = vmatpush.msrb.mxu1 %v3387_v11 }
 0x305   :  { %1079 = vmatpush.msrb.mxu2 %v3388_v5  ;;  %1099 = vmatpush.msrb.mxu3 %v3389_v26 }
 0x361   :  { %v773_v56 = vpop.f32.mrf.mxu0  ;;  %v793_v44 = vpop.f32.mrf.mxu1 }
 0x362   :  { %v774_v50 = vadd.f32 %v773_v56, %v3390_v25  ;;  %v794_v14 = vadd.f32 %v793_v44, %v3391_v24 }
 0x364   :  { %v1731_v15 = vmul.f32 -1.442695, %v774_v50  ;;  %v1732_v54 = vmul.f32 -1.442695, %v794_v14 }
 0x366   :  { %1791 = vpow2.f32 %v1731_v15 }
 0x367   :  { %1793 = vpow2.f32 %v1732_v54 }
 0x368   :  { %v833_v44 = vpop.f32.mrf.mxu3  ;;  %v813_v14 = vpop.f32.mrf.mxu2 }
 0x369   :  { %v814_v18 = vadd.f32 %v813_v14, %v3393_v27  ;;  %v3404_v14 = vld [vmem:[#allocation13_spill] sm:$0xff] }
 0x36c   :  { %v1792_v12 = vpop.eup %1791 }
 0x36d   :  { %v1794_v46 = vpop.eup %1793  ;;  %v839_v23 = vadd.f32 1.0, %v1792_v12  ;;  %v3392_v12 = vld [vmem:[#allocation39_spill] sm:$0xff] }
 0x36e   :  { %v858_v1 = vadd.f32 1.0, %v1794_v46  ;;  %v834_v46 = vadd.f32 %v833_v44, %v3392_v12 }
 0x36f   :  { %1795 = vrcp.f32 %v839_v23  ;;  %v851_v20 = vand.u32 2147483648, %v839_v23  ;;  %v849_v56 = vand.u32 2147483647, %v839_v23  ;;  %vm845_vm7 = vweird.f32 %v839_v23 }
 0x370   :  { %1797 = vrcp.f32 %v858_v1  ;;  %v870_v57 = vand.u32 2147483648, %v858_v1  ;;  %vm864_vm11 = vweird.f32 %v858_v1 }
 0x371   :  { %v852_v54 = vor.u32 1.1754944e-38, %v851_v20  ;;  %vm850_vm9 = vcmp.eq.f32.partialorder %v849_v56, 8.507059e+37 }
 0x372   :  { %v871_v20 = vor.u32 1.1754944e-38, %v870_v57  ;;  %v3395_v57 = vld [vmem:[#allocation17_spill] sm:$0xff] }
 0x375   :  { %v1796_v11 = vpop.eup %1795 }
 0x376   :  { %v1798_v5 = vpop.eup %1797  ;;  %v841_v16 = vmul.f32 %v1796_v11, %v839_v23  ;;  %vm846_vm6 = vweird.f32 %v1796_v11 }
 0x377   :  { %v860_v19 = vmul.f32 %v1798_v5, %v858_v1  ;;  %vm847_vm8 = vmor %vm845_vm7, %vm846_vm6  ;;  %vm865_vm10 = vweird.f32 %v1798_v5 }
 0x378   :  { %v842_v26 = vsub.f32 1.0, %v841_v16  ;;  %vm866_vm12 = vmor %vm864_vm11, %vm865_vm10 }
 0x379   :  { %v861_v15 = vsub.f32 1.0, %v860_v19 }
 0x37a   :  { %v843_v28 = vmul.f32 %v1796_v11, %v842_v26 }
 0x37b   :  { %v862_v22 = vmul.f32 %v1798_v5, %v861_v15  ;;  %v3403_v15 = vld [vmem:[#allocation25_spill] sm:$0xff] }
 0x37c   :  { %v844_v50 = vadd.f32 %v1796_v11, %v843_v28  ;;  %v868_v28 = vand.u32 2147483647, %v858_v1  ;;  %v3400_v1 = vld [vmem:[#allocation11_spill] sm:$0xff] }
 0x37d   :  { %v863_v26 = vadd.f32 %v1798_v5, %v862_v22  ;;  %v3397_v22 = vld [vmem:[#allocation10_spill] sm:$0xff] }
 0x37e   :  { %v848_v24 = vsel %vm847_vm8, %v1796_v11, %v844_v50  ;;  %vm869_vm13 = vcmp.eq.f32.partialorder %v868_v28, 8.507059e+37  ;;  %v3402_v50 = vld [vmem:[#allocation26_spill] sm:$0xff]  ;;  %v3409_v28 = vld [vmem:[#allocation16_spill] sm:$0xff] }
 0x37f   :  { %v853_v25 = vsel %vm850_vm9, %v852_v54, %v848_v24  ;;  %v867_v19 = vsel %vm866_vm12, %v1798_v5, %v863_v26  ;;  %v3401_v5 = vld [vmem:[#allocation12_spill] sm:$0xff]  ;;  %v3405_v54 = vld [vmem:[#allocation14_spill] sm:$0xff]  ;;  %v3408_v26 = vld [vmem:[#allocation15_spill] sm:$0xff] }
 0x380   :  { %v874_v16 = vmul.f32 %v853_v25, %v834_v46  ;;  %v872_v56 = vsel %vm869_vm13, %v871_v20, %v867_v19  ;;  %v3399_v25 = vld [vmem:[#allocation21_spill] sm:$0xff]  ;;  %v3406_v46 = vld [vmem:[#allocation28_spill] sm:$0xff]  ;;  %v3410_v19 = vld [vmem:[#allocation30_spill] sm:$0xff] }
 0x381   :  { %v3412_v20 = vld [vmem:[#allocation18_spill] sm:$0xff] }
 0x382   :  { %v875_v62 = vadd.f32 %v874_v16, %v814_v18  ;;  %v3398_v18 = vld [vmem:[#allocation24_spill] sm:$0xff]  ;;  %v3407_v16 = vld [vmem:[#allocation27_spill] sm:$0xff] }
 0x384   :  { %1799 = vtanh.f32 %v875_v62  ;;  %v3396_v62 = vld [vmem:[#allocation9_spill] sm:$0xff] }
 0x38a   :  { %v1800_v23 = vpop.eup %1799 }
 0x38b   :  { %v877_v11 = vsub.f32 %v2775_v21, %v1800_v23  ;;  %v3394_v21 = vld [vmem:[#allocation20_spill] sm:$0xff] }
 0x38d   :  { %v878_v24 = vmul.f32 %v877_v11, %v872_v56  ;;  %v3413_v11 = vld [vmem:[#allocation19_spill] sm:$0xff]  ;;  %v3414_v56 = vld [vmem:[#allocation32_spill] sm:$0xff] }
 0x38f   :  { %v2850_v44 = vadd.f32 %v1800_v23, %v878_v24  ;;  %v3411_v23 = vld [vmem:[#allocation29_spill] sm:$0xff]  ;;  %v3415_v24 = vld [vmem:[#allocation31_spill] sm:$0xff] }
 0x391   :  { %908 = vmatmul.f32.vlgmr.msra.gmra.mxu0 %v2850_v44  ;;  %928 = vmatmul.f32.vlgmr.msra.gmra.mxu1 %v2850_v44 }
 0x392   :  { %948 = vmatmul.f32.vlgmr.msra.gmra.mxu2 %v2850_v44  ;;  %968 = vmatmul.f32.vlgmr.msra.gmra.mxu3 %v2850_v44 }
 0x393   :  { %1156 = vmatpush.msra.mxu0 %v2578_v30  ;;  %1176 = vmatpush.msra.mxu1 %v2581_v31 }
 0x394   :  { %1196 = vmatpush.msra.mxu2 %v2584_v32  ;;  %1216 = vmatpush.msra.mxu3 %v2587_v0 }
 0x395   :  { %1157 = vmatpush.msra.mxu0 %v2590_v33  ;;  %1177 = vmatpush.msra.mxu1 %v2593_v34 }
 0x396   :  { %1197 = vmatpush.msra.mxu2 %v2596_v35  ;;  %1217 = vmatpush.msra.mxu3 %v2599_v36 }
 0x397   :  { %1158 = vmatpush.msra.mxu0 %v2602_v38  ;;  %1178 = vmatpush.msra.mxu1 %v2605_v39 }
 0x398   :  { %1198 = vmatpush.msra.mxu2 %v2608_v40  ;;  %1218 = vmatpush.msra.mxu3 %v2611_v41 }
 0x399   :  { %1159 = vmatpush.msra.mxu0 %v2614_v42  ;;  %1179 = vmatpush.msra.mxu1 %v2617_v43 }
 0x39a   :  { %1199 = vmatpush.msra.mxu2 %v2620_v45  ;;  %1219 = vmatpush.msra.mxu3 %v2623_v47 }
 0x39b   :  { %1160 = vmatpush.msra.mxu0 %v2626_v48  ;;  %1180 = vmatpush.msra.mxu1 %v2629_v49 }
 0x39c   :  { %1200 = vmatpush.msra.mxu2 %v2632_v52  ;;  %1220 = vmatpush.msra.mxu3 %v2635_v53 }
 0x39d   :  { %1161 = vmatpush.msra.mxu0 %v2638_v59  ;;  %1181 = vmatpush.msra.mxu1 %v2641_v60 }
 0x39e   :  { %1201 = vmatpush.msra.mxu2 %v2644_v63  ;;  %1221 = vmatpush.msra.mxu3 %v2647_v3 }
 0x39f   :  { %1162 = vmatpush.msra.mxu0 %v2650_v55  ;;  %1182 = vmatpush.msra.mxu1 %v2653_v13 }
 0x3a0   :  { %1202 = vmatpush.msra.mxu2 %v2656_v4  ;;  %1222 = vmatpush.msra.mxu3 %v2659_v37 }
 0x3a1   :  { %1163 = vmatpush.msra.mxu0 %v2662_v61  ;;  %1183 = vmatpush.msra.mxu1 %v2665_v17 }
 0x3a2   :  { %1203 = vmatpush.msra.mxu2 %v2668_v9  ;;  %1223 = vmatpush.msra.mxu3 %v2671_v51 }
 0x3a3   :  { %1164 = vmatpush.msra.mxu0 %v2674_v8  ;;  %1184 = vmatpush.msra.mxu1 %v2677_v7 }
 0x3a4   :  { %1204 = vmatpush.msra.mxu2 %v2680_v10  ;;  %1224 = vmatpush.msra.mxu3 %v2683_v2 }
 0x3a5   :  { %1165 = vmatpush.msra.mxu0 %v2686_v58  ;;  %1185 = vmatpush.msra.mxu1 %v2689_v6 }
 0x3a6   :  { %1205 = vmatpush.msra.mxu2 %v3364_v29  ;;  %1225 = vmatpush.msra.mxu3 %v3394_v21 }
 0x3a7   :  { %1166 = vmatpush.msra.mxu0 %v3395_v57  ;;  %1186 = vmatpush.msra.mxu1 %v3396_v62 }
 0x3a8   :  { %1206 = vmatpush.msra.mxu2 %v3397_v22  ;;  %1226 = vmatpush.msra.mxu3 %v3398_v18 }
 0x3a9   :  { %1167 = vmatpush.msra.mxu0 %v3399_v25  ;;  %1187 = vmatpush.msra.mxu1 %v3400_v1 }
 0x3aa   :  { %1207 = vmatpush.msra.mxu2 %v3401_v5  ;;  %1227 = vmatpush.msra.mxu3 %v3402_v50 }
 0x3ab   :  { %1168 = vmatpush.msra.mxu0 %v3403_v15  ;;  %1188 = vmatpush.msra.mxu1 %v3404_v14  ;;  %v3420_v14 = vld [vmem:[#allocation36_spill] sm:$0xff] }
 0x3ac   :  { %1208 = vmatpush.msra.mxu2 %v3405_v54  ;;  %1228 = vmatpush.msra.mxu3 %v3406_v46  ;;  %v3416_v54 = vld [vmem:[#allocation22_spill] sm:$0xff]  ;;  %v3417_v46 = vld [vmem:[#allocation23_spill] sm:$0xff] }
 0x3ad   :  { %1169 = vmatpush.msra.mxu0 %v3407_v16  ;;  %1189 = vmatpush.msra.mxu1 %v3408_v26  ;;  %v3418_v16 = vld [vmem:[#allocation34_spill] sm:$0xff]  ;;  %v3419_v26 = vld [vmem:[#allocation35_spill] sm:$0xff] }
 0x3ae   :  { %1209 = vmatpush.msra.mxu2 %v3409_v28  ;;  %1229 = vmatpush.msra.mxu3 %v3410_v19  ;;  %v884_v28 = vrot.slane %v3419_v26, 2  ;;  %v885_v19 = vrot.slane %v3420_v14, 2 }
 0x3af   :  { %1170 = vmatpush.msra.mxu0 %v3411_v23  ;;  %1190 = vmatpush.msra.mxu1 %v3412_v20 }
 0x3b0   :  { %1210 = vmatpush.msra.mxu2 %v3413_v11  ;;  %1230 = vmatpush.msra.mxu3 %v3414_v56 }
 0x3b1   :  { %1171 = vmatpush.msra.mxu0 %v3415_v24  ;;  %1191 = vmatpush.msra.mxu1 %v3416_v54 }
 0x3b2   :  { %1211 = vmatpush.msra.mxu2 %v3417_v46  ;;  %1231 = vmatpush.msra.mxu3 %v3418_v16 }
 0x40e   :  { %v909_v15 = vpop.f32.mrf.mxu0  ;;  %v929_v23 = vpop.f32.mrf.mxu1 }
 0x40f   :  { %v910_v50 = vadd.f32 %v909_v15, %v884_v28  ;;  %v930_v20 = vadd.f32 %v929_v23, %v885_v19 }
 0x411   :  { %v1733_v5 = vmul.f32 -1.442695, %v910_v50  ;;  %v1734_v11 = vmul.f32 -1.442695, %v930_v20  ;;  %v887_v50 = vrot.slane %v3392_v12, 2 }
 0x413   :  { %1801 = vpow2.f32 %v1733_v5 }
 0x414   :  { %1803 = vpow2.f32 %v1734_v11  ;;  %v886_v11 = vrot.slane %v3393_v27, 2 }
 0x415   :  { %v969_v28 = vpop.f32.mrf.mxu3  ;;  %v949_v23 = vpop.f32.mrf.mxu2 }
 0x416   :  { %v950_v62 = vadd.f32 %v949_v23, %v886_v11  ;;  %v3431_v23 = vld [vmem:[#allocation25_spill] sm:$0xff]  ;;  %v3433_v11 = vld [vmem:[#allocation14_spill] sm:$0xff] }
 0x419   :  { %v1802_v56 = vpop.eup %1801 }
 0x41a   :  { %v1804_v24 = vpop.eup %1803  ;;  %v975_v1 = vadd.f32 1.0, %v1802_v56  ;;  %v970_v56 = vadd.f32 %v969_v28, %v887_v50 }
 0x41b   :  { %v994_v54 = vadd.f32 1.0, %v1804_v24 }
 0x41c   :  { %1805 = vrcp.f32 %v975_v1  ;;  %v987_v14 = vand.u32 2147483648, %v975_v1  ;;  %v985_v15 = vand.u32 2147483647, %v975_v1  ;;  %vm981_vm15 = vweird.f32 %v975_v1 }
 0x41d   :  { %1807 = vrcp.f32 %v994_v54  ;;  %v1006_v12 = vand.u32 2147483648, %v994_v54  ;;  %vm1000_vm4 = vweird.f32 %v994_v54 }
 0x41e   :  { %v988_v20 = vor.u32 1.1754944e-38, %v987_v14  ;;  %vm986_vm2 = vcmp.eq.f32.partialorder %v985_v15, 8.507059e+37 }
 0x41f   :  { %v1007_v14 = vor.u32 1.1754944e-38, %v1006_v12  ;;  %v3422_v12 = vld [vmem:[#allocation20_spill] sm:$0xff] }
 0x422   :  { %v1806_v46 = vpop.eup %1805 }
 0x423   :  { %v1808_v16 = vpop.eup %1807  ;;  %v977_v25 = vmul.f32 %v1806_v46, %v975_v1  ;;  %vm982_vm14 = vweird.f32 %v1806_v46 }
 0x424   :  { %v996_v18 = vmul.f32 %v1808_v16, %v994_v54  ;;  %vm983_vm1 = vmor %vm981_vm15, %vm982_vm14  ;;  %vm1001_vm3 = vweird.f32 %v1808_v16 }
 0x425   :  { %v978_v26 = vsub.f32 1.0, %v977_v25  ;;  %vm1002_vm5 = vmor %vm1000_vm4, %vm1001_vm3 }
 0x426   :  { %v997_v19 = vsub.f32 1.0, %v996_v18 }
 0x427   :  { %v979_v22 = vmul.f32 %v1806_v46, %v978_v26 }
 0x428   :  { %v998_v26 = vmul.f32 %v1808_v16, %v997_v19  ;;  %v3430_v19 = vld [vmem:[#allocation26_spill] sm:$0xff] }
 0x429   :  { %v980_v5 = vadd.f32 %v1806_v46, %v979_v22  ;;  %v1004_v22 = vand.u32 2147483647, %v994_v54  ;;  %v3427_v54 = vld [vmem:[#allocation21_spill] sm:$0xff] }
 0x42a   :  { %v999_v29 = vadd.f32 %v1808_v16, %v998_v26  ;;  %v3437_v26 = vld [vmem:[#allocation16_spill] sm:$0xff] }
 0x42b   :  { %v984_v24 = vsel %vm983_vm1, %v1806_v46, %v980_v5  ;;  %vm1005_vm6 = vcmp.eq.f32.partialorder %v1004_v22, 8.507059e+37  ;;  %v3429_v5 = vld [vmem:[#allocation12_spill] sm:$0xff]  ;;  %v3438_v22 = vld [vmem:[#allocation30_spill] sm:$0xff] }
 0x42c   :  { %v989_v25 = vsel %vm986_vm2, %v988_v20, %v984_v24  ;;  %v1003_v18 = vsel %vm1002_vm5, %v1808_v16, %v999_v29  ;;  %v3421_v29 = vld [vmem:[#allocation8_spill] sm:$0xff]  ;;  %v3428_v16 = vld [vmem:[#allocation11_spill] sm:$0xff]  ;;  %v3432_v20 = vld [vmem:[#allocation13_spill] sm:$0xff] }
 0x42d   :  { %v1010_v57 = vmul.f32 %v989_v25, %v970_v56  ;;  %v1008_v46 = vsel %vm1005_vm6, %v1007_v14, %v1003_v18  ;;  %v3434_v56 = vld [vmem:[#allocation28_spill] sm:$0xff]  ;;  %v3435_v24 = vld [vmem:[#allocation27_spill] sm:$0xff]  ;;  %v3439_v18 = vld [vmem:[#allocation29_spill] sm:$0xff] }
 0x42e   :  { %v3436_v25 = vld [vmem:[#allocation15_spill] sm:$0xff] }
 0x42f   :  { %v1011_v21 = vadd.f32 %v1010_v57, %v950_v62  ;;  %v3425_v57 = vld [vmem:[#allocation10_spill] sm:$0xff]  ;;  %v3426_v62 = vld [vmem:[#allocation24_spill] sm:$0xff]  ;;  %v3441_v14 = vld [vmem:[#allocation19_spill] sm:$0xff] }
 0x431   :  { %1809 = vtanh.f32 %v1011_v21  ;;  %v3424_v21 = vld [vmem:[#allocation9_spill] sm:$0xff] }
 0x437   :  { %v1810_v1 = vpop.eup %1809 }
 0x438   :  { %v1013_v28 = vsub.f32 %v2850_v44, %v1810_v1  ;;  %v3423_v44 = vld [vmem:[#allocation17_spill] sm:$0xff] }
 0x43a   :  { %v1014_v15 = vmul.f32 %v1013_v28, %v1008_v46  ;;  %v3442_v28 = vld [vmem:[#allocation32_spill] sm:$0xff]  ;;  %v3443_v46 = vld [vmem:[#allocation31_spill] sm:$0xff] }
 0x43c   :  { %v2925_v50 = vadd.f32 %v1810_v1, %v1014_v15  ;;  %v3440_v1 = vld [vmem:[#allocation18_spill] sm:$0xff] }
 0x43d   :  { %v3444_v15 = vld [vmem:[#allocation22_spill] sm:$0xff] }
 0x43e   :  { %1040 = vmatmul.f32.vlgmr.msrb.gmra.mxu0 %v2925_v50  ;;  %1060 = vmatmul.f32.vlgmr.msrb.gmra.mxu1 %v2925_v50 }
 0x43f   :  { %1080 = vmatmul.f32.vlgmr.msrb.gmra.mxu2 %v2925_v50  ;;  %1100 = vmatmul.f32.vlgmr.msrb.gmra.mxu3 %v2925_v50 }
 0x440   :  { %1280 = vmatpush.msrb.mxu0 %v2578_v30  ;;  %1300 = vmatpush.msrb.mxu1 %v2581_v31 }
 0x441   :  { %1320 = vmatpush.msrb.mxu2 %v2584_v32  ;;  %1340 = vmatpush.msrb.mxu3 %v2587_v0 }
 0x442   :  { %1281 = vmatpush.msrb.mxu0 %v2590_v33  ;;  %1301 = vmatpush.msrb.mxu1 %v2593_v34 }
 0x443   :  { %1321 = vmatpush.msrb.mxu2 %v2596_v35  ;;  %1341 = vmatpush.msrb.mxu3 %v2599_v36 }
 0x444   :  { %1282 = vmatpush.msrb.mxu0 %v2602_v38  ;;  %1302 = vmatpush.msrb.mxu1 %v2605_v39 }
 0x445   :  { %1322 = vmatpush.msrb.mxu2 %v2608_v40  ;;  %1342 = vmatpush.msrb.mxu3 %v2611_v41 }
 0x446   :  { %1283 = vmatpush.msrb.mxu0 %v2614_v42  ;;  %1303 = vmatpush.msrb.mxu1 %v2617_v43 }
 0x447   :  { %1323 = vmatpush.msrb.mxu2 %v2620_v45  ;;  %1343 = vmatpush.msrb.mxu3 %v2623_v47 }
 0x448   :  { %1284 = vmatpush.msrb.mxu0 %v2626_v48  ;;  %1304 = vmatpush.msrb.mxu1 %v2629_v49 }
 0x449   :  { %1324 = vmatpush.msrb.mxu2 %v2632_v52  ;;  %1344 = vmatpush.msrb.mxu3 %v2635_v53 }
 0x44a   :  { %1285 = vmatpush.msrb.mxu0 %v2638_v59  ;;  %1305 = vmatpush.msrb.mxu1 %v2641_v60 }
 0x44b   :  { %1325 = vmatpush.msrb.mxu2 %v2644_v63  ;;  %1345 = vmatpush.msrb.mxu3 %v2647_v3 }
 0x44c   :  { %1286 = vmatpush.msrb.mxu0 %v2650_v55  ;;  %1306 = vmatpush.msrb.mxu1 %v2653_v13 }
 0x44d   :  { %1326 = vmatpush.msrb.mxu2 %v2656_v4  ;;  %1346 = vmatpush.msrb.mxu3 %v2659_v37 }
 0x44e   :  { %1287 = vmatpush.msrb.mxu0 %v2662_v61  ;;  %1307 = vmatpush.msrb.mxu1 %v2665_v17 }
 0x44f   :  { %1327 = vmatpush.msrb.mxu2 %v2668_v9  ;;  %1347 = vmatpush.msrb.mxu3 %v2671_v51 }
 0x450   :  { %1288 = vmatpush.msrb.mxu0 %v2674_v8  ;;  %1308 = vmatpush.msrb.mxu1 %v2677_v7 }
 0x451   :  { %1328 = vmatpush.msrb.mxu2 %v2680_v10  ;;  %1348 = vmatpush.msrb.mxu3 %v2683_v2 }
 0x452   :  { %1289 = vmatpush.msrb.mxu0 %v2686_v58  ;;  %1309 = vmatpush.msrb.mxu1 %v2689_v6 }
 0x453   :  { %1329 = vmatpush.msrb.mxu2 %v3421_v29  ;;  %1349 = vmatpush.msrb.mxu3 %v3422_v12 }
 0x454   :  { %1290 = vmatpush.msrb.mxu0 %v3423_v44  ;;  %1310 = vmatpush.msrb.mxu1 %v3424_v21 }
 0x455   :  { %1330 = vmatpush.msrb.mxu2 %v3425_v57  ;;  %1350 = vmatpush.msrb.mxu3 %v3426_v62 }
 0x456   :  { %1291 = vmatpush.msrb.mxu0 %v3427_v54  ;;  %1311 = vmatpush.msrb.mxu1 %v3428_v16 }
 0x457   :  { %1331 = vmatpush.msrb.mxu2 %v3429_v5  ;;  %1351 = vmatpush.msrb.mxu3 %v3430_v19 }
 0x458   :  { %1292 = vmatpush.msrb.mxu0 %v3431_v23  ;;  %1312 = vmatpush.msrb.mxu1 %v3432_v20 }
 0x459   :  { %1332 = vmatpush.msrb.mxu2 %v3433_v11  ;;  %1352 = vmatpush.msrb.mxu3 %v3434_v56  ;;  %v3445_v56 = vld [vmem:[#allocation23_spill] sm:$0xff]  ;;  %v3448_v11 = vld [vmem:[#allocation36_spill] sm:$0xff] }
 0x45a   :  { %1293 = vmatpush.msrb.mxu0 %v3435_v24  ;;  %1313 = vmatpush.msrb.mxu1 %v3436_v25  ;;  %v3446_v24 = vld [vmem:[#allocation34_spill] sm:$0xff]  ;;  %v3447_v25 = vld [vmem:[#allocation35_spill] sm:$0xff] }
 0x45b   :  { %1333 = vmatpush.msrb.mxu2 %v3437_v26  ;;  %1353 = vmatpush.msrb.mxu3 %v3438_v22  ;;  %v1016_v26 = vrot.slane %v3447_v25, 4  ;;  %v1017_v22 = vrot.slane %v3448_v11, 4 }
 0x45c   :  { %1294 = vmatpush.msrb.mxu0 %v3439_v18  ;;  %1314 = vmatpush.msrb.mxu1 %v3440_v1 }
 0x45d   :  { %1334 = vmatpush.msrb.mxu2 %v3441_v14  ;;  %1354 = vmatpush.msrb.mxu3 %v3442_v28 }
 0x45e   :  { %1295 = vmatpush.msrb.mxu0 %v3443_v46  ;;  %1315 = vmatpush.msrb.mxu1 %v3444_v15 }
 0x45f   :  { %1335 = vmatpush.msrb.mxu2 %v3445_v56  ;;  %1355 = vmatpush.msrb.mxu3 %v3446_v24 }
 0x4bb   :  { %v1041_v20 = vpop.f32.mrf.mxu0  ;;  %v1061_v18 = vpop.f32.mrf.mxu1 }
 0x4bc   :  { %v1042_v23 = vadd.f32 %v1041_v20, %v1016_v26  ;;  %v1062_v1 = vadd.f32 %v1061_v18, %v1017_v22 }
 0x4be   :  { %v1735_v19 = vmul.f32 -1.442695, %v1042_v23  ;;  %v1736_v14 = vmul.f32 -1.442695, %v1062_v1  ;;  %v3449_v23 = vld [vmem:[#allocation39_spill] sm:$0xff] }
 0x4bf   :  { %v1019_v22 = vrot.slane %v3449_v23, 4 }
 0x4c0   :  { %1811 = vpow2.f32 %v1735_v19 }
 0x4c1   :  { %1813 = vpow2.f32 %v1736_v14 }
 0x4c2   :  { %v1101_v26 = vpop.f32.mrf.mxu3  ;;  %v1081_v1 = vpop.f32.mrf.mxu2 }
 0x4c6   :  { %v1812_v28 = vpop.eup %1811 }
 0x4c7   :  { %v1814_v46 = vpop.eup %1813  ;;  %v1107_v5 = vadd.f32 1.0, %v1812_v28  ;;  %v1018_v28 = vrot.slane %v3393_v27, 4 }
 0x4c8   :  { %v1126_v15 = vadd.f32 1.0, %v1814_v46  ;;  %v1102_v46 = vadd.f32 %v1101_v26, %v1019_v22 }
 0x4c9   :  { %1815 = vrcp.f32 %v1107_v5  ;;  %v1119_v11 = vand.u32 2147483648, %v1107_v5  ;;  %v1117_v20 = vand.u32 2147483647, %v1107_v5  ;;  %vm1113_vm8 = vweird.f32 %v1107_v5 }
 0x4ca   :  { %1817 = vrcp.f32 %v1126_v15  ;;  %v1082_v21 = vadd.f32 %v1081_v1, %v1018_v28  ;;  %v1138_v23 = vand.u32 2147483648, %v1126_v15  ;;  %vm1132_vm12 = vweird.f32 %v1126_v15  ;;  %v3478_v1 = vld [vmem:[#allocation39_spill] sm:$0xff] }
 0x4cb   :  { %v1120_v14 = vor.u32 1.1754944e-38, %v1119_v11  ;;  %vm1118_vm10 = vcmp.eq.f32.partialorder %v1117_v20, 8.507059e+37 }
 0x4cc   :  { %v1139_v11 = vor.u32 1.1754944e-38, %v1138_v23 }
 0x4cf   :  { %v1816_v56 = vpop.eup %1815 }
 0x4d0   :  { %v1818_v24 = vpop.eup %1817  ;;  %v1109_v16 = vmul.f32 %v1816_v56, %v1107_v5  ;;  %vm1114_vm7 = vweird.f32 %v1816_v56 }
 0x4d1   :  { %v1128_v54 = vmul.f32 %v1818_v24, %v1126_v15  ;;  %vm1115_vm9 = vmor %vm1113_vm8, %vm1114_vm7  ;;  %vm1133_vm11 = vweird.f32 %v1818_v24 }
 0x4d2   :  { %v1110_v25 = vsub.f32 1.0, %v1109_v16  ;;  %vm1134_vm13 = vmor %vm1132_vm12, %vm1133_vm11 }
 0x4d3   :  { %v1129_v18 = vsub.f32 1.0, %v1128_v54 }
 0x4d4   :  { %v1111_v62 = vmul.f32 %v1816_v56, %v1110_v25 }
 0x4d5   :  { %v1130_v25 = vmul.f32 %v1818_v24, %v1129_v18 }
 0x4d6   :  { %v1112_v19 = vadd.f32 %v1816_v56, %v1111_v62  ;;  %v1136_v62 = vand.u32 2147483647, %v1126_v15 }
 0x4d7   :  { %v1131_v29 = vadd.f32 %v1818_v24, %v1130_v25 }
 0x4d8   :  { %v1116_v57 = vsel %vm1115_vm9, %v1816_v56, %v1112_v19  ;;  %vm1137_vm14 = vcmp.eq.f32.partialorder %v1136_v62, 8.507059e+37  ;;  %v3082_v62 = vrot.slane %v3393_v27, 6 }
 0x4d9   :  { %v1121_v16 = vsel %vm1118_vm10, %v1120_v14, %v1116_v57  ;;  %v1135_v54 = vsel %vm1134_vm13, %v1818_v24, %v1131_v29  ;;  %v3079_v14 = vrot.slane %v3478_v1, 6  ;;  %v1963_v1 = vld [vmem:[#allocation2 + $0xd0] sm:$0xff] }
 0x4da   :  { %v1142_v44 = vmul.f32 %v1121_v16, %v1102_v46  ;;  %v1140_v56 = vsel %vm1137_vm14, %v1139_v11, %v1135_v54 }
 0x4dc   :  { %v1143_v12 = vadd.f32 %v1142_v44, %v1082_v21 }
 0x4de   :  { %1819 = vtanh.f32 %v1143_v12 }
 0x4e4   :  { %v1820_v5 = vpop.eup %1819 }
 0x4e5   :  { %v1145_v26 = vsub.f32 %v2925_v50, %v1820_v5 }
 0x4e7   :  { %v1146_v20 = vmul.f32 %v1145_v26, %v1140_v56 }
 0x4e9   :  { %v3000_v57 = vadd.f32 %v1820_v5, %v1146_v20 }
 0x4eb   :  { %1172 = vmatmul.f32.vlgmr.msra.gmra.mxu0 %v3000_v57  ;;  %1192 = vmatmul.f32.vlgmr.msra.gmra.mxu1 %v3000_v57 }
 0x4ec   :  { %1212 = vmatmul.f32.vlgmr.msra.gmra.mxu2 %v3000_v57  ;;  %1232 = vmatmul.f32.vlgmr.msra.gmra.mxu3 %v3000_v57 }
 0x4ed   :  { %1408 = vmatpush.msra.mxu0 %v2578_v30  ;;  %1428 = vmatpush.msra.mxu1 %v2581_v31  ;;  %v3450_v30 = vld [vmem:[#allocation8_spill] sm:$0xff] }
 0x4ee   :  { %1448 = vmatpush.msra.mxu2 %v2584_v32  ;;  %1468 = vmatpush.msra.mxu3 %v2587_v0  ;;  %v3451_v31 = vld [vmem:[#allocation20_spill] sm:$0xff]  ;;  %v3452_v32 = vld [vmem:[#allocation17_spill] sm:$0xff] }
 0x4ef   :  { %1409 = vmatpush.msra.mxu0 %v2590_v33  ;;  %1429 = vmatpush.msra.mxu1 %v2593_v34  ;;  %v3453_v0 = vld [vmem:[#allocation9_spill] sm:$0xff]  ;;  %v3454_v33 = vld [vmem:[#allocation10_spill] sm:$0xff]  ;;  %v3455_v34 = vld [vmem:[#allocation24_spill] sm:$0xff] }
 0x4f0   :  { %1449 = vmatpush.msra.mxu2 %v2596_v35  ;;  %1469 = vmatpush.msra.mxu3 %v2599_v36  ;;  %v3456_v35 = vld [vmem:[#allocation21_spill] sm:$0xff]  ;;  %v3457_v36 = vld [vmem:[#allocation11_spill] sm:$0xff] }
 0x4f1   :  { %1410 = vmatpush.msra.mxu0 %v2602_v38  ;;  %1430 = vmatpush.msra.mxu1 %v2605_v39  ;;  %v3458_v38 = vld [vmem:[#allocation12_spill] sm:$0xff]  ;;  %v3459_v39 = vld [vmem:[#allocation26_spill] sm:$0xff] }
 0x4f2   :  { %1450 = vmatpush.msra.mxu2 %v2608_v40  ;;  %1470 = vmatpush.msra.mxu3 %v2611_v41  ;;  %v3460_v40 = vld [vmem:[#allocation25_spill] sm:$0xff] }
 0x4f3   :  { %1411 = vmatpush.msra.mxu0 %v2614_v42  ;;  %1431 = vmatpush.msra.mxu1 %v2617_v43  ;;  %v3461_v41 = vld [vmem:[#allocation13_spill] sm:$0xff]  ;;  %v3462_v42 = vld [vmem:[#allocation14_spill] sm:$0xff]  ;;  %v3463_v43 = vld [vmem:[#allocation28_spill] sm:$0xff] }
 0x4f4   :  { %1451 = vmatpush.msra.mxu2 %v2620_v45  ;;  %1471 = vmatpush.msra.mxu3 %v2623_v47  ;;  %v3464_v45 = vld [vmem:[#allocation27_spill] sm:$0xff] }
 0x4f5   :  { %1412 = vmatpush.msra.mxu0 %v2626_v48  ;;  %1432 = vmatpush.msra.mxu1 %v2629_v49  ;;  %v3465_v47 = vld [vmem:[#allocation15_spill] sm:$0xff]  ;;  %v3466_v48 = vld [vmem:[#allocation16_spill] sm:$0xff]  ;;  %v3467_v49 = vld [vmem:[#allocation30_spill] sm:$0xff] }
 0x4f6   :  { %1452 = vmatpush.msra.mxu2 %v2632_v52  ;;  %1472 = vmatpush.msra.mxu3 %v2635_v53  ;;  %v3468_v52 = vld [vmem:[#allocation29_spill] sm:$0xff]  ;;  %v3469_v53 = vld [vmem:[#allocation18_spill] sm:$0xff] }
 0x4f7   :  { %1413 = vmatpush.msra.mxu0 %v2638_v59  ;;  %1433 = vmatpush.msra.mxu1 %v2641_v60  ;;  %v3470_v59 = vld [vmem:[#allocation19_spill] sm:$0xff]  ;;  %v3471_v60 = vld [vmem:[#allocation32_spill] sm:$0xff] }
 0x4f8   :  { %1453 = vmatpush.msra.mxu2 %v2644_v63  ;;  %1473 = vmatpush.msra.mxu3 %v2647_v3  ;;  %v3472_v63 = vld [vmem:[#allocation31_spill] sm:$0xff]  ;;  %v3473_v3 = vld [vmem:[#allocation22_spill] sm:$0xff] }
 0x4f9   :  { %1414 = vmatpush.msra.mxu0 %v2650_v55  ;;  %1434 = vmatpush.msra.mxu1 %v2653_v13  ;;  %v3474_v55 = vld [vmem:[#allocation23_spill] sm:$0xff]  ;;  %v3475_v13 = vld [vmem:[#allocation34_spill] sm:$0xff] }
 0x4fa   :  { %1454 = vmatpush.msra.mxu2 %v2656_v4  ;;  %1474 = vmatpush.msra.mxu3 %v2659_v37  ;;  %v3476_v4 = vld [vmem:[#allocation35_spill] sm:$0xff] }
 0x4fb   :  { %1415 = vmatpush.msra.mxu0 %v2662_v61  ;;  %1435 = vmatpush.msra.mxu1 %v2665_v17  ;;  %v3071_v37 = vrot.slane %v3476_v4, 6  ;;  %v3477_v61 = vld [vmem:[#allocation36_spill] sm:$0xff] }
 0x4fc   :  { %1455 = vmatpush.msra.mxu2 %v2668_v9  ;;  %1475 = vmatpush.msra.mxu3 %v2671_v51  ;;  %v3074_v17 = vrot.slane %v3477_v61, 6  ;;  %v1942_v4 = vld [vmem:[#allocation2 + $0x168] sm:$0xff]  ;;  %v1943_v61 = vld [vmem:[#allocation2 + $0x170] sm:$0xff] }
 0x4fd   :  { %1416 = vmatpush.msra.mxu0 %v2674_v8  ;;  %1436 = vmatpush.msra.mxu1 %v2677_v7 }
 0x4fe   :  { %1456 = vmatpush.msra.mxu2 %v2680_v10  ;;  %1476 = vmatpush.msra.mxu3 %v2683_v2 }
 0x4ff   :  { %1417 = vmatpush.msra.mxu0 %v2686_v58  ;;  %1437 = vmatpush.msra.mxu1 %v2689_v6 }
 0x500   :  { %1457 = vmatpush.msra.mxu2 %v3450_v30  ;;  %1477 = vmatpush.msra.mxu3 %v3451_v31 }
 0x501   :  { %1418 = vmatpush.msra.mxu0 %v3452_v32  ;;  %1438 = vmatpush.msra.mxu1 %v3453_v0 }
 0x502   :  { %1458 = vmatpush.msra.mxu2 %v3454_v33  ;;  %1478 = vmatpush.msra.mxu3 %v3455_v34 }
 0x503   :  { %1419 = vmatpush.msra.mxu0 %v3456_v35  ;;  %1439 = vmatpush.msra.mxu1 %v3457_v36 }
 0x504   :  { %1459 = vmatpush.msra.mxu2 %v3458_v38  ;;  %1479 = vmatpush.msra.mxu3 %v3459_v39 }
 0x505   :  { %1420 = vmatpush.msra.mxu0 %v3460_v40  ;;  %1440 = vmatpush.msra.mxu1 %v3461_v41  ;;  %v1925_v40 = vld [vmem:[#allocation2 + $0x1e0] sm:$0xff]  ;;  %v1926_v41 = vld [vmem:[#allocation2 + $0x1e8] sm:$0xff] }
 0x506   :  { %1460 = vmatpush.msra.mxu2 %v3462_v42  ;;  %1480 = vmatpush.msra.mxu3 %v3463_v43  ;;  %v1927_v42 = vld [vmem:[#allocation2 + $0x1f0] sm:$0xff]  ;;  %v1928_v43 = vld [vmem:[#allocation2 + $0x1f8] sm:$0xff] }
 0x507   :  { %1421 = vmatpush.msra.mxu0 %v3464_v45  ;;  %1441 = vmatpush.msra.mxu1 %v3465_v47  ;;  %v1930_v45 = vld [vmem:[#allocation2 + $0x1c8] sm:$0xff]  ;;  %v1931_v47 = vld [vmem:[#allocation2 + $0x1d0] sm:$0xff] }
 0x508   :  { %1461 = vmatpush.msra.mxu2 %v3466_v48  ;;  %1481 = vmatpush.msra.mxu3 %v3467_v49  ;;  %v1932_v48 = vld [vmem:[#allocation2 + $0x1d8] sm:$0xff]  ;;  %v1933_v49 = vld [vmem:[#allocation2 + $0x1a0] sm:$0xff] }
 0x509   :  { %1422 = vmatpush.msra.mxu0 %v3468_v52  ;;  %1442 = vmatpush.msra.mxu1 %v3469_v53  ;;  %v1934_v52 = vld [vmem:[#allocation2 + $0x1a8] sm:$0xff]  ;;  %v1935_v53 = vld [vmem:[#allocation2 + $0x1b0] sm:$0xff] }
 0x50a   :  { %1462 = vmatpush.msra.mxu2 %v3470_v59  ;;  %1482 = vmatpush.msra.mxu3 %v3471_v60  ;;  %v1936_v59 = vld [vmem:[#allocation2 + $0x1b8] sm:$0xff]  ;;  %v1937_v60 = vld [vmem:[#allocation2 + $0x180] sm:$0xff] }
 0x50b   :  { %1423 = vmatpush.msra.mxu0 %v3472_v63  ;;  %1443 = vmatpush.msra.mxu1 %v3473_v3  ;;  %v1938_v63 = vld [vmem:[#allocation2 + $0x188] sm:$0xff]  ;;  %v1939_v3 = vld [vmem:[#allocation2 + $0x190] sm:$0xff] }
 0x50c   :  { %1463 = vmatpush.msra.mxu2 %v3474_v55  ;;  %1483 = vmatpush.msra.mxu3 %v3475_v13  ;;  %v1940_v55 = vld [vmem:[#allocation2 + $0x198] sm:$0xff]  ;;  %v1941_v13 = vld [vmem:[#allocation2 + $0x160] sm:$0xff] }
 0x568   :  { %v1173_v9 = vpop.f32.mrf.mxu0  ;;  %v1193_v51 = vpop.f32.mrf.mxu1 }
 0x569   :  { %v1174_v8 = vadd.f32 %v1173_v9, %v3071_v37  ;;  %v1194_v7 = vadd.f32 %v1193_v51, %v3074_v17  ;;  %v1944_v9 = vld [vmem:[#allocation2 + $0x178] sm:$0xff]  ;;  %v1945_v51 = vld [vmem:[#allocation2 + $0x140] sm:$0xff] }
 0x56b   :  { %v1737_v10 = vmul.f32 -1.442695, %v1174_v8  ;;  %v1738_v2 = vmul.f32 -1.442695, %v1194_v7  ;;  %v1946_v8 = vld [vmem:[#allocation2 + $0x148] sm:$0xff]  ;;  %v1947_v7 = vld [vmem:[#allocation2 + $0x150] sm:$0xff] }
 0x56d   :  { %1821 = vpow2.f32 %v1737_v10  ;;  %v1948_v10 = vld [vmem:[#allocation2 + $0x158] sm:$0xff] }
 0x56e   :  { %1823 = vpow2.f32 %v1738_v2  ;;  %v1949_v2 = vld [vmem:[#allocation2 + $0x120] sm:$0xff] }
 0x56f   :  { %v1233_v18 = vpop.f32.mrf.mxu3  ;;  %v1213_v16 = vpop.f32.mrf.mxu2 }
 0x570   :  { %v1234_v54 = vadd.f32 %v1233_v18, %v3079_v14  ;;  %v1214_v26 = vadd.f32 %v1213_v16, %v3082_v62  ;;  %v1962_v18 = vld [vmem:[#allocation2 + $0xc8] sm:$0xff] }
 0x571   :  { %v1966_v16 = vld [vmem:[#allocation2 + $0xa8] sm:$0xff] }
 0x573   :  { %v1822_v58 = vpop.eup %1821 }
 0x574   :  { %v1824_v6 = vpop.eup %1823  ;;  %v1239_v50 = vadd.f32 1.0, %v1822_v58  ;;  %v1950_v58 = vld [vmem:[#allocation2 + $0x128] sm:$0xff] }
 0x575   :  { %v1258_v29 = vadd.f32 1.0, %v1824_v6  ;;  %v1951_v6 = vld [vmem:[#allocation2 + $0x130] sm:$0xff] }
 0x576   :  { %1825 = vrcp.f32 %v1239_v50  ;;  %v1251_v23 = vand.u32 2147483648, %v1239_v50  ;;  %v1249_v19 = vand.u32 2147483647, %v1239_v50  ;;  %vm1245_vm1 = vweird.f32 %v1239_v50 }
 0x577   :  { %1827 = vrcp.f32 %v1258_v29  ;;  %v1270_v32 = vand.u32 2147483648, %v1258_v29  ;;  %vm1264_vm5 = vweird.f32 %v1258_v29  ;;  %v1268_v0 = vand.u32 2147483647, %v1258_v29 }
 0x578   :  { %v1252_v25 = vor.u32 1.1754944e-38, %v1251_v23  ;;  %vm1250_vm3 = vcmp.eq.f32.partialorder %v1249_v19, 8.507059e+37  ;;  %v1959_v23 = vld [vmem:[#allocation2 + $0xf0] sm:$0xff]  ;;  %v1961_v19 = vld [vmem:[#allocation2 + $0xc0] sm:$0xff] }
 0x579   :  { %v1271_v34 = vor.u32 1.1754944e-38, %v1270_v32  ;;  %vm1269_vm7 = vcmp.eq.f32.partialorder %v1268_v0, 8.507059e+37  ;;  %v1976_v32 = vld [vmem:[#allocation2 + $0x78] sm:$0xff]  ;;  %v1977_v0 = vld [vmem:[#allocation2 + $0x40] sm:$0xff] }
 0x57c   :  { %v1826_v12 = vpop.eup %1825 }
 0x57d   :  { %v1828_v44 = vpop.eup %1827  ;;  %v1241_v21 = vmul.f32 %v1826_v12, %v1239_v50  ;;  %vm1246_vm15 = vweird.f32 %v1826_v12  ;;  %v1952_v50 = vld [vmem:[#allocation2 + $0x138] sm:$0xff] }
 0x57e   :  { %v1260_v15 = vmul.f32 %v1828_v44, %v1258_v29  ;;  %vm1247_vm2 = vmor %vm1245_vm1, %vm1246_vm15  ;;  %vm1265_vm4 = vweird.f32 %v1828_v44  ;;  %v1953_v29 = vld [vmem:[#allocation2 + $0x100] sm:$0xff] }
 0x57f   :  { %v1242_v24 = vsub.f32 1.0, %v1241_v21  ;;  %vm1266_vm6 = vmor %vm1264_vm5, %vm1265_vm4  ;;  %v1956_v21 = vld [vmem:[#allocation2 + $0x118] sm:$0xff] }
 0x580   :  { %v1261_v46 = vsub.f32 1.0, %v1260_v15  ;;  %v1958_v15 = vld [vmem:[#allocation2 + $0xe8] sm:$0xff] }
 0x581   :  { %v1243_v22 = vmul.f32 %v1826_v12, %v1242_v24  ;;  %v1957_v24 = vld [vmem:[#allocation2 + $0xe0] sm:$0xff] }
 0x582   :  { %v1262_v20 = vmul.f32 %v1828_v44, %v1261_v46  ;;  %v1965_v46 = vld [vmem:[#allocation2 + $0xa0] sm:$0xff] }
 0x583   :  { %v1244_v28 = vadd.f32 %v1826_v12, %v1243_v22  ;;  %v1960_v22 = vld [vmem:[#allocation2 + $0xf8] sm:$0xff] }
 0x584   :  { %v1263_v31 = vadd.f32 %v1828_v44, %v1262_v20  ;;  %v1973_v20 = vld [vmem:[#allocation2 + $0x60] sm:$0xff] }
 0x585   :  { %v1248_v5 = vsel %vm1247_vm2, %v1826_v12, %v1244_v28  ;;  %v1954_v12 = vld [vmem:[#allocation2 + $0x108] sm:$0xff]  ;;  %v1964_v28 = vld [vmem:[#allocation2 + $0xd8] sm:$0xff] }
 0x586   :  { %v1253_v11 = vsel %vm1250_vm3, %v1252_v25, %v1248_v5  ;;  %v1267_v33 = vsel %vm1266_vm6, %v1828_v44, %v1263_v31  ;;  %v1955_v44 = vld [vmem:[#allocation2 + $0x110] sm:$0xff]  ;;  %v1969_v5 = vld [vmem:[#allocation2 + $0x80] sm:$0xff] }
 0x587   :  { %v1274_v56 = vmul.f32 %v1253_v11, %v1234_v54  ;;  %v1272_v36 = vsel %vm1269_vm7, %v1271_v34, %v1267_v33  ;;  %v1967_v25 = vld [vmem:[#allocation2 + $0xb0] sm:$0xff]  ;;  %v1968_v54 = vld [vmem:[#allocation2 + $0xb8] sm:$0xff]  ;;  %v1970_v11 = vld [vmem:[#allocation2 + $0x88] sm:$0xff] }
 0x588   :  { %v1975_v31 = vld [vmem:[#allocation2 + $0x70] sm:$0xff]  ;;  %v1978_v33 = vld [vmem:[#allocation2 + $0x48] sm:$0xff]  ;;  %v1980_v34 = vld [vmem:[#allocation2 + $0x58] sm:$0xff] }
 0x589   :  { %v1275_v30 = vadd.f32 %v1274_v56, %v1214_v26  ;;  %v1971_v26 = vld [vmem:[#allocation2 + $0x90] sm:$0xff]  ;;  %v1972_v56 = vld [vmem:[#allocation2 + $0x98] sm:$0xff] }
 0x58b   :  { %1829 = vtanh.f32 %v1275_v30  ;;  %v1974_v30 = vld [vmem:[#allocation2 + $0x68] sm:$0xff] }
 0x591   :  { %v1830_v27 = vpop.eup %1829 }
 0x592   :  { %v1277_v35 = vsub.f32 %v3000_v57, %v1830_v27  ;;  %v1929_v57 = vld [vmem:[#allocation2 + $0x1c0] sm:$0xff] }
 0x594   :  { %v1278_v38 = vmul.f32 %v1277_v35, %v1272_v36  ;;  %v1981_v35 = vld [vmem:[#allocation2 + $0x20] sm:$0xff]  ;;  %v1982_v36 = vld [vmem:[#allocation2 + $0x28] sm:$0xff] }
 0x596   :  { %v3087_v39 = vadd.f32 %v1830_v27, %v1278_v38  ;;  %v1979_v27 = vld [vmem:[#allocation2 + $0x50] sm:$0xff] }
 0x597   :  { %v1983_v38 = vld [vmem:[#allocation2 + $0x30] sm:$0xff] }
 0x598   :  { %1296 = vmatmul.f32.vlgmr.msrb.gmra.mxu0 %v3087_v39  ;;  %1316 = vmatmul.f32.vlgmr.msrb.gmra.mxu1 %v3087_v39 }
 0x599   :  { %1336 = vmatmul.f32.vlgmr.msrb.gmra.mxu2 %v3087_v39  ;;  %1356 = vmatmul.f32.vlgmr.msrb.gmra.mxu3 %v3087_v39 }
 0x59a   :  { %1535 = vmatpush.msrb.mxu0 %v1925_v40  ;;  %1555 = vmatpush.msrb.mxu1 %v1926_v41  ;;  %v1984_v40 = vld [vmem:[#allocation2 + $0x38] sm:$0xff]  ;;  %v1985_v41 = vld [vmem:[#allocation2] sm:$0xff] }
 0x59b   :  { %1575 = vmatpush.msrb.mxu2 %v1927_v42  ;;  %1595 = vmatpush.msrb.mxu3 %v1928_v43  ;;  %v1986_v42 = vld [vmem:[#allocation2 + $0x8] sm:$0xff]  ;;  %v1987_v43 = vld [vmem:[#allocation2 + $0x10] sm:$0xff] }
 0x59c   :  { %1536 = vmatpush.msrb.mxu0 %v1929_v57  ;;  %1556 = vmatpush.msrb.mxu1 %v1930_v45  ;;  %v1988_v57 = vld [vmem:[#allocation2 + $0x18] sm:$0xff] }
 0x59d   :  { %1576 = vmatpush.msrb.mxu2 %v1931_v47  ;;  %1596 = vmatpush.msrb.mxu3 %v1932_v48 }
 0x59e   :  { %1537 = vmatpush.msrb.mxu0 %v1933_v49  ;;  %1557 = vmatpush.msrb.mxu1 %v1934_v52 }
 0x59f   :  { %1577 = vmatpush.msrb.mxu2 %v1935_v53  ;;  %1597 = vmatpush.msrb.mxu3 %v1936_v59 }
 0x5a0   :  { %1538 = vmatpush.msrb.mxu0 %v1937_v60  ;;  %1558 = vmatpush.msrb.mxu1 %v1938_v63 }
 0x5a1   :  { %1578 = vmatpush.msrb.mxu2 %v1939_v3  ;;  %1598 = vmatpush.msrb.mxu3 %v1940_v55 }
 0x5a2   :  { %1539 = vmatpush.msrb.mxu0 %v1941_v13  ;;  %1559 = vmatpush.msrb.mxu1 %v1942_v4 }
 0x5a3   :  { %1579 = vmatpush.msrb.mxu2 %v1943_v61  ;;  %1599 = vmatpush.msrb.mxu3 %v1944_v9 }
 0x5a4   :  { %1540 = vmatpush.msrb.mxu0 %v1945_v51  ;;  %1560 = vmatpush.msrb.mxu1 %v1946_v8 }
 0x5a5   :  { %1580 = vmatpush.msrb.mxu2 %v1947_v7  ;;  %1600 = vmatpush.msrb.mxu3 %v1948_v10 }
 0x5a6   :  { %1541 = vmatpush.msrb.mxu0 %v1949_v2  ;;  %1561 = vmatpush.msrb.mxu1 %v1950_v58 }
 0x5a7   :  { %1581 = vmatpush.msrb.mxu2 %v1951_v6  ;;  %1601 = vmatpush.msrb.mxu3 %v1952_v50 }
 0x5a8   :  { %1542 = vmatpush.msrb.mxu0 %v1953_v29  ;;  %1562 = vmatpush.msrb.mxu1 %v1954_v12 }
 0x5a9   :  { %1582 = vmatpush.msrb.mxu2 %v1955_v44  ;;  %1602 = vmatpush.msrb.mxu3 %v1956_v21 }
 0x5aa   :  { %1543 = vmatpush.msrb.mxu0 %v1957_v24  ;;  %1563 = vmatpush.msrb.mxu1 %v1958_v15 }
 0x5ab   :  { %1583 = vmatpush.msrb.mxu2 %v1959_v23  ;;  %1603 = vmatpush.msrb.mxu3 %v1960_v22 }
 0x5ac   :  { %1544 = vmatpush.msrb.mxu0 %v1961_v19  ;;  %1564 = vmatpush.msrb.mxu1 %v1962_v18 }
 0x5ad   :  { %1584 = vmatpush.msrb.mxu2 %v1963_v1  ;;  %1604 = vmatpush.msrb.mxu3 %v1964_v28 }
 0x5ae   :  { %1545 = vmatpush.msrb.mxu0 %v1965_v46  ;;  %1565 = vmatpush.msrb.mxu1 %v1966_v16 }
 0x5af   :  { %1585 = vmatpush.msrb.mxu2 %v1967_v25  ;;  %1605 = vmatpush.msrb.mxu3 %v1968_v54 }
 0x5b0   :  { %1546 = vmatpush.msrb.mxu0 %v1969_v5  ;;  %1566 = vmatpush.msrb.mxu1 %v1970_v11  ;;  %v3479_v5 = vld [vmem:[#allocation42_spill] sm:$0xff] }
 0x5b1   :  { %1586 = vmatpush.msrb.mxu2 %v1971_v26  ;;  %1606 = vmatpush.msrb.mxu3 %v1972_v56  ;;  %vm1404_vm1 = vcmp.ge.s32.totalorder %v3479_v5, 32 }
 0x5b2   :  { %1547 = vmatpush.msrb.mxu0 %v1973_v20  ;;  %1567 = vmatpush.msrb.mxu1 %v1974_v30 }
 0x5b3   :  { %1587 = vmatpush.msrb.mxu2 %v1975_v31  ;;  %1607 = vmatpush.msrb.mxu3 %v1976_v32 }
 0x5b4   :  { %1548 = vmatpush.msrb.mxu0 %v1977_v0  ;;  %1568 = vmatpush.msrb.mxu1 %v1978_v33 }
 0x5b5   :  { %1588 = vmatpush.msrb.mxu2 %v1979_v27  ;;  %1608 = vmatpush.msrb.mxu3 %v1980_v34 }
 0x5b6   :  { %1549 = vmatpush.msrb.mxu0 %v1981_v35  ;;  %1569 = vmatpush.msrb.mxu1 %v1982_v36 }
 0x5b7   :  { %1589 = vmatpush.msrb.mxu2 %v1983_v38  ;;  %1609 = vmatpush.msrb.mxu3 %v1984_v40 }
 0x5b8   :  { %1550 = vmatpush.msrb.mxu0 %v1985_v41  ;;  %1570 = vmatpush.msrb.mxu1 %v1986_v42 }
 0x5b9   :  { %1590 = vmatpush.msrb.mxu2 %v1987_v43  ;;  %1610 = vmatpush.msrb.mxu3 %v1988_v57 }
 0x615   :  { %v1297_v45 = vpop.f32.mrf.mxu0  ;;  %v1317_v47 = vpop.f32.mrf.mxu1 }
 0x616   :  { %v1298_v48 = vadd.f32 %v1297_v45, %v3071_v37  ;;  %v1318_v49 = vadd.f32 %v1317_v47, %v3074_v17 }
 0x618   :  { %v1739_v52 = vmul.f32 -1.442695, %v1298_v48  ;;  %v1740_v53 = vmul.f32 -1.442695, %v1318_v49 }
 0x61a   :  { %1831 = vpow2.f32 %v1739_v52 }
 0x61b   :  { %1833 = vpow2.f32 %v1740_v53 }
 0x61c   :  { %v1357_v10 = vpop.f32.mrf.mxu3  ;;  %v1337_v6 = vpop.f32.mrf.mxu2 }
 0x61d   :  { %v1358_v29 = vadd.f32 %v1357_v10, %v3079_v14  ;;  %v1338_v21 = vadd.f32 %v1337_v6, %v3082_v62 }
 0x620   :  { %v1832_v59 = vpop.eup %1831 }
 0x621   :  { %v1834_v60 = vpop.eup %1833  ;;  %v1363_v63 = vadd.f32 1.0, %v1832_v59 }
 0x622   :  { %v1382_v3 = vadd.f32 1.0, %v1834_v60 }
 0x623   :  { %1835 = vrcp.f32 %v1363_v63  ;;  %v1375_v51 = vand.u32 2147483648, %v1363_v63  ;;  %v1373_v7 = vand.u32 2147483647, %v1363_v63  ;;  %vm1369_vm9 = vweird.f32 %v1363_v63 }
 0x624   :  { %1837 = vrcp.f32 %v1382_v3  ;;  %v1394_v19 = vand.u32 2147483648, %v1382_v3  ;;  %vm1388_vm13 = vweird.f32 %v1382_v3  ;;  %v1392_v18 = vand.u32 2147483647, %v1382_v3 }
 0x625   :  { %v1376_v50 = vor.u32 1.1754944e-38, %v1375_v51  ;;  %vm1374_vm11 = vcmp.eq.f32.partialorder %v1373_v7, 8.507059e+37 }
 0x626   :  { %v1395_v46 = vor.u32 1.1754944e-38, %v1394_v19  ;;  %vm1393_vm15 = vcmp.eq.f32.partialorder %v1392_v18, 8.507059e+37 }
 0x629   :  { %v1836_v55 = vpop.eup %1835 }
 0x62a   :  { %v1838_v13 = vpop.eup %1837  ;;  %v1365_v4 = vmul.f32 %v1836_v55, %v1363_v63  ;;  %vm1370_vm8 = vweird.f32 %v1836_v55 }
 0x62b   :  { %v1384_v9 = vmul.f32 %v1838_v13, %v1382_v3  ;;  %vm1371_vm10 = vmor %vm1369_vm9, %vm1370_vm8  ;;  %vm1389_vm12 = vweird.f32 %v1838_v13 }
 0x62c   :  { %v1366_v61 = vsub.f32 1.0, %v1365_v4  ;;  %vm1390_vm14 = vmor %vm1388_vm13, %vm1389_vm12 }
 0x62d   :  { %v1385_v58 = vsub.f32 1.0, %v1384_v9 }
 0x62e   :  { %v1367_v8 = vmul.f32 %v1836_v55, %v1366_v61 }
 0x62f   :  { %v1386_v15 = vmul.f32 %v1838_v13, %v1385_v58 }
 0x630   :  { %v1368_v2 = vadd.f32 %v1836_v55, %v1367_v8 }
 0x631   :  { %v1387_v22 = vadd.f32 %v1838_v13, %v1386_v15 }
 0x632   :  { %v1372_v12 = vsel %vm1371_vm10, %v1836_v55, %v1368_v2  ;;  %vm1532_vm10 = vcmp.ge.s32.totalorder %v3479_v5, 64 }
 0x633   :  { %v1377_v44 = vsel %vm1374_vm11, %v1376_v50, %v1372_v12  ;;  %v1391_v1 = vsel %vm1390_vm14, %v1838_v13, %v1387_v22 }
 0x634   :  { %v1398_v24 = vmul.f32 %v1377_v44, %v1358_v29  ;;  %v1396_v25 = vsel %vm1393_vm15, %v1395_v46, %v1391_v1  ;;  %v1665_v1 = vld [vmem:[#allocation2 + $0x300] sm:$0xff] }
 0x635   :  { %v1663_v46 = vld [vmem:[#allocation2 + $0x2c0] sm:$0xff] }
 0x636   :  { %v1399_v23 = vadd.f32 %v1398_v24, %v1338_v21 }
 0x638   :  { %1839 = vtanh.f32 %v1399_v23 }
 0x63e   :  { %v1840_v28 = vpop.eup %1839 }
 0x63f   :  { %v1401_v16 = vsub.f32 %v3087_v39, %v1840_v28 }
 0x641   :  { %v1402_v54 = vmul.f32 %v1401_v16, %v1396_v25 }
 0x643   :  { %v1403_v11 = vadd.f32 %v1840_v28, %v1402_v54  ;;  %v1664_v28 = vld [vmem:[#allocation2 + $0x2e0] sm:$0xff] }
 0x644   :  { %v1662_v54 = vld [vmem:[#allocation2 + $0x2a0] sm:$0xff] }
 0x645   :  { %v1407_v26 = vsel %vm1404_vm1, %v1403_v11, %v3087_v39 }
 0x646   :  { %1424 = vmatmul.f32.vlgmr.msra.gmra.mxu0 %v1407_v26  ;;  %1444 = vmatmul.f32.vlgmr.msra.gmra.mxu1 %v1407_v26 }
 0x647   :  { %1464 = vmatmul.f32.vlgmr.msra.gmra.mxu2 %v1407_v26  ;;  %1484 = vmatmul.f32.vlgmr.msra.gmra.mxu3 %v1407_v26 }
 0x648   :  { %1684 = vmatpush.msra.mxu0 %v1665_v1 }
 0x64a   :  { %1685 = vmatpush.msra.mxu0 %v1664_v28 }
 0x64c   :  { %1686 = vmatpush.msra.mxu0 %v1663_v46 }
 0x64e   :  { %1687 = vmatpush.msra.mxu0 %v1662_v54 }
 0x6c3   :  { %v1425_v56 = vpop.f32.mrf.mxu0  ;;  %v1445_v20 = vpop.f32.mrf.mxu1 }
 0x6c4   :  { %v1426_v30 = vadd.f32 %v1425_v56, %v3071_v37  ;;  %v1446_v31 = vadd.f32 %v1445_v20, %v3074_v17 }
 0x6c6   :  { %v1741_v32 = vmul.f32 -1.442695, %v1426_v30  ;;  %v1742_v0 = vmul.f32 -1.442695, %v1446_v31 }
 0x6c8   :  { %1841 = vpow2.f32 %v1741_v32 }
 0x6c9   :  { %1843 = vpow2.f32 %v1742_v0 }
 0x6ca   :  { %v1485_v45 = vpop.f32.mrf.mxu3  ;;  %v1465_v49 = vpop.f32.mrf.mxu2 }
 0x6cb   :  { %v1486_v53 = vadd.f32 %v1485_v45, %v3079_v14  ;;  %v1466_v63 = vadd.f32 %v1465_v49, %v3082_v62 }
 0x6ce   :  { %v1842_v33 = vpop.eup %1841 }
 0x6cf   :  { %v1844_v27 = vpop.eup %1843  ;;  %v1491_v34 = vadd.f32 1.0, %v1842_v33 }
 0x6d0   :  { %v1510_v35 = vadd.f32 1.0, %v1844_v27 }
 0x6d1   :  { %1845 = vrcp.f32 %v1491_v34  ;;  %v1503_v42 = vand.u32 2147483648, %v1491_v34  ;;  %v1501_v57 = vand.u32 2147483647, %v1491_v34  ;;  %vm1497_vm3 = vweird.f32 %v1491_v34 }
 0x6d2   :  { %1847 = vrcp.f32 %v1510_v35  ;;  %v1522_v61 = vand.u32 2147483648, %v1510_v35  ;;  %vm1516_vm7 = vweird.f32 %v1510_v35  ;;  %v1520_v9 = vand.u32 2147483647, %v1510_v35 }
 0x6d3   :  { %v1504_v52 = vor.u32 1.1754944e-38, %v1503_v42  ;;  %vm1502_vm5 = vcmp.eq.f32.partialorder %v1501_v57, 8.507059e+37 }
 0x6d4   :  { %v1523_v7 = vor.u32 1.1754944e-38, %v1522_v61  ;;  %vm1521_vm9 = vcmp.eq.f32.partialorder %v1520_v9, 8.507059e+37 }
 0x6d7   :  { %v1846_v39 = vpop.eup %1845 }
 0x6d8   :  { %v1848_v36 = vpop.eup %1847  ;;  %v1493_v38 = vmul.f32 %v1846_v39, %v1491_v34  ;;  %vm1498_vm2 = vweird.f32 %v1846_v39 }
 0x6d9   :  { %v1512_v41 = vmul.f32 %v1848_v36, %v1510_v35  ;;  %vm1499_vm4 = vmor %vm1497_vm3, %vm1498_vm2  ;;  %vm1517_vm6 = vweird.f32 %v1848_v36 }
 0x6da   :  { %v1494_v40 = vsub.f32 1.0, %v1493_v38  ;;  %vm1518_vm8 = vmor %vm1516_vm7, %vm1517_vm6 }
 0x6db   :  { %v1513_v48 = vsub.f32 1.0, %v1512_v41 }
 0x6dc   :  { %v1495_v43 = vmul.f32 %v1846_v39, %v1494_v40 }
 0x6dd   :  { %v1514_v55 = vmul.f32 %v1848_v36, %v1513_v48 }
 0x6de   :  { %v1496_v47 = vadd.f32 %v1846_v39, %v1495_v43 }
 0x6df   :  { %v1515_v4 = vadd.f32 %v1848_v36, %v1514_v55 }
 0x6e0   :  { %v1500_v59 = vsel %vm1499_vm4, %v1846_v39, %v1496_v47  ;;  %vm1659_vm4 = vcmp.ge.s32.totalorder %v3479_v5, 96 }
 0x6e1   :  { %v1505_v60 = vsel %vm1502_vm5, %v1504_v52, %v1500_v59  ;;  %v1519_v51 = vsel %vm1518_vm8, %v1848_v36, %v1515_v4  ;;  %v1666_v59 = vld [vmem:[#allocation2 + $0x320] ss:$0 sm:$0xff]  ;;  %vm1692_vm5 = vcmask 9216  }
 0x6e2   :  { %v1526_v3 = vmul.f32 %v1505_v60, %v1486_v53  ;;  %v1524_v2 = vsel %vm1521_vm9, %v1523_v7, %v1519_v51 }
 0x6e4   :  { %v1527_v13 = vadd.f32 %v1526_v3, %v1466_v63 }
 0x6e6   :  { %1849 = vtanh.f32 %v1527_v13 }
 0x6ec   :  { %v1850_v8 = vpop.eup %1849 }
 0x6ed   :  { %v1529_v10 = vsub.f32 %v1407_v26, %v1850_v8 }
 0x6ef   :  { %v1530_v58 = vmul.f32 %v1529_v10, %v1524_v2 }
 0x6f1   :  { %v1531_v6 = vadd.f32 %v1850_v8, %v1530_v58 }
 0x6f3   :  { %v3105_v50 = vsel %vm1532_vm10, %v1531_v6, %v1407_v26 }
 0x6f4   :  { %1551 = vmatmul.f32.vlgmr.msrb.gmra.mxu0 %v3105_v50  ;;  %1571 = vmatmul.f32.vlgmr.msrb.gmra.mxu1 %v3105_v50 }
 0x6f5   :  { %1591 = vmatmul.f32.vlgmr.msrb.gmra.mxu2 %v3105_v50  ;;  %1611 = vmatmul.f32.vlgmr.msrb.gmra.mxu3 %v3105_v50 }
 0x771   :  { %v1552_v29 = vpop.f32.mrf.mxu0  ;;  %v1572_v12 = vpop.f32.mrf.mxu1 }
 0x772   :  { %v1553_v44 = vadd.f32 %v1552_v29, %v3071_v37  ;;  %v1573_v21 = vadd.f32 %v1572_v12, %v3074_v17 }
 0x774   :  { %v1743_v24 = vmul.f32 -1.442695, %v1553_v44  ;;  %v1744_v15 = vmul.f32 -1.442695, %v1573_v21 }
 0x776   :  { %1851 = vpow2.f32 %v1743_v24 }
 0x777   :  { %1853 = vpow2.f32 %v1744_v15 }
 0x778   :  { %v1612_v30 = vpop.f32.mrf.mxu3  ;;  %v1592_v0 = vpop.f32.mrf.mxu2 }
 0x779   :  { %v1613_v27 = vadd.f32 %v1612_v30, %v3079_v14  ;;  %v1593_v39 = vadd.f32 %v1592_v0, %v3082_v62 }
 0x77c   :  { %v1852_v23 = vpop.eup %1851 }
 0x77d   :  { %v1854_v22 = vpop.eup %1853  ;;  %v1618_v19 = vadd.f32 1.0, %v1852_v23 }
 0x77e   :  { %v1637_v18 = vadd.f32 1.0, %v1854_v22 }
 0x77f   :  { %1855 = vrcp.f32 %v1618_v19  ;;  %v1630_v26 = vand.u32 2147483648, %v1618_v19  ;;  %v1628_v20 = vand.u32 2147483647, %v1618_v19  ;;  %vm1624_vm12 = vweird.f32 %v1618_v19 }
 0x780   :  { %1857 = vrcp.f32 %v1637_v18  ;;  %v1649_v42 = vand.u32 2147483648, %v1637_v18  ;;  %vm1643_vm1 = vweird.f32 %v1637_v18  ;;  %v1647_v43 = vand.u32 2147483647, %v1637_v18 }
 0x781   :  { %v1631_v33 = vor.u32 1.1754944e-38, %v1630_v26  ;;  %vm1629_vm14 = vcmp.eq.f32.partialorder %v1628_v20, 8.507059e+37 }
 0x782   :  { %v1650_v47 = vor.u32 1.1754944e-38, %v1649_v42  ;;  %vm1648_vm3 = vcmp.eq.f32.partialorder %v1647_v43, 8.507059e+37 }
 0x785   :  { %v1856_v16 = vpop.eup %1855 }
 0x786   :  { %v1858_v25 = vpop.eup %1857  ;;  %v1620_v37 = vmul.f32 %v1856_v16, %v1618_v19  ;;  %vm1625_vm11 = vweird.f32 %v1856_v16 }
 0x787   :  { %v1639_v11 = vmul.f32 %v1858_v25, %v1637_v18  ;;  %vm1626_vm13 = vmor %vm1624_vm12, %vm1625_vm11  ;;  %vm1644_vm15 = vweird.f32 %v1858_v25 }
 0x788   :  { %v1621_v17 = vsub.f32 1.0, %v1620_v37  ;;  %vm1645_vm2 = vmor %vm1643_vm1, %vm1644_vm15 }
 0x789   :  { %v1640_v32 = vsub.f32 1.0, %v1639_v11 }
 0x78a   :  { %v1622_v56 = vmul.f32 %v1856_v16, %v1621_v17 }
 0x78b   :  { %v1641_v38 = vmul.f32 %v1858_v25, %v1640_v32 }
 0x78c   :  { %v1623_v31 = vadd.f32 %v1856_v16, %v1622_v56 }
 0x78d   :  { %v1642_v41 = vadd.f32 %v1858_v25, %v1641_v38 }
 0x78e   :  { %v1627_v34 = vsel %vm1626_vm13, %v1856_v16, %v1623_v31 }
 0x78f   :  { %v1632_v35 = vsel %vm1629_vm14, %v1631_v33, %v1627_v34  ;;  %v1646_v57 = vsel %vm1645_vm2, %v1858_v25, %v1642_v41 }
 0x790   :  { %v1653_v36 = vmul.f32 %v1632_v35, %v1613_v27  ;;  %v1651_v48 = vsel %vm1648_vm3, %v1650_v47, %v1646_v57 }
 0x792   :  { %v1654_v40 = vadd.f32 %v1653_v36, %v1593_v39 }
 0x794   :  { %1859 = vtanh.f32 %v1654_v40 }
 0x79a   :  { %v1860_v45 = vpop.eup %1859 }
 0x79b   :  { %v1656_v14 = vsub.f32 %v3105_v50, %v1860_v45 }
 0x79d   :  { %v1657_v49 = vmul.f32 %v1656_v14, %v1651_v48 }
 0x79f   :  { %v1658_v62 = vadd.f32 %v1860_v45, %v1657_v49 }
 0x7a1   :  { %v1661_v52 = vsel %vm1659_vm4, %v1658_v62, %v3105_v50 }
 0x7a2   :  { %1668 = vrot.lane.b32.xlu0 %v1661_v52, %s2043_s15 }
 0x814   :  { %v1669_v53 = vpop.permute.xlu0 %1668 }
 0x815   :  { %1745 = vmatmul.msk.f32.vlgmr.msra.gmra.mxu0 %vm121_vm0, %v1669_v53 }
 0x892   :  { %v1689_v60 = vpop.f32.mrf.mxu0 }
 0x893   :  { %v1690_v63 = vadd.f32 %v1689_v60, %v1666_v59 }
 0x895   :  { %1693 = vst.msk [vmem:[#allocation5] sm:$0x3] %vm1692_vm5, %v1690_v63 }
 0x896   :  { %1704 = dma.vmem_to_hbm [thread:$0]  %s1700_s19, 32, %s1702_s22, [#allocation4]  }
 0x897   :  { %2039 = dma.done.wait [#allocation4], 32  }
 0x898   :  { %2040 = vsyncadd [#allocation4], 4294967264 }
 0x899   :  { %1709 = vsyncpa [#allocation3], 1 }
 0x89a   :  { %1710 = vsyncpa [#allocation4], 1 }

</bundles_post_ra>
